<compile_context>
chip_gen: v6e
topology: v6e:2x2x1
jax: 0.10.0
libtpu: 0.0.40
codegen_flags: <defaults>
</compile_context>

<pallas_src>
import functools

import jax
import jax.numpy as jnp
from jax import lax
from jax.experimental import pallas as pl
from jax.experimental.pallas import tpu as pltpu

EPS = 1e-5


# ------------------------------- fused kernel --------------------------------

def _fused_shake_kernel(xin_ref, wa_ref, sa_ref, ba_ref,
                        wb_ref, sb_ref, bb_ref,
                        ws_ref, ss_ref, bs_ref,
                        o_ref, hpad_ref, *, taps, skip_tap_ids, Ho, Wo):
    """Whole ShakeShake block for a block of B images.

    xin_ref : (B, Hp, Wp, Kin)    bf16 lane-packed input (padded NHWC; space-to-depth of the
                                   padded input when stride==2) -> unit-stride taps only.
    wa_ref  : (T*Kin, 2*Cout)     conv_a weights, [net1 | net2] stacked along Cout (bf16)
    sa/ba   : (1, 2*Cout)         fused BN_a affine (f32)
    wb_ref  : (9*2*Cout, 2*Cout)  conv_b weights, block-diagonal over branches (bf16)
    sb/bb   : (1, 2*Cout)         fused BN_b affine (f32)
    ws_ref  : (S*Kin, Cout)       skip 1x1 weights applied to raw taps (bf16)
    ss/bs   : (1, Cout)           fused skip-BN affine (f32)
    o_ref   : (B*Ho*Wo, Cout)     output rows (spatial-major)
    hpad_ref: VMEM (B, Ho+2, Wo+2, 2*Cout) bf16 scratch for the padded conv_a output
    """
    B = xin_ref.shape[0]
    Kin = xin_ref.shape[3]
    C2 = hpad_ref.shape[3]                  # 2 * Cout   (net1 | net2)
    Cout = o_ref.shape[1]
    M = B * Ho * Wo
    T = len(taps)

    # Unit-stride tap windows (bf16) — static slices only (no strided ds).
    tap_vals = [xin_ref[:, ty:ty + Ho, tx:tx + Wo, :] for (ty, tx) in taps]

    # ---- conv_a (both branches, ONE im2col dot): ReLU(x) -> conv -> BN -> ReLU ----
    patches_a = jnp.concatenate([jnp.maximum(t, 0) for t in tap_vals],
                                axis=-1).reshape(M, T * Kin)            # bf16
    ha = jnp.dot(patches_a, wa_ref[...], preferred_element_type=jnp.float32)
    ha = jnp.maximum(ha * sa_ref[...] + ba_ref[...], 0.0).astype(jnp.bfloat16)   # (M, 2C)

    # Stage the padded intermediate in the bf16 VMEM scratch.  Only the 1-wide halo is
    # zeroed (not the whole slab) and every step rewrites everything it reads, so the
    # grid axis can stay "parallel" (megacore-safe).
    hpad_ref[:, 0:1, :, :] = jnp.zeros((B, 1, Wo + 2, C2), jnp.bfloat16)
    hpad_ref[:, Ho + 1:Ho + 2, :, :] = jnp.zeros((B, 1, Wo + 2, C2), jnp.bfloat16)
    hpad_ref[:, :, 0:1, :] = jnp.zeros((B, Ho + 2, 1, C2), jnp.bfloat16)
    hpad_ref[:, :, Wo + 1:Wo + 2, :] = jnp.zeros((B, Ho + 2, 1, C2), jnp.bfloat16)
    hpad_ref[:, 1:Ho + 1, 1:Wo + 1, :] = ha.reshape(B, Ho, Wo, C2)

    # ---- conv_b (both branches, block-diagonal weights) -> BN ----
    # TODO(synk): at real CIFAR widths (C >= 32) split this into two dense (9C, C) dots to
    #             drop the block-diagonal zero MACs (negligible at C = 8).
    patches_b = jnp.concatenate(
        [hpad_ref[:, dy:dy + Ho, dx:dx + Wo, :] for dy in range(3) for dx in range(3)],
        axis=-1).reshape(M, 9 * C2)                                     # bf16
    hb = jnp.dot(patches_b, wb_ref[...], preferred_element_type=jnp.float32)
    hb = hb * sb_ref[...] + bb_ref[...]
    branch_sum = hb[:, :Cout] + hb[:, Cout:]                            # y1 + y2

    # ---- skip path: one dot on the raw (un-ReLU'd) tap(s) ----
    if len(skip_tap_ids) == 1:
        skip_patch = tap_vals[skip_tap_ids[0]]
    else:
        skip_patch = jnp.concatenate([tap_vals[i] for i in skip_tap_ids], axis=-1)
    skip = jnp.dot(skip_patch.reshape(M, len(skip_tap_ids) * Kin), ws_ref[...],
                   preferred_element_type=jnp.float32)
    skip = skip * ss_ref[...] + bs_ref[...]

    # eval-mode shake-shake combine
    # TODO(synk): lane-dense (B, Ho*Wo*Cout) store needs a minor-dim reshape/relayout;
    #             kept as (M, Cout) rows for robust lowering (HBM writeback is contiguous).
    o_ref[...] = (skip + 0.5 * branch_sum).astype(o_ref.dtype)


# ------------------------------ param packing --------------------------------

def pack_params(params, in_c, out_c, stride, taps):
    C = out_c
    Kin = in_c if stride == 1 else 4 * in_c

    def bn_affine(conv_bias, bn):
        g, be, m, v = bn
        s = g / jnp.sqrt(v + EPS)
        return s, be + (conv_bias - m) * s

    def pack_a(w_oihw):                      # (C, in_c, 3, 3) -> (len(taps)*Kin, C)
        w = jnp.transpose(w_oihw, (2, 3, 1, 0))          # HWIO (3,3,in_c,C)
        blocks = []
        for (ty, tx) in taps:
            if stride == 1:
                blocks.append(w[ty, tx])                 # (in_c, C)
            else:
                # space-to-depth repack: channel (r,s,c) of s2d tap (ty,tx) multiplies
                # original weight tap (2*ty+r, 2*tx+s) when that tap exists, else 0.
                blk = jnp.zeros((Kin, C), w.dtype)
                for r in range(2):
                    for s_ in range(2):
                        dy, dx = 2 * ty + r, 2 * tx + s_
                        if dy < 3 and dx < 3:
                            lo = (r * 2 + s_) * in_c
                            blk = blk.at[lo:lo + in_c].set(w[dy, dx])
                blocks.append(blk)
        return jnp.concatenate(blocks, axis=0)

    wa_cols, sa_l, ba_l = [], [], []
    wb_blocks, sb_l, bb_l = [], [], []
    for i in (1, 2):
        net = params[f'net{i}']
        wa, cba = net['conv_a']                          # OIHW (C, in_c, 3, 3)
        wb, cbb = net['conv_b']                          # OIHW (C, C, 3, 3)
        sa, fba = bn_affine(cba, net['bn_a'])
        sb, fbb = bn_affine(cbb, net['bn_b'])
        wa_cols.append(pack_a(wa))
        wb_blocks.append(jnp.transpose(wb, (2, 3, 1, 0)))  # HWIO (3,3,C,C)
        sa_l.append(sa); ba_l.append(fba); sb_l.append(sb); bb_l.append(fbb)

    wa_p = jnp.concatenate(wa_cols, axis=1).astype(jnp.bfloat16)        # (T*Kin, 2C)
    sa_p = jnp.concatenate(sa_l)[None, :]
    ba_p = jnp.concatenate(ba_l)[None, :]

    wb_bd = jnp.zeros((3, 3, 2 * C, 2 * C), jnp.float32)
    wb_bd = wb_bd.at[:, :, :C, :C].set(wb_blocks[0])
    wb_bd = wb_bd.at[:, :, C:, C:].set(wb_blocks[1])
    wb_p = wb_bd.reshape(9 * 2 * C, 2 * C).astype(jnp.bfloat16)         # (9*2C, 2C)
    sb_p = jnp.concatenate(sb_l)[None, :]
    bb_p = jnp.concatenate(bb_l)[None, :]

    # ---- skip path ----
    if in_c == out_c:
        # same-width skip is the identity on the input (module only shape-valid for stride=1)
        assert stride == 1
        skip_tap_ids = (4,)                              # tap (1,1) == the un-shifted window
        ws = jnp.eye(in_c, C, dtype=jnp.float32)
        ss_p = jnp.ones((1, C), jnp.float32)
        bs_p = jnp.zeros((1, C), jnp.float32)
    else:
        w1s, b1s = params['skip_conv1']                  # (C//2, in_c, 1, 1)
        w2s, b2s = params['skip_conv2']
        w1 = jnp.transpose(w1s[:, :, 0, 0], (1, 0))      # (in_c, C//2)
        w2 = jnp.transpose(w2s[:, :, 0, 0], (1, 0))
        if stride == 1:
            skip_tap_ids = (4, 0)                        # [tap(1,1) -> s1 | tap(0,0) -> s2]
            ws = jnp.zeros((2 * in_c, C), jnp.float32)
            ws = ws.at[:in_c, :C // 2].set(w1)
            ws = ws.at[in_c:, C // 2:].set(w2)
        else:
            # s2d tap (0,0) already holds both skip inputs along its channel axis:
            #   s1[i,j] = xp[2i+1, 2j+1]  -> (r=1,s=1) channels
            #   s2[i,j] = xp[2i,   2j  ]  -> (r=0,s=0) channels
            skip_tap_ids = (0,)
            ws = jnp.zeros((Kin, C), jnp.float32)
            ws = ws.at[3 * in_c:4 * in_c, :C // 2].set(w1)
            ws = ws.at[:in_c, C // 2:].set(w2)
        g, be, m, v = params['skip_bn']
        s = g / jnp.sqrt(v + EPS)
        ss_p = s[None, :]
        bs_p = (be + (jnp.concatenate([b1s, b2s]) - m) * s)[None, :]
    ws_p = ws.astype(jnp.bfloat16)

    return (wa_p, sa_p, ba_p, wb_p, sb_p, bb_p, ws_p, ss_p, bs_p), skip_tap_ids


# ------------------------------- full forward --------------------------------

def _pick_batch_block(N, Ho, Wo, C2):
    """Smallest divisor of N that fills MXU rows (M = B*Ho*Wo >= 128), with a VMEM cap on
    the bf16 staging scratch so the tiling stays safe under v7x's 64 MiB VMEM."""
    best = 1
    for b in range(1, N + 1):
        if N % b:
            continue
        if b * (Ho + 2) * (Wo + 2) * C2 * 2 > (4 << 20):
            break
        best = b
        if b * Ho * Wo >= 128:
            break
    return best


def shake_shake_forward(inp_nchw, params, in_c, out_c, stride):
    N, Cin, H, W = inp_nchw.shape
    assert Cin == in_c and stride in (1, 2)
    assert H % stride == 0 and W % stride == 0
    Ho, Wo = H // stride, W // stride
    C2 = 2 * out_c

    x = jnp.transpose(inp_nchw, (0, 2, 3, 1))                     # NHWC
    xp = jnp.pad(x, ((0, 0), (1, 1), (1, 1), (0, 0)))             # 3x3 conv padding=1

    if stride == 1:
        xin = xp
        Hp, Wp, Kin = H + 2, W + 2, Cin
        taps = tuple((dy, dx) for dy in range(3) for dx in range(3))     # 9 taps
    else:
        # space-to-depth: (N, H+2, W+2, Cin) -> (N, Ho+1, Wo+1, 4*Cin); the strided 3x3 conv
        # becomes a unit-stride 2x2 conv over lane-denser channels.
        xin = xp.reshape(N, Ho + 1, 2, Wo + 1, 2, Cin)
        xin = xin.transpose(0, 1, 3, 2, 4, 5).reshape(N, Ho + 1, Wo + 1, 4 * Cin)
        Hp, Wp, Kin = Ho + 1, Wo + 1, 4 * Cin
        taps = ((0, 0), (0, 1), (1, 0), (1, 1))                          # 4 taps
    xin = xin.astype(jnp.bfloat16)                                # halve input DMA; MXU is bf16

    (wa, sa, ba, wb, sb, bb, ws, ss, bs), skip_tap_ids = pack_params(
        params, in_c, out_c, stride, taps)

    B = _pick_batch_block(N, Ho, Wo, C2)                          # images per grid step
    T = len(taps)
    S = len(skip_tap_ids)

    kernel = functools.partial(_fused_shake_kernel, taps=taps,
                               skip_tap_ids=skip_tap_ids, Ho=Ho, Wo=Wo)

    # rough VMEM budget: double-buffered in/out blocks + resident weights/affines + scratch;
    # capped at 32 MiB so it is safe on v7x (64 MiB physical / 32 MiB default scoped).
    vmem_est = (2 * B * Hp * Wp * Kin * 2 + 2 * B * Ho * Wo * out_c * 4
                + B * (Ho + 2) * (Wo + 2) * C2 * 2
                + (T * Kin * C2 + 9 * C2 * C2 + S * Kin * out_c) * 2
                + (4 * C2 + 2 * out_c) * 4)
    vmem_limit = int(min(max(4 * vmem_est, 8 << 20), 32 << 20))

    out_rows = pl.pallas_call(
        kernel,
        out_shape=jax.ShapeDtypeStruct((N * Ho * Wo, out_c), jnp.float32),
        grid=(N // B,),
        in_specs=[
            pl.BlockSpec((B, Hp, Wp, Kin), lambda n: (n, 0, 0, 0)),
            pl.BlockSpec((T * Kin, C2), lambda n: (0, 0)),        # constant index maps:
            pl.BlockSpec((1, C2), lambda n: (0, 0)),              # weights / affines stay
            pl.BlockSpec((1, C2), lambda n: (0, 0)),              # resident across steps
            pl.BlockSpec((9 * C2, C2), lambda n: (0, 0)),
            pl.BlockSpec((1, C2), lambda n: (0, 0)),
            pl.BlockSpec((1, C2), lambda n: (0, 0)),
            pl.BlockSpec((S * Kin, out_c), lambda n: (0, 0)),
            pl.BlockSpec((1, out_c), lambda n: (0, 0)),
            pl.BlockSpec((1, out_c), lambda n: (0, 0)),
        ],
        out_specs=pl.BlockSpec((B * Ho * Wo, out_c), lambda n: (n, 0)),
        scratch_shapes=[pltpu.VMEM((B, Ho + 2, Wo + 2, C2), jnp.bfloat16)],
        compiler_params=pltpu.CompilerParams(
            dimension_semantics=("parallel",), vmem_limit_bytes=vmem_limit),
    )(xin, wa, sa, ba, wb, sb, bb, ws, ss, bs)

    out = out_rows.reshape(N, Ho, Wo, out_c)
    return jnp.transpose(out, (0, 3, 1, 2))                       # back to NCHW


# --------------------------- params (deterministic) ---------------------------

def init_params(key, in_c, out_c):
    ks = list(jax.random.split(key, 40))

    def nk():
        return ks.pop(0)

    def conv(cin, cout, k):
        w = jax.random.normal(nk(), (cout, cin, k, k), jnp.float32) * 0.2
        b = jax.random.normal(nk(), (cout,), jnp.float32) * 0.1
        return w, b

    def bn(c):
        gamma = 1.0 + 0.1 * jax.random.normal(nk(), (c,), jnp.float32)
        beta = 0.1 * jax.random.normal(nk(), (c,), jnp.float32)
        mean = 0.1 * jax.random.normal(nk(), (c,), jnp.float32)
        var = jax.random.uniform(nk(), (c,), jnp.float32, minval=0.5, maxval=1.5)
        return (gamma, beta, mean, var)

    p = {}
    for i in (1, 2):
        p[f'net{i}'] = dict(conv_a=conv(in_c, out_c, 3), bn_a=bn(out_c),
                            conv_b=conv(out_c, out_c, 3), bn_b=bn(out_c))
    p['skip_conv1'] = conv(in_c, out_c // 2, 1)
    p['skip_conv2'] = conv(in_c, out_c // 2, 1)
    p['skip_bn'] = bn(out_c)
    return p


# ------------------------ pure-JAX reference (NCHW, f32) ----------------------

def reference_forward(inp, params, stride):
    def conv(x, wb, st, pad):
        w, b = wb
        y = lax.conv_general_dilated(
            x, w, (st, st), ((pad, pad), (pad, pad)),
            dimension_numbers=('NCHW', 'OIHW', 'NCHW'),
            precision=lax.Precision.HIGHEST)
        return y + b[None, :, None, None]

    def bn(x, prm):
        g, be, m, v = prm
        return (g[None, :, None, None] * (x - m[None, :, None, None])
                / jnp.sqrt(v[None, :, None, None] + EPS) + be[None, :, None, None])

    def branch(net):
        h = jax.nn.relu(inp)
        h = conv(h, net['conv_a'], stride, 1)
        h = bn(h, net['bn_a'])
        h = jax.nn.relu(h)
        h = conv(h, net['conv_b'], 1, 1)
        h = bn(h, net['bn_b'])
        return h

    N, C, H, W = inp.shape
    s1 = inp[:, :, ::stride, ::stride]
    s1 = conv(s1, params['skip_conv1'], 1, 0)
    s2 = jnp.pad(inp, ((0, 0), (0, 0), (1, 0), (1, 0)))[:, :, :H, :W]
    s2 = s2[:, :, ::stride, ::stride]
    s2 = conv(s2, params['skip_conv2'], 1, 0)
    skip = bn(jnp.concatenate([s1, s2], axis=1), params['skip_bn'])
    return skip + 0.5 * (branch(params['net1']) + branch(params['net2']))


# ----------------------------------- main -------------------------------------

if __name__ == "__main__":
    in_channels, out_channels, stride = 4, 8, 2
    N, H, W = 2, 16, 16

    x = jax.random.normal(jax.random.PRNGKey(0), (N, in_channels, H, W), jnp.float32)
    params = init_params(jax.random.PRNGKey(42), in_channels, out_channels)

    out = jax.block_until_ready(
        shake_shake_forward(x, params, in_channels, out_channels, stride))

    ref = jax.block_until_ready(reference_forward(x, params, stride))
    assert out.shape == (N, out_channels, H // stride, W // stride), out.shape
    # bf16 MXU inputs + bf16 staged intermediate in the kernel vs f32 HIGHEST reference.
    max_err = float(jnp.max(jnp.abs(out - ref)))
    assert jnp.allclose(out, ref, atol=1e-1, rtol=5e-2), max_err

    print("KERNEL_OK")
</pallas_src>

<mosaic_0001>
module attributes {stable_mosaic.version = 11 : i64} {
  func.func @_fused_shake_kernel(%arg0: i32, %arg1: memref<2x9x9x16xbf16, #tpu.memory_space<vmem>>, %arg2: memref<64x16xbf16, #tpu.memory_space<vmem>>, %arg3: memref<1x16xf32, #tpu.memory_space<vmem>>, %arg4: memref<1x16xf32, #tpu.memory_space<vmem>>, %arg5: memref<144x16xbf16, #tpu.memory_space<vmem>>, %arg6: memref<1x16xf32, #tpu.memory_space<vmem>>, %arg7: memref<1x16xf32, #tpu.memory_space<vmem>>, %arg8: memref<16x8xbf16, #tpu.memory_space<vmem>>, %arg9: memref<1x8xf32, #tpu.memory_space<vmem>>, %arg10: memref<1x8xf32, #tpu.memory_space<vmem>>, %arg11: memref<128x8xf32, #tpu.memory_space<vmem>>, %arg12: memref<2x10x10x16xbf16, #tpu.memory_space<vmem>>) attributes {dimension_semantics = [#tpu.dimension_semantics<parallel>], iteration_bounds = array<i64: 1>, scalar_prefetch = 0 : i64, scratch_operands = 1 : i64, tpu.core_type = #tpu.core_type<tc>, window_params = [{transform_indices = @transform_0, window_bounds = array<i64: 2, 9, 9, 16>}, {pipeline_mode = #tpu.pipeline_mode<synchronous>, transform_indices = @transform_1, window_bounds = array<i64: 64, 16>}, {pipeline_mode = #tpu.pipeline_mode<synchronous>, transform_indices = @transform_2, window_bounds = array<i64: 1, 16>}, {pipeline_mode = #tpu.pipeline_mode<synchronous>, transform_indices = @transform_3, window_bounds = array<i64: 1, 16>}, {pipeline_mode = #tpu.pipeline_mode<synchronous>, transform_indices = @transform_4, window_bounds = array<i64: 144, 16>}, {pipeline_mode = #tpu.pipeline_mode<synchronous>, transform_indices = @transform_5, window_bounds = array<i64: 1, 16>}, {pipeline_mode = #tpu.pipeline_mode<synchronous>, transform_indices = @transform_6, window_bounds = array<i64: 1, 16>}, {pipeline_mode = #tpu.pipeline_mode<synchronous>, transform_indices = @transform_7, window_bounds = array<i64: 16, 8>}, {pipeline_mode = #tpu.pipeline_mode<synchronous>, transform_indices = @transform_8, window_bounds = array<i64: 1, 8>}, {pipeline_mode = #tpu.pipeline_mode<synchronous>, transform_indices = @transform_9, window_bounds = array<i64: 1, 8>}, {transform_indices = @transform_10, window_bounds = array<i64: 128, 8>}]} {
    %c0 = arith.constant 0 : index
    %c0_0 = arith.constant 0 : index
    %c0_1 = arith.constant 0 : index
    %c0_2 = arith.constant 0 : index
    %0 = vector.load %arg1[%c0, %c0_0, %c0_1, %c0_2] : memref<2x9x9x16xbf16, #tpu.memory_space<vmem>>, vector<2x8x8x16xbf16>
    %c0_3 = arith.constant 0 : index
    %c0_4 = arith.constant 0 : index
    %c1 = arith.constant 1 : index
    %c0_5 = arith.constant 0 : index
    %1 = vector.load %arg1[%c0_3, %c0_4, %c1, %c0_5] : memref<2x9x9x16xbf16, #tpu.memory_space<vmem>>, vector<2x8x8x16xbf16>
    %c0_6 = arith.constant 0 : index
    %c1_7 = arith.constant 1 : index
    %c0_8 = arith.constant 0 : index
    %c0_9 = arith.constant 0 : index
    %2 = vector.load %arg1[%c0_6, %c1_7, %c0_8, %c0_9] : memref<2x9x9x16xbf16, #tpu.memory_space<vmem>>, vector<2x8x8x16xbf16>
    %c0_10 = arith.constant 0 : index
    %c1_11 = arith.constant 1 : index
    %c1_12 = arith.constant 1 : index
    %c0_13 = arith.constant 0 : index
    %3 = vector.load %arg1[%c0_10, %c1_11, %c1_12, %c0_13] : memref<2x9x9x16xbf16, #tpu.memory_space<vmem>>, vector<2x8x8x16xbf16>
    %cst = arith.constant 0.000000e+00 : bf16
    %4 = vector.broadcast %cst : bf16 to vector<2x8x8x16xbf16>
    %5 = arith.maximumf %0, %4 : vector<2x8x8x16xbf16>
    %cst_14 = arith.constant 0.000000e+00 : bf16
    %6 = vector.broadcast %cst_14 : bf16 to vector<2x8x8x16xbf16>
    %7 = arith.maximumf %1, %6 : vector<2x8x8x16xbf16>
    %cst_15 = arith.constant 0.000000e+00 : bf16
    %8 = vector.broadcast %cst_15 : bf16 to vector<2x8x8x16xbf16>
    %9 = arith.maximumf %2, %8 : vector<2x8x8x16xbf16>
    %cst_16 = arith.constant 0.000000e+00 : bf16
    %10 = vector.broadcast %cst_16 : bf16 to vector<2x8x8x16xbf16>
    %11 = arith.maximumf %3, %10 : vector<2x8x8x16xbf16>
    %12 = tpu.concatenate %5, %7, %9, %11 in 3 : vector<2x8x8x16xbf16>, vector<2x8x8x16xbf16>, vector<2x8x8x16xbf16>, vector<2x8x8x16xbf16> -> vector<2x8x8x64xbf16>
    %13 = vector.shape_cast %12 : vector<2x8x8x64xbf16> to vector<128x64xbf16>
    %c0_17 = arith.constant 0 : index
    %c0_18 = arith.constant 0 : index
    %14 = vector.load %arg2[%c0_17, %c0_18] : memref<64x16xbf16, #tpu.memory_space<vmem>>, vector<64x16xbf16>
    %cst_19 = arith.constant dense<0.000000e+00> : vector<128x16xf32>
    %15 = tpu.matmul %13, %14, %cst_19 {dimension_numbers = #tpu.dot_dimension_numbers<[1], [0], [0], [1], [0, 0, 1, 1], [], []>} : vector<128x64xbf16>, vector<64x16xbf16>, vector<128x16xf32> -> vector<128x16xf32>
    %c0_20 = arith.constant 0 : index
    %c0_21 = arith.constant 0 : index
    %16 = vector.load %arg3[%c0_20, %c0_21] : memref<1x16xf32, #tpu.memory_space<vmem>>, vector<1x16xf32>
    %17 = vector.broadcast %16 : vector<1x16xf32> to vector<128x16xf32>
    %18 = arith.mulf %15, %17 : vector<128x16xf32>
    %c0_22 = arith.constant 0 : index
    %c0_23 = arith.constant 0 : index
    %19 = vector.load %arg4[%c0_22, %c0_23] : memref<1x16xf32, #tpu.memory_space<vmem>>, vector<1x16xf32>
    %20 = vector.broadcast %19 : vector<1x16xf32> to vector<128x16xf32>
    %21 = arith.addf %18, %20 : vector<128x16xf32>
    %cst_24 = arith.constant 0.000000e+00 : f32
    %22 = vector.broadcast %cst_24 : f32 to vector<128x16xf32>
    %23 = arith.maximumf %21, %22 : vector<128x16xf32>
    %24 = arith.truncf %23 : vector<128x16xf32> to vector<128x16xbf16>
    %cst_25 = arith.constant 0.000000e+00 : bf16
    %25 = vector.broadcast %cst_25 : bf16 to vector<2x1x10x16xbf16>
    %c0_26 = arith.constant 0 : index
    %c0_27 = arith.constant 0 : index
    %c0_28 = arith.constant 0 : index
    %c0_29 = arith.constant 0 : index
    %26 = vector.load %arg12[%c0_26, %c0_27, %c0_28, %c0_29] : memref<2x10x10x16xbf16, #tpu.memory_space<vmem>>, vector<2x1x10x16xbf16>
    tpu.vector_store %arg12[%c0_26, %c0_27, %c0_28, %c0_29], %25 {strides = array<i32>} : memref<2x10x10x16xbf16, #tpu.memory_space<vmem>>, vector<2x1x10x16xbf16>,
    %cst_30 = arith.constant 0.000000e+00 : bf16
    %27 = vector.broadcast %cst_30 : bf16 to vector<2x1x10x16xbf16>
    %c0_31 = arith.constant 0 : index
    %c9 = arith.constant 9 : index
    %c0_32 = arith.constant 0 : index
    %c0_33 = arith.constant 0 : index
    %28 = vector.load %arg12[%c0_31, %c9, %c0_32, %c0_33] : memref<2x10x10x16xbf16, #tpu.memory_space<vmem>>, vector<2x1x10x16xbf16>
    tpu.vector_store %arg12[%c0_31, %c9, %c0_32, %c0_33], %27 {strides = array<i32>} : memref<2x10x10x16xbf16, #tpu.memory_space<vmem>>, vector<2x1x10x16xbf16>,
    %cst_34 = arith.constant 0.000000e+00 : bf16
    %29 = vector.broadcast %cst_34 : bf16 to vector<2x10x1x16xbf16>
    %c0_35 = arith.constant 0 : index
    %c0_36 = arith.constant 0 : index
    %c0_37 = arith.constant 0 : index
    %c0_38 = arith.constant 0 : index
    %30 = vector.load %arg12[%c0_35, %c0_36, %c0_37, %c0_38] : memref<2x10x10x16xbf16, #tpu.memory_space<vmem>>, vector<2x10x1x16xbf16>
    tpu.vector_store %arg12[%c0_35, %c0_36, %c0_37, %c0_38], %29 {strides = array<i32>} : memref<2x10x10x16xbf16, #tpu.memory_space<vmem>>, vector<2x10x1x16xbf16>,
    %cst_39 = arith.constant 0.000000e+00 : bf16
    %31 = vector.broadcast %cst_39 : bf16 to vector<2x10x1x16xbf16>
    %c0_40 = arith.constant 0 : index
    %c0_41 = arith.constant 0 : index
    %c9_42 = arith.constant 9 : index
    %c0_43 = arith.constant 0 : index
    %32 = vector.load %arg12[%c0_40, %c0_41, %c9_42, %c0_43] : memref<2x10x10x16xbf16, #tpu.memory_space<vmem>>, vector<2x10x1x16xbf16>
    tpu.vector_store %arg12[%c0_40, %c0_41, %c9_42, %c0_43], %31 {strides = array<i32>} : memref<2x10x10x16xbf16, #tpu.memory_space<vmem>>, vector<2x10x1x16xbf16>,
    %33 = vector.shape_cast %24 : vector<128x16xbf16> to vector<2x8x8x16xbf16>
    %c0_44 = arith.constant 0 : index
    %c1_45 = arith.constant 1 : index
    %c1_46 = arith.constant 1 : index
    %c0_47 = arith.constant 0 : index
    %34 = vector.load %arg12[%c0_44, %c1_45, %c1_46, %c0_47] : memref<2x10x10x16xbf16, #tpu.memory_space<vmem>>, vector<2x8x8x16xbf16>
    tpu.vector_store %arg12[%c0_44, %c1_45, %c1_46, %c0_47], %33 {strides = array<i32>} : memref<2x10x10x16xbf16, #tpu.memory_space<vmem>>, vector<2x8x8x16xbf16>,
    %c0_48 = arith.constant 0 : index
    %c0_49 = arith.constant 0 : index
    %c0_50 = arith.constant 0 : index
    %c0_51 = arith.constant 0 : index
    %35 = vector.load %arg12[%c0_48, %c0_49, %c0_50, %c0_51] : memref<2x10x10x16xbf16, #tpu.memory_space<vmem>>, vector<2x8x8x16xbf16>
    %c0_52 = arith.constant 0 : index
    %c0_53 = arith.constant 0 : index
    %c1_54 = arith.constant 1 : index
    %c0_55 = arith.constant 0 : index
    %36 = vector.load %arg12[%c0_52, %c0_53, %c1_54, %c0_55] : memref<2x10x10x16xbf16, #tpu.memory_space<vmem>>, vector<2x8x8x16xbf16>
    %c0_56 = arith.constant 0 : index
    %c0_57 = arith.constant 0 : index
    %c2 = arith.constant 2 : index
    %c0_58 = arith.constant 0 : index
    %37 = vector.load %arg12[%c0_56, %c0_57, %c2, %c0_58] : memref<2x10x10x16xbf16, #tpu.memory_space<vmem>>, vector<2x8x8x16xbf16>
    %c0_59 = arith.constant 0 : index
    %c1_60 = arith.constant 1 : index
    %c0_61 = arith.constant 0 : index
    %c0_62 = arith.constant 0 : index
    %38 = vector.load %arg12[%c0_59, %c1_60, %c0_61, %c0_62] : memref<2x10x10x16xbf16, #tpu.memory_space<vmem>>, vector<2x8x8x16xbf16>
    %c0_63 = arith.constant 0 : index
    %c1_64 = arith.constant 1 : index
    %c1_65 = arith.constant 1 : index
    %c0_66 = arith.constant 0 : index
    %39 = vector.load %arg12[%c0_63, %c1_64, %c1_65, %c0_66] : memref<2x10x10x16xbf16, #tpu.memory_space<vmem>>, vector<2x8x8x16xbf16>
    %c0_67 = arith.constant 0 : index
    %c1_68 = arith.constant 1 : index
    %c2_69 = arith.constant 2 : index
    %c0_70 = arith.constant 0 : index
    %40 = vector.load %arg12[%c0_67, %c1_68, %c2_69, %c0_70] : memref<2x10x10x16xbf16, #tpu.memory_space<vmem>>, vector<2x8x8x16xbf16>
    %c0_71 = arith.constant 0 : index
    %c2_72 = arith.constant 2 : index
    %c0_73 = arith.constant 0 : index
    %c0_74 = arith.constant 0 : index
    %41 = vector.load %arg12[%c0_71, %c2_72, %c0_73, %c0_74] : memref<2x10x10x16xbf16, #tpu.memory_space<vmem>>, vector<2x8x8x16xbf16>
    %c0_75 = arith.constant 0 : index
    %c2_76 = arith.constant 2 : index
    %c1_77 = arith.constant 1 : index
    %c0_78 = arith.constant 0 : index
    %42 = vector.load %arg12[%c0_75, %c2_76, %c1_77, %c0_78] : memref<2x10x10x16xbf16, #tpu.memory_space<vmem>>, vector<2x8x8x16xbf16>
    %c0_79 = arith.constant 0 : index
    %c2_80 = arith.constant 2 : index
    %c2_81 = arith.constant 2 : index
    %c0_82 = arith.constant 0 : index
    %43 = vector.load %arg12[%c0_79, %c2_80, %c2_81, %c0_82] : memref<2x10x10x16xbf16, #tpu.memory_space<vmem>>, vector<2x8x8x16xbf16>
    %44 = tpu.concatenate %35, %36, %37, %38, %39, %40, %41, %42, %43 in 3 : vector<2x8x8x16xbf16>, vector<2x8x8x16xbf16>, vector<2x8x8x16xbf16>, vector<2x8x8x16xbf16>, vector<2x8x8x16xbf16>, vector<2x8x8x16xbf16>, vector<2x8x8x16xbf16>, vector<2x8x8x16xbf16>, vector<2x8x8x16xbf16> -> vector<2x8x8x144xbf16>
    %45 = vector.shape_cast %44 : vector<2x8x8x144xbf16> to vector<128x144xbf16>
    %c0_83 = arith.constant 0 : index
    %c0_84 = arith.constant 0 : index
    %46 = vector.load %arg5[%c0_83, %c0_84] : memref<144x16xbf16, #tpu.memory_space<vmem>>, vector<144x16xbf16>
    %cst_85 = arith.constant dense<0.000000e+00> : vector<128x16xf32>
    %47 = tpu.matmul %45, %46, %cst_85 {dimension_numbers = #tpu.dot_dimension_numbers<[1], [0], [0], [1], [0, 0, 1, 1], [], []>} : vector<128x144xbf16>, vector<144x16xbf16>, vector<128x16xf32> -> vector<128x16xf32>
    %c0_86 = arith.constant 0 : index
    %c0_87 = arith.constant 0 : index
    %48 = vector.load %arg6[%c0_86, %c0_87] : memref<1x16xf32, #tpu.memory_space<vmem>>, vector<1x16xf32>
    %49 = vector.broadcast %48 : vector<1x16xf32> to vector<128x16xf32>
    %50 = arith.mulf %47, %49 : vector<128x16xf32>
    %c0_88 = arith.constant 0 : index
    %c0_89 = arith.constant 0 : index
    %51 = vector.load %arg7[%c0_88, %c0_89] : memref<1x16xf32, #tpu.memory_space<vmem>>, vector<1x16xf32>
    %52 = vector.broadcast %51 : vector<1x16xf32> to vector<128x16xf32>
    %53 = arith.addf %50, %52 : vector<128x16xf32>
    %54 = vector.extract_strided_slice %53 {offsets = [0, 0], sizes = [128, 8], strides = [1, 1]} : vector<128x16xf32> to vector<128x8xf32>
    %55 = vector.extract_strided_slice %53 {offsets = [0, 8], sizes = [128, 8], strides = [1, 1]} : vector<128x16xf32> to vector<128x8xf32>
    %56 = arith.addf %54, %55 : vector<128x8xf32>
    %57 = vector.shape_cast %0 : vector<2x8x8x16xbf16> to vector<128x16xbf16>
    %c0_90 = arith.constant 0 : index
    %c0_91 = arith.constant 0 : index
    %58 = vector.load %arg8[%c0_90, %c0_91] : memref<16x8xbf16, #tpu.memory_space<vmem>>, vector<16x8xbf16>
    %cst_92 = arith.constant dense<0.000000e+00> : vector<128x8xf32>
    %59 = tpu.matmul %57, %58, %cst_92 {dimension_numbers = #tpu.dot_dimension_numbers<[1], [0], [0], [1], [0, 0, 1, 1], [], []>} : vector<128x16xbf16>, vector<16x8xbf16>, vector<128x8xf32> -> vector<128x8xf32>
    %c0_93 = arith.constant 0 : index
    %c0_94 = arith.constant 0 : index
    %60 = vector.load %arg9[%c0_93, %c0_94] : memref<1x8xf32, #tpu.memory_space<vmem>>, vector<1x8xf32>
    %61 = vector.broadcast %60 : vector<1x8xf32> to vector<128x8xf32>
    %62 = arith.mulf %59, %61 : vector<128x8xf32>
    %c0_95 = arith.constant 0 : index
    %c0_96 = arith.constant 0 : index
    %63 = vector.load %arg10[%c0_95, %c0_96] : memref<1x8xf32, #tpu.memory_space<vmem>>, vector<1x8xf32>
    %64 = vector.broadcast %63 : vector<1x8xf32> to vector<128x8xf32>
    %65 = arith.addf %62, %64 : vector<128x8xf32>
    %cst_97 = arith.constant 5.000000e-01 : f32
    %66 = vector.broadcast %cst_97 : f32 to vector<128x8xf32>
    %67 = arith.mulf %66, %56 : vector<128x8xf32>
    %68 = arith.addf %65, %67 : vector<128x8xf32>
    %c0_98 = arith.constant 0 : index
    %c0_99 = arith.constant 0 : index
    %69 = vector.load %arg11[%c0_98, %c0_99] : memref<128x8xf32, #tpu.memory_space<vmem>>, vector<128x8xf32>
    tpu.vector_store %arg11[%c0_98, %c0_99], %68 {strides = array<i32>} : memref<128x8xf32, #tpu.memory_space<vmem>>, vector<128x8xf32>,
    return
  }
  func.func @transform_0(%arg0: i32) -> (i32, i32, i32, i32) {
    %c0_i32 = arith.constant 0 : i32
    %c0_i32_0 = arith.constant 0 : i32
    %c0_i32_1 = arith.constant 0 : i32
    %c0_i32_2 = arith.constant 0 : i32
    return %arg0, %c0_i32, %c0_i32_0, %c0_i32_1 : i32, i32, i32, i32
  }
  func.func @transform_1(%arg0: i32) -> (i32, i32) {
    %c0_i32 = arith.constant 0 : i32
    %c0_i32_0 = arith.constant 0 : i32
    %c0_i32_1 = arith.constant 0 : i32
    return %c0_i32, %c0_i32_0 : i32, i32
  }
  func.func @transform_2(%arg0: i32) -> (i32, i32) {
    %c0_i32 = arith.constant 0 : i32
    %c0_i32_0 = arith.constant 0 : i32
    %c0_i32_1 = arith.constant 0 : i32
    return %c0_i32, %c0_i32_0 : i32, i32
  }
  func.func @transform_3(%arg0: i32) -> (i32, i32) {
    %c0_i32 = arith.constant 0 : i32
    %c0_i32_0 = arith.constant 0 : i32
    %c0_i32_1 = arith.constant 0 : i32
    return %c0_i32, %c0_i32_0 : i32, i32
  }
  func.func @transform_4(%arg0: i32) -> (i32, i32) {
    %c0_i32 = arith.constant 0 : i32
    %c0_i32_0 = arith.constant 0 : i32
    %c0_i32_1 = arith.constant 0 : i32
    return %c0_i32, %c0_i32_0 : i32, i32
  }
  func.func @transform_5(%arg0: i32) -> (i32, i32) {
    %c0_i32 = arith.constant 0 : i32
    %c0_i32_0 = arith.constant 0 : i32
    %c0_i32_1 = arith.constant 0 : i32
    return %c0_i32, %c0_i32_0 : i32, i32
  }
  func.func @transform_6(%arg0: i32) -> (i32, i32) {
    %c0_i32 = arith.constant 0 : i32
    %c0_i32_0 = arith.constant 0 : i32
    %c0_i32_1 = arith.constant 0 : i32
    return %c0_i32, %c0_i32_0 : i32, i32
  }
  func.func @transform_7(%arg0: i32) -> (i32, i32) {
    %c0_i32 = arith.constant 0 : i32
    %c0_i32_0 = arith.constant 0 : i32
    %c0_i32_1 = arith.constant 0 : i32
    return %c0_i32, %c0_i32_0 : i32, i32
  }
  func.func @transform_8(%arg0: i32) -> (i32, i32) {
    %c0_i32 = arith.constant 0 : i32
    %c0_i32_0 = arith.constant 0 : i32
    %c0_i32_1 = arith.constant 0 : i32
    return %c0_i32, %c0_i32_0 : i32, i32
  }
  func.func @transform_9(%arg0: i32) -> (i32, i32) {
    %c0_i32 = arith.constant 0 : i32
    %c0_i32_0 = arith.constant 0 : i32
    %c0_i32_1 = arith.constant 0 : i32
    return %c0_i32, %c0_i32_0 : i32, i32
  }
  func.func @transform_10(%arg0: i32) -> (i32, i32) {
    %c0_i32 = arith.constant 0 : i32
    %c0_i32_0 = arith.constant 0 : i32
    return %arg0, %c0_i32 : i32, i32
  }
}

</mosaic_0001>

<bundles_post_ra>
// kernel: tpu_custom_call.1
= control target key start
LH: loop header
LB: loop body
LE: loop exit
PB: predicated region body
PF: predicated region fallthrough
CT: control target
= control target key end

     0   :  { %v4119_v3 = vmov 0   ;;  %s4120_s23 = smov 32   ;;  %s4121_s22 = smov 16   ;;  %vm661_vm0 = vcmask 130048   ;;  %vm710_vm1 = vcmask 261120   ;;  %vm743_vm2 = vcmask 392192   ;;  %s5946_s0 = inlined_call_operand.vmem [shape: bf16[2,9,9,16], index: 0, kind: input, shape index: {}]   ;;  %s5947_s1 = inlined_call_operand.vmem [shape: bf16[64,16], index: 1, kind: input, shape index: {}]   ;;  %s5948_s2 = inlined_call_operand.vmem [shape: f32[1,16], index: 2, kind: input, shape index: {}]   ;;  %s5949_s3 = inlined_call_operand.vmem [shape: f32[1,16], index: 3, kind: input, shape index: {}]   ;;  %s5950_s4 = inlined_call_operand.vmem [shape: bf16[144,16], index: 4, kind: input, shape index: {}]   ;;  %s5951_s7 = inlined_call_operand.vmem [shape: bf16[16,8], index: 7, kind: input, shape index: {}]   ;;  %s5952_s5 = inlined_call_operand.vmem [shape: f32[1,16], index: 5, kind: input, shape index: {}]   ;;  %s5953_s6 = inlined_call_operand.vmem [shape: f32[1,16], index: 6, kind: input, shape index: {}]   ;;  %s5954_s8 = inlined_call_operand.vmem [shape: f32[1,8], index: 8, kind: input, shape index: {}]   ;;  %s5955_s9 = inlined_call_operand.vmem [shape: f32[1,8], index: 9, kind: input, shape index: {}]   ;;  %s5956_s10 = inlined_call_operand.vmem [shape: f32[128,8], index: 10, kind: output, shape index: {}]  }
   0x1   :  { %v3547_v0 = vld [vmem:[%s5946_s0 + $0x10] sm:$0xf]  ;;  %v3563_v1 = vld [vmem:[%s5946_s0 + $0x14] sm:$0x1]  ;;  %v3546_v2 = vld [vmem:[%s5946_s0 + $0x8] sm:$0xf]  ;;  %3925 = vmatprep.subr.bf16.mxu1 %v4119_v3 }
   0x2   :  { %v134_v4 = vmax.bf16 %v4119_v3, %v3547_v0  ;;  %v150_v5 = vmax.bf16 %v4119_v3, %v3563_v1  ;;  %v3562_v6 = vld [vmem:[%s5946_s0 + $0xc] sm:$0x1]  ;;  %v133_v7 = vmax.bf16 %v4119_v3, %v3546_v2  ;;  %v3549_v8 = vld [vmem:[%s5946_s0 + $0x20] sm:$0xf]  ;;  %v3548_v9 = vld [vmem:[%s5946_s0 + $0x18] sm:$0xf] }
   0x3   :  { %v149_v10 = vmax.bf16 %v4119_v3, %v3562_v6  ;;  %v4207_v11 = vmax.bf16 %v4119_v3, %v3549_v8  ;;  %v4210_v12 = vmax.bf16 %v4119_v3, %v3548_v9  ;;  %v38_v13 = vld [vmem:[%s5946_s0 + $0x10] sm:$0xf]  ;;  %v54_v14 = vld [vmem:[%s5946_s0 + $0x14] sm:$0x1]  ;;  %v36_v15 = vld [vmem:[%s5946_s0] sm:$0xf] }
   0x4   :  { %v3595_v16 = vcombine.low %v134_v4, %v134_v4  ;;  %v4221_v17 = vcombine.low %v134_v4, %v150_v5  ;;  %v3594_v18 = vcombine.low %v133_v7, %v133_v7  ;;  %v4224_v19 = vmax.bf16 %v4119_v3, %v38_v13  ;;  %v52_v20 = vld [vmem:[%s5946_s0 + $0x4] sm:$0x1]  ;;  %v39_v21 = vld [vmem:[%s5946_s0 + $0x18] sm:$0xf]  ;;  %v55_v22 = vld [vmem:[%s5946_s0 + $0x1c] sm:$0x1] }
   0x5   :  { %v4235_v23 = vcombine.low %v133_v7, %v149_v10  ;;  %v3597_v24 = vcombine.low %v4207_v11, %v4207_v11  ;;  %v3596_v25 = vcombine.low %v4210_v12, %v4210_v12  ;;  %v119_v26 = vmax.bf16 %v4119_v3, %v54_v14  ;;  %v37_v27 = vld [vmem:[%s5946_s0 + $0x8] sm:$0xf]  ;;  %v53_v28 = vld [vmem:[%s5946_s0 + $0xc] sm:$0x1]  ;;  %v3952_v29 = vld [vmem:[%s5947_s1 + $0x18] sm:$0xff]   ;;  %s4123_s20 = smov 96  }
   0x6   :  { %439 = vrot.lane.b32.xlu1 %v3595_v16, %s4120_s23  ;;  %437 = vrot.lane.b32.xlu0 %v3594_v18, %s4120_s23  ;;  %v4254_v30 = vmax.bf16 %v4119_v3, %v36_v15  ;;  %v117_v31 = vmax.bf16 %v4119_v3, %v52_v20  ;;  %v4258_v32 = vmax.bf16 %v4119_v3, %v39_v21  ;;  %v527_v38 = vshll.u32 %v4221_v17, 16  ;;  %v3953_v40 = vld [vmem:[%s5947_s1 + $0x10] sm:$0xff]   ;;  %v3565_v45 = vld [vmem:[%s5946_s0 + $0x24] sm:$0x1]  ;;  %s4124_s21 = smov 112   ;;  %s4127_s13 = smov 120  }
   0x7   :  { %v3580_v33 = vcombine.low %v4224_v19, %v119_v26  ;;  %v120_v34 = vmax.bf16 %v4119_v3, %v55_v22  ;;  %v4263_v35 = vmax.bf16 %v4119_v3, %v37_v27  ;;  %v118_v36 = vmax.bf16 %v4119_v3, %v53_v28  ;;  %3883 = vmatprep.subr.bf16.mxu0 %v3952_v29  ;;  %v3564_v46 = vld [vmem:[%s5946_s0 + $0x1c] sm:$0x1]  ;;  %v41_v51 = vld [vmem:[%s5946_s0 + $0x28] sm:$0xf]  ;;  %v57_v56 = vld [vmem:[%s5946_s0 + $0x2c] sm:$0x1] }
   0x8   :  { %v3578_v37 = vcombine.low %v4254_v30, %v117_v31  ;;  %v520_v39 = vshll.u32 %v4235_v23, 16  ;;  %3884 = vmatpush3.bf16.msra.mxu0 %v3952_v29  ;;  %v525_v49 = vshrl.u32 %v4221_v17, 16  ;;  %v518_v50 = vshrl.u32 %v4235_v23, 16  ;;  %v40_v61 = vld [vmem:[%s5946_s0 + $0x20] sm:$0xf]  ;;  %v3954_v5 = vld [vmem:[%s5947_s1 + $0x8] sm:$0xff]  }
   0x9   :  { %v260_v41 = vshrl.u32 %v3580_v33, 16  ;;  %v262_v42 = vshll.u32 %v3580_v33, 16  ;;  %v3581_v43 = vcombine.low %v4258_v32, %v120_v34  ;;  %v3579_v44 = vcombine.low %v4263_v35, %v118_v36  ;;  %3885 = vmatprep.subr.bf16.mxu0 %v3953_v40  ;;  %v56_v2 = vld [vmem:[%s5946_s0 + $0x24] sm:$0x1]  ;;  %v43_v4 = vld [vmem:[%s5946_s0 + $0x38] sm:$0xf] }
   0xa   :  { %443 = vrot.lane.b32.xlu1 %v3597_v24, %s4120_s23  ;;  %441 = vrot.lane.b32.xlu0 %v3596_v25, %s4120_s23  ;;  %v246_v47 = vshrl.u32 %v3578_v37, 16  ;;  %v248_v48 = vshll.u32 %v3578_v37, 16  ;;  %v529_v55 = vrot.slane %v527_v38, 1  ;;  %v522_v60 = vrot.slane %v520_v39, 1  ;;  %v59_v16 = vld [vmem:[%s5946_s0 + $0x3c] sm:$0x1] }
   0xb   :  { %v264_v52 = vrot.slane %v262_v42, 1  ;;  %v267_v53 = vshrl.u32 %v3581_v43, 16  ;;  %v269_v54 = vshll.u32 %v3581_v43, 16  ;;  %v253_v58 = vshrl.u32 %v3579_v44, 16  ;;  %v3955_v17 = vld [vmem:[%s5947_s1] sm:$0xff]   ;;  %s4122_s1 = smov 48  }
   0xc   :  { %v250_v57 = vrot.slane %v248_v48, 1  ;;  %v255_v59 = vshll.u32 %v3579_v44, 16  ;;  %3886 = vmatpush3.bf16.msra.mxu0 %v3953_v40  ;;  %v152_v0 = vmax.bf16 %v4119_v3, %v3565_v45  ;;  %v151_v1 = vmax.bf16 %v4119_v3, %v3564_v46  ;;  %v42_v21 = vld [vmem:[%s5946_s0 + $0x30] sm:$0xf]  ;;  %v58_v22 = vld [vmem:[%s5946_s0 + $0x34] sm:$0x1] }
   0xd   :  { %v265_v62 = vor.u32 %v264_v52, %v260_v41  ;;  %v271_v63 = vrot.slane %v269_v54, 1  ;;  %v4305_v8 = vmax.bf16 %v4119_v3, %v41_v51  ;;  %v122_v9 = vmax.bf16 %v4119_v3, %v57_v56  ;;  %3887 = vmatprep.subr.bf16.mxu0 %v3954_v5  ;;  %v3567_v46 = vld [vmem:[%s5946_s0 + $0x34] sm:$0x1]  ;;  %v3566_v51 = vld [vmem:[%s5946_s0 + $0x2c] sm:$0x1] }
   0xe   :  { %v251_v6 = vor.u32 %v250_v57, %v246_v47  ;;  %v257_v7 = vrot.slane %v255_v59, 1  ;;  %v3613_v13 = vcombine.low %v4207_v11, %v152_v0  ;;  %v3612_v14 = vcombine.low %v4210_v12, %v151_v1  ;;  %v3550_v54 = vld [vmem:[%s5946_s0 + $0x28] sm:$0xf]  ;;  %v3569_v59 = vld [vmem:[%s5946_s0 + $0x44] sm:$0x1] }
   0xf   :  { %361 = vrot.lane.b32.xlu1 %v265_v62, %s4121_s22  ;;  %v272_v10 = vor.u32 %v271_v63, %v267_v53  ;;  %v4312_v15 = vmax.bf16 %v4119_v3, %v40_v61  ;;  %v3583_v20 = vcombine.low %v4305_v8, %v122_v9  ;;  %v121_v11 = vmax.bf16 %v4119_v3, %v56_v2  ;;  %v3551_v53 = vld [vmem:[%s5946_s0 + $0x30] sm:$0xf]  ;;  %v3553_v1 = vld [vmem:[%s5946_s0 + $0x40] sm:$0xf]  ;;  %v3568_v2 = vld [vmem:[%s5946_s0 + $0x3c] sm:$0x1] }
  0x10   :  { %357 = vrot.lane.b32.xlu0 %v251_v6, %s4121_s22  ;;  %v258_v18 = vor.u32 %v257_v7, %v253_v58  ;;  %v4324_v12 = vmax.bf16 %v4119_v3, %v43_v4  ;;  %v530_v23 = vor.u32 %v529_v55, %v525_v49  ;;  %v541_v24 = vshll.u32 %v3613_v13, 16  ;;  %3888 = vmatpush3.bf16.msra.mxu0 %v3954_v5  ;;  %v3552_v4 = vld [vmem:[%s5946_s0 + $0x38] sm:$0xf]  ;;  %v45_v6 = vld [vmem:[%s5946_s0 + $0x50] sm:$0xf] }
  0x11   :  { %v534_v25 = vshll.u32 %v3612_v14, 16  ;;  %v523_v26 = vor.u32 %v522_v60, %v518_v50  ;;  %v283_v27 = vshll.u32 %v3583_v20, 16  ;;  %v3582_v28 = vcombine.low %v4312_v15, %v121_v11  ;;  %3889 = vmatprep.subr.bf16.mxu0 %v3955_v17  ;;  %v60_v11 = vld [vmem:[%s5946_s0 + $0x4c] sm:$0x1] }
  0x12   :  { %v124_v29 = vmax.bf16 %v4119_v3, %v59_v16  ;;  %v539_v31 = vshrl.u32 %v3613_v13, 16  ;;  %v543_v33 = vrot.slane %v541_v24, 1  ;;  %v4336_v34 = vmax.bf16 %v4119_v3, %v42_v21  ;;  %v61_v13 = vld [vmem:[%s5946_s0 + $0x54] sm:$0x1] }
  0x13   :  { %363 = vrot.lane.b32.xlu1 %v272_v10, %s4121_s22  ;;  %v123_v36 = vmax.bf16 %v4119_v3, %v58_v22  ;;  %v532_v37 = vshrl.u32 %v3612_v14, 16  ;;  %v536_v38 = vrot.slane %v534_v25, 1  ;;  %v276_v39 = vshll.u32 %v3582_v28, 16 }
  0x14   :  { %359 = vrot.lane.b32.xlu0 %v258_v18, %s4121_s22  ;;  %v3585_v40 = vcombine.low %v4324_v12, %v124_v29  ;;  %v281_v42 = vshrl.u32 %v3583_v20, 16  ;;  %v285_v43 = vrot.slane %v283_v27, 1  ;;  %3890 = vmatpush3.bf16.msra.mxu0 %v3955_v17  ;;  %v544_v44 = vor.u32 %v543_v33, %v539_v31  ;;  %v44_v18 = vld [vmem:[%s5946_s0 + $0x48] sm:$0xf]  ;;  %v47_v33 = vld [vmem:[%s5946_s0 + $0x60] sm:$0xf] }
  0x15   :  { %v3584_v41 = vcombine.low %v4336_v34, %v123_v36  ;;  %3055 = vmatprep.subr.bf16.mxu0 %v4119_v3  ;;  %v537_v47 = vor.u32 %v536_v38, %v532_v37  ;;  %v274_v48 = vshrl.u32 %v3582_v28, 16  ;;  %v278_v49 = vrot.slane %v276_v39, 1  ;;  %v63_v36 = vld [vmem:[%s5946_s0 + $0x64] sm:$0x1]  ;;  %v46_v39 = vld [vmem:[%s5946_s0 + $0x58] sm:$0xf] }
  0x16   :  { %v297_v45 = vshll.u32 %v3585_v40, 16  ;;  %v286_v52 = vor.u32 %v285_v43, %v281_v42  ;;  %v295_v55 = vshrl.u32 %v3585_v40, 16  ;;  %v154_v57 = vmax.bf16 %v4119_v3, %v3567_v46  ;;  %v62_v40 = vld [vmem:[%s5946_s0 + $0x5c] sm:$0x1] }
  0x17   :  { %631 = vrot.lane.b32.xlu1 %v530_v23, %s4122_s1  ;;  %v290_v50 = vshll.u32 %v3584_v41, 16  ;;  %v153_v58 = vmax.bf16 %v4119_v3, %v3566_v51  ;;  %v279_v60 = vor.u32 %v278_v49, %v274_v48  ;;  %v288_v61 = vshrl.u32 %v3584_v41, 16 }
  0x18   :  { %629 = vrot.lane.b32.xlu0 %v523_v26, %s4122_s1  ;;  %v299_v56 = vrot.slane %v297_v45, 1  ;;  %v138_v63 = vmax.bf16 %v4119_v3, %v3551_v53  ;;  %v137_v0 = vmax.bf16 %v4119_v3, %v3550_v54  ;;  %v156_v5 = vmax.bf16 %v4119_v3, %v3569_v59 }
  0x19   :  { %v292_v62 = vrot.slane %v290_v50, 1  ;;  %v140_v16 = vmax.bf16 %v4119_v3, %v3553_v1  ;;  %v155_v17 = vmax.bf16 %v4119_v3, %v3568_v2  ;;  %v139_v20 = vmax.bf16 %v4119_v3, %v3552_v4 }
  0x1a   :  { %v300_v7 = vor.u32 %v299_v56, %v295_v55  ;;  %v3615_v9 = vcombine.low %v138_v63, %v154_v57  ;;  %v3614_v10 = vcombine.low %v137_v0, %v153_v58  ;;  %v4394_v22 = vmax.bf16 %v4119_v3, %v45_v6 }
  0x1b   :  { %635 = vrot.lane.b32.xlu1 %v544_v44, %s4122_s1  ;;  %v293_v14 = vor.u32 %v292_v62, %v288_v61  ;;  %v3617_v21 = vcombine.low %v140_v16, %v156_v5  ;;  %v126_v23 = vmax.bf16 %v4119_v3, %v61_v13  ;;  %v3599_v24 = vcombine.low %v138_v63, %v138_v63  ;;  %v3555_v13 = vld [vmem:[%s5946_s0 + $0x58] sm:$0xf] }
  0x1c   :  { %633 = vrot.lane.b32.xlu0 %v537_v47, %s4122_s1  ;;  %v555_v25 = vshll.u32 %v3615_v9, 16  ;;  %v548_v26 = vshll.u32 %v3614_v10, 16  ;;  %v3598_v27 = vcombine.low %v137_v0, %v137_v0  ;;  %v3616_v28 = vcombine.low %v139_v20, %v155_v17 }
  0x1d   :  { %v4400_v29 = vmax.bf16 %v4119_v3, %v44_v18  ;;  %v125_v31 = vmax.bf16 %v4119_v3, %v60_v11  ;;  %v3601_v37 = vcombine.low %v140_v16, %v140_v16  ;;  %v3600_v38 = vcombine.low %v139_v20, %v139_v20  ;;  %v3573_v11 = vld [vmem:[%s5946_s0 + $0x6c] sm:$0x1] }
  0x1e   :  { %v553_v41 = vshrl.u32 %v3615_v9, 16  ;;  %v546_v42 = vshrl.u32 %v3614_v10, 16  ;;  %v569_v43 = vshll.u32 %v3617_v21, 16  ;;  %v3587_v44 = vcombine.low %v4394_v22, %v126_v23  ;;  %v3571_v9 = vld [vmem:[%s5946_s0 + $0x5c] sm:$0x1] }
  0x1f   :  { %367 = vrot.lane.b32.xlu1 %v286_v52, %s4121_s22  ;;  %v557_v45 = vrot.slane %v555_v25, 1  ;;  %v550_v46 = vrot.slane %v548_v26, 1  ;;  %v4418_v47 = vmax.bf16 %v4119_v3, %v47_v33  ;;  %v128_v48 = vmax.bf16 %v4119_v3, %v63_v36  ;;  %v3570_v10 = vld [vmem:[%s5946_s0 + $0x54] sm:$0x1] }
  0x20   :  { %365 = vrot.lane.b32.xlu0 %v279_v60, %s4121_s22  ;;  %v562_v49 = vshll.u32 %v3616_v28, 16  ;;  %v3586_v50 = vcombine.low %v4400_v29, %v125_v31  ;;  %v4424_v51 = vmax.bf16 %v4119_v3, %v46_v39  ;;  %v127_v52 = vmax.bf16 %v4119_v3, %v62_v40  ;;  %v3556_v31 = vld [vmem:[%s5946_s0 + $0x60] sm:$0xf] }
  0x21   :  { %v567_v53 = vshrl.u32 %v3617_v21, 16  ;;  %v571_v54 = vrot.slane %v569_v43, 1  ;;  %v558_v55 = vor.u32 %v557_v45, %v553_v41  ;;  %v560_v56 = vshrl.u32 %v3616_v28, 16  ;;  %v3572_v21 = vld [vmem:[%s5946_s0 + $0x64] sm:$0x1] }
  0x22   :  { %v311_v57 = vshll.u32 %v3587_v44, 16  ;;  %v3589_v58 = vcombine.low %v4418_v47, %v128_v48  ;;  %v551_v59 = vor.u32 %v550_v46, %v546_v42  ;;  %v564_v60 = vrot.slane %v562_v49, 1  ;;  %v3557_v28 = vld [vmem:[%s5946_s0 + $0x68] sm:$0xf]  ;;  %v65_v45 = vld [vmem:[%s5946_s0 + $0x74] sm:$0x1] }
  0x23   :  { %371 = vrot.lane.b32.xlu1 %v300_v7, %s4121_s22  ;;  %v304_v61 = vshll.u32 %v3586_v50, 16  ;;  %v3588_v62 = vcombine.low %v4424_v51, %v127_v52  ;;  %v572_v63 = vor.u32 %v571_v54, %v567_v53  ;;  %v309_v0 = vshrl.u32 %v3587_v44, 16  ;;  %v49_v44 = vld [vmem:[%s5946_s0 + $0x70] sm:$0xf]  ;;  %v48_v46 = vld [vmem:[%s5946_s0 + $0x68] sm:$0xf] }
  0x24   :  { %369 = vrot.lane.b32.xlu0 %v293_v14, %s4121_s22  ;;  %v313_v1 = vrot.slane %v311_v57, 1  ;;  %v325_v2 = vshll.u32 %v3589_v58, 16  ;;  %v565_v4 = vor.u32 %v564_v60, %v560_v56  ;;  %v302_v5 = vshrl.u32 %v3586_v50, 16  ;;  %v3554_v14 = vld [vmem:[%s5946_s0 + $0x50] sm:$0xf] }
  0x25   :  { %v306_v6 = vrot.slane %v304_v61, 1  ;;  %v318_v7 = vshll.u32 %v3588_v62, 16  ;;  %v323_v17 = vshrl.u32 %v3589_v58, 16  ;;  %v158_v20 = vmax.bf16 %v4119_v3, %v3571_v9  ;;  %v64_v48 = vld [vmem:[%s5946_s0 + $0x6c] sm:$0x1] }
  0x26   :  { %v314_v16 = vor.u32 %v313_v1, %v309_v0  ;;  %v327_v18 = vrot.slane %v325_v2, 1  ;;  %v157_v26 = vmax.bf16 %v4119_v3, %v3570_v10  ;;  %v141_v33 = vmax.bf16 %v4119_v3, %v3554_v14  ;;  %v51_v60 = vld [vmem:[%s5946_s0 + $0x80] sm:$0xf]  ;;  %v67_v61 = vld [vmem:[%s5946_s0 + $0x84] sm:$0x1] }
  0x27   :  { %447 = vrot.lane.b32.xlu1 %v3599_v24, %s4120_s23  ;;  %v307_v23 = vor.u32 %v306_v6, %v302_v5  ;;  %v316_v24 = vshrl.u32 %v3588_v62, 16  ;;  %v320_v25 = vrot.slane %v318_v7, 1  ;;  %v160_v36 = vmax.bf16 %v4119_v3, %v3573_v11  ;;  %v50_v0 = vld [vmem:[%s5946_s0 + $0x78] sm:$0xf]  ;;  %v66_v1 = vld [vmem:[%s5946_s0 + $0x7c] sm:$0x1] }
  0x28   :  { %445 = vrot.lane.b32.xlu0 %v3598_v27, %s4120_s23  ;;  %v142_v27 = vmax.bf16 %v4119_v3, %v3555_v13  ;;  %v144_v41 = vmax.bf16 %v4119_v3, %v3557_v28  ;;  %v143_v42 = vmax.bf16 %v4119_v3, %v3556_v31  ;;  %v3618_v43 = vcombine.low %v141_v33, %v157_v26 }
  0x29   :  { %v321_v40 = vor.u32 %v320_v25, %v316_v24  ;;  %v4483_v54 = vmax.bf16 %v4119_v3, %v49_v44  ;;  %v3602_v56 = vcombine.low %v141_v33, %v141_v33  ;;  %v4488_v58 = vmax.bf16 %v4119_v3, %v48_v46  ;;  %v3574_v44 = vld [vmem:[%s5946_s0 + $0x74] sm:$0x1] }
  0x2a   :  { %v3619_v39 = vcombine.low %v142_v27, %v158_v20  ;;  %v3621_v49 = vcombine.low %v144_v41, %v160_v36  ;;  %v3603_v52 = vcombine.low %v142_v27, %v142_v27  ;;  %v576_v57 = vshll.u32 %v3618_v43, 16 }
  0x2b   :  { %451 = vrot.lane.b32.xlu1 %v3601_v37, %s4120_s23  ;;  %v159_v37 = vmax.bf16 %v4119_v3, %v3572_v21  ;;  %v3605_v62 = vcombine.low %v144_v41, %v144_v41  ;;  %v4506_v10 = vmax.bf16 %v4119_v3, %v51_v60  ;;  %v132_v13 = vmax.bf16 %v4119_v3, %v67_v61  ;;  %v3576_v61 = vld [vmem:[%s5946_s0 + $0x84] sm:$0x1] }
  0x2c   :  { %449 = vrot.lane.b32.xlu0 %v3600_v38, %s4120_s23  ;;  %v328_v38 = vor.u32 %v327_v18, %v323_v17  ;;  %v583_v53 = vshll.u32 %v3619_v39, 16  ;;  %v581_v2 = vshrl.u32 %v3619_v39, 16  ;;  %v597_v5 = vshll.u32 %v3621_v49, 16 }
  0x2d   :  { %v3620_v50 = vcombine.low %v143_v42, %v159_v37  ;;  %v578_v14 = vrot.slane %v576_v57, 1  ;;  %v4512_v17 = vmax.bf16 %v4119_v3, %v50_v0  ;;  %v131_v18 = vmax.bf16 %v4119_v3, %v66_v1  ;;  %v3560_v1 = vld [vmem:[%s5946_s0 + $0x80] sm:$0xf] }
  0x2e   :  { %v585_v7 = vrot.slane %v583_v53, 1  ;;  %v595_v20 = vshrl.u32 %v3621_v49, 16  ;;  %v3593_v25 = vcombine.low %v4506_v10, %v132_v13  ;;  %v161_v57 = vmax.bf16 %v4119_v3, %v3574_v44 }
  0x2f   :  { %639 = vrot.lane.b32.xlu1 %v558_v55, %s4122_s1  ;;  %v130_v55 = vmax.bf16 %v4119_v3, %v65_v45  ;;  %v590_v6 = vshll.u32 %v3620_v50, 16  ;;  %v588_v11 = vshrl.u32 %v3620_v50, 16  ;;  %v3592_v31 = vcombine.low %v4512_v17, %v131_v18  ;;  %v3559_v45 = vld [vmem:[%s5946_s0 + $0x78] sm:$0xf]  ;;  %v3558_v50 = vld [vmem:[%s5946_s0 + $0x70] sm:$0xf] }
  0x30   :  { %637 = vrot.lane.b32.xlu0 %v551_v59, %s4122_s1  ;;  %v129_v59 = vmax.bf16 %v4119_v3, %v64_v48  ;;  %v586_v21 = vor.u32 %v585_v7, %v581_v2  ;;  %v351_v48 = vshrl.u32 %v3593_v25, 16  ;;  %v146_v60 = vmax.bf16 %v4119_v3, %v3559_v45 }
  0x31   :  { %v3591_v9 = vcombine.low %v4483_v54, %v130_v55  ;;  %v592_v27 = vrot.slane %v590_v6, 1  ;;  %v344_v55 = vshrl.u32 %v3592_v31, 16  ;;  %v163_v7 = vmax.bf16 %v4119_v3, %v3576_v61 }
  0x32   :  { %v147_v13 = vmax.bf16 %v4119_v3, %v3560_v1  ;;  %vm848_vm3 = vcmask 523264   ;;  %vm1040_vm4 = vcmask 125952   ;;  %vm1042_vm5 = vcmask 122880  }
  0x33   :  { %643 = vrot.lane.b32.xlu1 %v572_v63, %s4122_s1  ;;  %v3604_v63 = vcombine.low %v143_v42, %v143_v42  ;;  %v339_v24 = vshll.u32 %v3591_v9, 16  ;;  %v337_v36 = vshrl.u32 %v3591_v9, 16  ;;  %v593_v39 = vor.u32 %v592_v27, %v588_v11  ;;  %1041 = vst.msk [vmem:[#allocation2] sm:$0xf] %vm1040_vm4, %v4119_v3  ;;  %1044 = vst.msk [vmem:[#allocation2 + $0x50] sm:$0xf] %vm1040_vm4, %v4119_v3 }
  0x34   :  { %641 = vrot.lane.b32.xlu0 %v565_v4, %s4122_s1  ;;  %v574_v4 = vshrl.u32 %v3618_v43, 16  ;;  %v346_v42 = vshll.u32 %v3592_v31, 16  ;;  %v3575_v43 = vld [vmem:[%s5946_s0 + $0x7c] sm:$0x1]  ;;  %v3608_v27 = vcombine.low %v147_v13, %v147_v13  ;;  %1043 = vst.msk [vmem:[#allocation2 + $0x4] sm:$0x1] %vm1042_vm5, %v4119_v3 }
  0x35   :  { %v341_v37 = vrot.slane %v339_v24, 1  ;;  %1045 = vst.msk [vmem:[#allocation2 + $0x54] sm:$0x1] %vm1042_vm5, %v4119_v3  ;;  %1048 = vst.msk [vmem:[#allocation2 + $0x4c] sm:$0x1] %vm1042_vm5, %v4119_v3  ;;  %vm2788_vm11 = vcmask 654336  }
  0x36   :  { %v579_v26 = vor.u32 %v578_v14, %v574_v4  ;;  %v3607_v14 = vcombine.low %v146_v60, %v146_v60  ;;  %1047 = vst.msk [vmem:[#allocation2 + $0x48] sm:$0xf] %vm1040_vm4, %v4119_v3  ;;  %1049 = vst.msk [vmem:[#allocation2 + $0x98] sm:$0xf] %vm1040_vm4, %v4119_v3  ;;  %vm1052_vm6 = vsmask.f32 256 }
  0x37   :  { %375 = vrot.lane.b32.xlu1 %v314_v16, %s4121_s22  ;;  %v3590_v16 = vcombine.low %v4488_v58, %v129_v59  ;;  %v342_v46 = vor.u32 %v341_v37, %v337_v36  ;;  %v3577_v59 = vld [vmem:[%s5946_s0 + $0x8c] sm:$0x1]  ;;  %1050 = vst.msk [vmem:[#allocation2 + $0x9c] sm:$0x1] %vm1042_vm5, %v4119_v3  ;;  %vm1114_vm7 = vsmask.f32 7938  ;;  %vm4638_vm8 = vmand %vm1042_vm5, %vm1052_vm6 }
  0x38   :  { %373 = vrot.lane.b32.xlu0 %v307_v23, %s4121_s22  ;;  %v599_v23 = vrot.slane %v597_v5, 1  ;;  %v164_v4 = vmax.bf16 %v4119_v3, %v3577_v59  ;;  %vm4644_vm9 = vmand %vm1042_vm5, %vm1114_vm7  ;;  %vm2821_vm12 = vcmask 785408   ;;  %vm2854_vm13 = vcmask 916480  }
  0x39   :  { %v332_v28 = vshll.u32 %v3590_v16, 16  ;;  %vm4693_vm10 = vmand %vm1040_vm4, %vm1114_vm7  ;;  %vm3525_vm14 = vcmask 64512  }
  0x3a   :  { %v600_v33 = vor.u32 %v599_v23, %v595_v20 }
  0x3b   :  { %379 = vrot.lane.b32.xlu1 %v328_v38, %s4121_s22  ;;  %v353_v38 = vshll.u32 %v3593_v25, 16  ;;  %v334_v41 = vrot.slane %v332_v28, 1 }
  0x3c   :  { %377 = vrot.lane.b32.xlu0 %v321_v40, %s4121_s22  ;;  %v330_v40 = vshrl.u32 %v3590_v16, 16 }
  0x3d   :  { %v355_v49 = vrot.slane %v353_v38, 1 }
  0x3e   :  { %v335_v53 = vor.u32 %v334_v41, %v330_v40 }
  0x3f   :  { %455 = vrot.lane.b32.xlu1 %v3603_v52, %s4120_s23  ;;  %v162_v52 = vmax.bf16 %v4119_v3, %v3575_v43  ;;  %v356_v0 = vor.u32 %v355_v49, %v351_v48 }
  0x40   :  { %453 = vrot.lane.b32.xlu0 %v3602_v56, %s4120_s23  ;;  %v348_v56 = vrot.slane %v346_v42, 1 }
  0x41   :  { %v3623_v2 = vcombine.low %v146_v60, %v162_v52 }
  0x42   :  { %v349_v5 = vor.u32 %v348_v56, %v344_v55 }
  0x43   :  { %459 = vrot.lane.b32.xlu1 %v3605_v62, %s4120_s23  ;;  %v145_v62 = vmax.bf16 %v4119_v3, %v3558_v50  ;;  %v611_v16 = vshll.u32 %v3623_v2, 16  ;;  %v609_v24 = vshrl.u32 %v3623_v2, 16 }
  0x44   :  { %457 = vrot.lane.b32.xlu0 %v3604_v63, %s4120_s23  ;;  %v3561_v63 = vld [vmem:[%s5946_s0 + $0x88] sm:$0xf] }
  0x45   :  { %v3622_v6 = vcombine.low %v145_v62, %v161_v57  ;;  %v148_v9 = vmax.bf16 %v4119_v3, %v3561_v63  ;;  %v3606_v20 = vcombine.low %v145_v62, %v145_v62  ;;  %v613_v25 = vrot.slane %v611_v16, 1 }
  0x47   :  { %647 = vrot.lane.b32.xlu1 %v586_v21, %s4122_s1  ;;  %v3625_v18 = vcombine.low %v148_v9, %v164_v4  ;;  %v604_v11 = vshll.u32 %v3622_v6, 16  ;;  %v3624_v21 = vcombine.low %v147_v13, %v163_v7  ;;  %v3609_v23 = vcombine.low %v148_v9, %v148_v9 }
  0x48   :  { %645 = vrot.lane.b32.xlu0 %v579_v26, %s4122_s1  ;;  %v602_v28 = vshrl.u32 %v3622_v6, 16  ;;  %v614_v36 = vor.u32 %v613_v25, %v609_v24 }
  0x49   :  { %v625_v26 = vshll.u32 %v3625_v18, 16  ;;  %v606_v31 = vrot.slane %v604_v11, 1  ;;  %v623_v37 = vshrl.u32 %v3625_v18, 16  ;;  %v616_v40 = vshrl.u32 %v3624_v21, 16 }
  0x4b   :  { %651 = vrot.lane.b32.xlu1 %v600_v33, %s4122_s1  ;;  %v618_v33 = vshll.u32 %v3624_v21, 16  ;;  %v627_v38 = vrot.slane %v625_v26, 1 }
  0x4c   :  { %649 = vrot.lane.b32.xlu0 %v593_v39, %s4122_s1  ;;  %v607_v39 = vor.u32 %v606_v31, %v602_v28 }
  0x4d   :  { %v620_v41 = vrot.slane %v618_v33, 1  ;;  %v628_v42 = vor.u32 %v627_v38, %v623_v37 }
  0x4f   :  { %383 = vrot.lane.b32.xlu1 %v342_v46, %s4121_s22  ;;  %v621_v43 = vor.u32 %v620_v41, %v616_v40 }
  0x50   :  { %381 = vrot.lane.b32.xlu0 %v335_v53, %s4121_s22 }
  0x53   :  { %387 = vrot.lane.b32.xlu1 %v356_v0, %s4121_s22 }
  0x54   :  { %385 = vrot.lane.b32.xlu0 %v349_v5, %s4121_s22 }
  0x57   :  { %463 = vrot.lane.b32.xlu1 %v3607_v14, %s4120_s23 }
  0x58   :  { %461 = vrot.lane.b32.xlu0 %v3606_v20, %s4120_s23 }
  0x5b   :  { %467 = vrot.lane.b32.xlu1 %v3609_v23, %s4120_s23 }
  0x5c   :  { %465 = vrot.lane.b32.xlu0 %v3608_v27, %s4120_s23 }
  0x5f   :  { %655 = vrot.lane.b32.xlu1 %v614_v36, %s4122_s1 }
  0x60   :  { %653 = vrot.lane.b32.xlu0 %v607_v39, %s4122_s1 }
  0x63   :  { %659 = vrot.lane.b32.xlu1 %v628_v42, %s4122_s1 }
  0x64   :  { %657 = vrot.lane.b32.xlu0 %v621_v43, %s4122_s1 }
  0x78   :  { %v440_v44 = vpop.permute.xlu1 %439  ;;  %v438_v45 = vpop.permute.xlu0 %437 }
  0x7c   :  { %v444_v46 = vpop.permute.xlu1 %443  ;;  %v442_v48 = vpop.permute.xlu0 %441 }
  0x81   :  { %v362_v49 = vpop.permute.xlu1 %361 }
  0x82   :  { %v358_v50 = vpop.permute.xlu0 %357  ;;  %v670_v0 = vsel %vm661_vm0, %v4224_v19, %v362_v49 }
  0x83   :  { %v664_v55 = vsel %vm661_vm0, %v4254_v30, %v358_v50 }
  0x84   :  { %v712_v62 = vsel %vm710_vm1, %v664_v55, %v438_v45 }
  0x85   :  { %v364_v52 = vpop.permute.xlu1 %363 }
  0x86   :  { %v360_v53 = vpop.permute.xlu0 %359  ;;  %v673_v60 = vsel %vm661_vm0, %v4258_v32, %v364_v52  ;;  %v716_v32 = vsel %vm710_vm1, %v670_v0, %v442_v48 }
  0x87   :  { %v667_v56 = vsel %vm661_vm0, %v4263_v35, %v360_v53  ;;  %v718_v1 = vsel %vm710_vm1, %v673_v60, %v444_v46 }
  0x88   :  { %v714_v59 = vsel %vm710_vm1, %v667_v56, %v440_v44 }
  0x89   :  { %v632_v57 = vpop.permute.xlu1 %631 }
  0x8a   :  { %v747_v61 = vsel %vm743_vm2, %v714_v59, %v632_v57  ;;  %v630_v63 = vpop.permute.xlu0 %629 }
  0x8b   :  { %v745_v30 = vsel %vm743_vm2, %v712_v62, %v630_v63 }
  0x8c   :  { %v3626_v35 = vcombine.low %v745_v30, %v747_v61 }
  0x8d   :  { %v636_v2 = vpop.permute.xlu1 %635 }
  0x8e   :  { %v751_v4 = vsel %vm743_vm2, %v718_v1, %v636_v2  ;;  %3891 = vmatprep.mubr.msk.bf16.mxu0 %vm848_vm3, %v3626_v35  ;;  %v634_v5 = vpop.permute.xlu0 %633 }
  0x8f   :  { %v749_v6 = vsel %vm743_vm2, %v716_v32, %v634_v5 }
  0x90   :  { %v3627_v7 = vcombine.low %v749_v6, %v751_v4 }
  0x91   :  { %v368_v9 = vpop.permute.xlu1 %367 }
  0x92   :  { %3892 = vmatmul.mubr.msk.bf16.vlgmr.msra.gmra.mxu0 %vm848_vm3, %v3627_v7  ;;  %v366_v19 = vpop.permute.xlu0 %365  ;;  %v679_v21 = vsel %vm661_vm0, %v4305_v8, %v368_v9 }
  0x93   :  { %v676_v23 = vsel %vm661_vm0, %v4312_v15, %v366_v19  ;;  %v1084_v19 = vld [vmem:[#allocation2 + $0x50] sm:$0x1] }
  0x95   :  { %v372_v13 = vpop.permute.xlu1 %371 }
  0x96   :  { %v370_v14 = vpop.permute.xlu0 %369  ;;  %v685_v33 = vsel %vm661_vm0, %v4324_v12, %v372_v13  ;;  %v1146_v13 = vld [vmem:[#allocation2 + $0x54] sm:$0x1] }
  0x97   :  { %v682_v8 = vsel %vm661_vm0, %v4336_v34, %v370_v14 }
  0x99   :  { %v448_v16 = vpop.permute.xlu1 %447 }
  0x9a   :  { %v446_v18 = vpop.permute.xlu0 %445  ;;  %v722_v24 = vsel %vm710_vm1, %v679_v21, %v448_v16  ;;  %v1085_v16 = vsel %vm4638_vm8, 0, %v1084_v19 }
  0x9b   :  { %v720_v26 = vsel %vm710_vm1, %v676_v23, %v446_v18  ;;  %v1147_v18 = vsel %vm4644_vm9, 0, %v1146_v13  ;;  %1086 = vst [vmem:[#allocation2 + $0x50] sm:$0x1] %v1085_v16 }
  0x9c   :  { %1148 = vst [vmem:[#allocation2 + $0x54] sm:$0x1] %v1147_v18 }
  0x9d   :  { %v452_v20 = vpop.permute.xlu1 %451 }
  0x9e   :  { %v450_v11 = vpop.permute.xlu0 %449  ;;  %v726_v37 = vsel %vm710_vm1, %v685_v33, %v452_v20  ;;  %v1054_v33 = vld [vmem:[#allocation2] sm:$0x1] }
  0x9f   :  { %v724_v38 = vsel %vm710_vm1, %v682_v8, %v450_v11 }
  0xa1   :  { %v640_v25 = vpop.permute.xlu1 %639 }
  0xa2   :  { %v755_v27 = vsel %vm743_vm2, %v722_v24, %v640_v25  ;;  %v638_v28 = vpop.permute.xlu0 %637 }
  0xa3   :  { %v753_v31 = vsel %vm743_vm2, %v720_v26, %v638_v28 }
  0xa4   :  { %v3628_v36 = vcombine.low %v753_v31, %v755_v27 }
  0xa5   :  { %v644_v15 = vpop.permute.xlu1 %643 }
  0xa6   :  { %v759_v39 = vsel %vm743_vm2, %v726_v37, %v644_v15  ;;  %3895 = vmatprep.mubr.msk.bf16.mxu0 %vm848_vm3, %v3628_v36  ;;  %v642_v40 = vpop.permute.xlu0 %641  ;;  %v1116_v36 = vld [vmem:[#allocation2 + $0x4] sm:$0x1]  ;;  %v1483_v15 = vld [vmem:[#allocation2 + $0x50] sm:$0xf] }
  0xa7   :  { %v757_v41 = vsel %vm743_vm2, %v724_v38, %v642_v40  ;;  %v1055_v38 = vsel %vm4638_vm8, 0, %v1054_v33  ;;  %v1137_v33 = vld [vmem:[#allocation2 + $0x3c] sm:$0x1] }
  0xa8   :  { %v3629_v42 = vcombine.low %v757_v41, %v759_v39  ;;  %1056 = vst [vmem:[#allocation2] sm:$0x1] %v1055_v38 }
  0xa9   :  { %v376_v43 = vpop.permute.xlu1 %375 }
  0xaa   :  { %3896 = vmatmul.mubr.msk.bf16.gmra.mxu0 %vm848_vm3, %v3629_v42  ;;  %v374_v12 = vpop.permute.xlu0 %373  ;;  %v691_v48 = vsel %vm661_vm0, %v4394_v22, %v376_v43 }
  0xab   :  { %v688_v49 = vsel %vm661_vm0, %v4400_v29, %v374_v12  ;;  %v1063_v12 = vld [vmem:[#allocation2 + $0x18] sm:$0x1] }
  0xad   :  { %v380_v44 = vpop.permute.xlu1 %379 }
  0xae   :  { %v378_v45 = vpop.permute.xlu0 %377  ;;  %v697_v55 = vsel %vm661_vm0, %v4418_v47, %v380_v44  ;;  %v1125_v44 = vld [vmem:[#allocation2 + $0x1c] sm:$0x1] }
  0xaf   :  { %v694_v57 = vsel %vm661_vm0, %v4424_v51, %v378_v45 }
  0xb1   :  { %v456_v34 = vpop.permute.xlu1 %455 }
  0xb2   :  { %v454_v46 = vpop.permute.xlu0 %453  ;;  %v730_v53 = vsel %vm710_vm1, %v691_v48, %v456_v34  ;;  %v1126_v48 = vsel %vm4644_vm9, 0, %v1125_v44 }
  0xb3   :  { %v728_v56 = vsel %vm710_vm1, %v688_v49, %v454_v46  ;;  %v1064_v46 = vsel %vm4638_vm8, 0, %v1063_v12  ;;  %v1081_v49 = vld [vmem:[#allocation2 + $0x48] sm:$0x1]  ;;  %1127 = vst [vmem:[#allocation2 + $0x1c] sm:$0x1] %v1126_v48 }
  0xb4   :  { %1065 = vst [vmem:[#allocation2 + $0x18] sm:$0x1] %v1064_v46  ;;  %v1087_v46 = vld [vmem:[#allocation2 + $0x58] sm:$0x1] }
  0xb5   :  { %v460_v50 = vpop.permute.xlu1 %459 }
  0xb6   :  { %v458_v52 = vpop.permute.xlu0 %457  ;;  %v734_v22 = vsel %vm710_vm1, %v697_v55, %v460_v50  ;;  %v1143_v50 = vld [vmem:[#allocation2 + $0x4c] sm:$0x1] }
  0xb7   :  { %v732_v62 = vsel %vm710_vm1, %v694_v57, %v458_v52  ;;  %v1057_v52 = vld [vmem:[#allocation2 + $0x8] sm:$0x1] }
  0xb8   :  { %v1058_v57 = vsel %vm4638_vm8, 0, %v1057_v52  ;;  %v1149_v52 = vld [vmem:[#allocation2 + $0x5c] sm:$0x1] }
  0xb9   :  { %v648_v59 = vpop.permute.xlu1 %647  ;;  %1059 = vst [vmem:[#allocation2 + $0x8] sm:$0x1] %v1058_v57  ;;  %v1090_v57 = vld [vmem:[#allocation2 + $0x60] sm:$0x1] }
  0xba   :  { %v763_v60 = vsel %vm743_vm2, %v730_v53, %v648_v59  ;;  %v646_v61 = vpop.permute.xlu0 %645  ;;  %v1119_v53 = vld [vmem:[#allocation2 + $0xc] sm:$0x1] }
  0xbb   :  { %v761_v29 = vsel %vm743_vm2, %v728_v56, %v646_v61  ;;  %v1120_v59 = vsel %vm4644_vm9, 0, %v1119_v53  ;;  %v1144_v61 = vsel %vm4644_vm9, 0, %v1143_v50  ;;  %v1088_v50 = vsel %vm4638_vm8, 0, %v1087_v46 }
  0xbc   :  { %v3630_v63 = vcombine.low %v761_v29, %v763_v60  ;;  %v1082_v60 = vsel %vm4638_vm8, 0, %v1081_v49  ;;  %1121 = vst [vmem:[#allocation2 + $0xc] sm:$0x1] %v1120_v59  ;;  %v1128_v29 = vld [vmem:[#allocation2 + $0x24] sm:$0x1]  ;;  %v1150_v53 = vsel %vm4644_vm9, 0, %v1149_v52 }
  0xbd   :  { %v652_v0 = vpop.permute.xlu1 %651  ;;  %1083 = vst [vmem:[#allocation2 + $0x48] sm:$0x1] %v1082_v60  ;;  %1145 = vst [vmem:[#allocation2 + $0x4c] sm:$0x1] %v1144_v61  ;;  %v1091_v61 = vsel %vm4638_vm8, 0, %v1090_v57 }
  0xbe   :  { %v767_v30 = vsel %vm743_vm2, %v734_v22, %v652_v0  ;;  %v650_v47 = vpop.permute.xlu0 %649  ;;  %3899 = vmatprep.mubr.msk.bf16.mxu0 %vm848_vm3, %v3630_v63  ;;  %v1066_v22 = vld [vmem:[#allocation2 + $0x20] sm:$0x1]  ;;  %v1129_v0 = vsel %vm4644_vm9, 0, %v1128_v29  ;;  %1089 = vst [vmem:[#allocation2 + $0x58] sm:$0x1] %v1088_v50 }
  0xbf   :  { %v765_v35 = vsel %vm743_vm2, %v732_v62, %v650_v47  ;;  %v1067_v63 = vsel %vm4638_vm8, 0, %v1066_v22  ;;  %v1475_v47 = vld [vmem:[#allocation2] sm:$0xf]  ;;  %1130 = vst [vmem:[#allocation2 + $0x24] sm:$0x1] %v1129_v0 }
  0xc0   :  { %v3631_v51 = vcombine.low %v765_v35, %v767_v30  ;;  %v1515_v30 = vld [vmem:[#allocation2 + $0x50] sm:$0xe]  ;;  %1068 = vst [vmem:[#allocation2 + $0x20] sm:$0x1] %v1067_v63  ;;  %1151 = vst [vmem:[#allocation2 + $0x5c] sm:$0x1] %v1150_v53 }
  0xc1   :  { %v384_v1 = vpop.permute.xlu1 %383  ;;  %v1152_v22 = vld [vmem:[#allocation2 + $0x64] sm:$0x1]  ;;  %1092 = vst [vmem:[#allocation2 + $0x60] sm:$0x1] %v1091_v61  ;;  %v1167_v63 = vld [vmem:[#allocation2 + $0x8c] sm:$0x1] }
  0xc2   :  { %v382_v2 = vpop.permute.xlu0 %381  ;;  %3900 = vmatmul.mubr.msk.bf16.gmra.mxu0 %vm848_vm3, %v3631_v51  ;;  %v703_v14 = vsel %vm661_vm0, %v4483_v54, %v384_v1  ;;  %v1060_v1 = vld [vmem:[#allocation2 + $0x10] sm:$0x1]  ;;  %v1153_v29 = vsel %vm4644_vm9, 0, %v1152_v22 }
  0xc3   :  { %v700_v20 = vsel %vm661_vm0, %v4488_v58, %v382_v2  ;;  %v1122_v2 = vld [vmem:[#allocation2 + $0x14] sm:$0x1]  ;;  %1154 = vst [vmem:[#allocation2 + $0x64] sm:$0x1] %v1153_v29  ;;  %v1382_v50 = vld [vmem:[#allocation2 + $0xc] sm:$0x1] }
  0xc4   :  { %v1579_v16 = vld [vmem:[#allocation2 + $0x48] sm:$0xf]  ;;  %v1595_v18 = vld [vmem:[#allocation2 + $0x4c] sm:$0x1] }
  0xc5   :  { %v388_v4 = vpop.permute.xlu1 %387 }
  0xc6   :  { %v386_v32 = vpop.permute.xlu0 %385  ;;  %v709_v24 = vsel %vm661_vm0, %v4506_v10, %v388_v4  ;;  %v1499_v10 = vld [vmem:[#allocation2 + $0x54] sm:$0x1] }
  0xc7   :  { %v706_v25 = vsel %vm661_vm0, %v4512_v17, %v386_v32  ;;  %v1117_v17 = vsel %vm4644_vm9, 0, %v1116_v36  ;;  %v3672_v40 = vcombine.low %v1483_v15, %v1499_v10  ;;  %v3688_v35 = vcombine.low %v1515_v30, %v1499_v10  ;;  %v1131_v15 = vld [vmem:[#allocation2 + $0x2c] sm:$0x1] }
  0xc8   :  { %1118 = vst [vmem:[#allocation2 + $0x4] sm:$0x1] %v1117_v17  ;;  %v1132_v38 = vsel %vm4644_vm9, 0, %v1131_v15  ;;  %v1078_v17 = vld [vmem:[#allocation2 + $0x40] sm:$0x1]  ;;  %v1168_v30 = vsel %vm4644_vm9, 0, %v1167_v63 }
  0xc9   :  { %v464_v5 = vpop.permute.xlu1 %463  ;;  %v1759_v45 = vshll.u32 %v3672_v40, 16  ;;  %v1757_v55 = vshrl.u32 %v3672_v40, 16  ;;  %v1900_v19 = vrot.slane %v3688_v35, 1  ;;  %1133 = vst [vmem:[#allocation2 + $0x2c] sm:$0x1] %v1132_v38  ;;  %v1079_v40 = vsel %vm4638_vm8, 0, %v1078_v17 }
  0xca   :  { %v462_v6 = vpop.permute.xlu0 %461  ;;  %v738_v23 = vsel %vm710_vm1, %v703_v14, %v464_v5  ;;  %v1061_v5 = vsel %vm4638_vm8, 0, %v1060_v1  ;;  %1080 = vst [vmem:[#allocation2 + $0x40] sm:$0x1] %v1079_v40  ;;  %1169 = vst [vmem:[#allocation2 + $0x8c] sm:$0x1] %v1168_v30 }
  0xcb   :  { %v736_v54 = vsel %vm710_vm1, %v700_v20, %v462_v6  ;;  %v1761_v56 = vrot.slane %v1759_v45, 1  ;;  %v1123_v6 = vsel %vm4644_vm9, 0, %v1122_v2  ;;  %1062 = vst [vmem:[#allocation2 + $0x10] sm:$0x1] %v1061_v5  ;;  %v3751_v20 = vcombine.low %v1579_v16, %v1579_v16  ;;  %v1093_v45 = vld [vmem:[#allocation2 + $0x68] sm:$0x1] }
  0xcc   :  { %1124 = vst [vmem:[#allocation2 + $0x14] sm:$0x1] %v1123_v6  ;;  %v1094_v48 = vsel %vm4638_vm8, 0, %v1093_v45  ;;  %v1161_v35 = vld [vmem:[#allocation2 + $0x7c] sm:$0x1] }
  0xcd   :  { %v468_v11 = vpop.permute.xlu1 %467  ;;  %v1762_v62 = vor.u32 %v1761_v56, %v1757_v55  ;;  %2370 = vrot.lane.b32.xlu1 %v3751_v20, %s4123_s20  ;;  %1095 = vst [vmem:[#allocation2 + $0x68] sm:$0x1] %v1094_v48  ;;  %v1096_v55 = vld [vmem:[#allocation2 + $0x70] sm:$0x1]  ;;  %v1158_v56 = vld [vmem:[#allocation2 + $0x74] sm:$0x1] }
  0xce   :  { %v466_v21 = vpop.permute.xlu0 %465  ;;  %v742_v58 = vsel %vm710_vm1, %v709_v24, %v468_v11  ;;  %v1097_v59 = vsel %vm4638_vm8, 0, %v1096_v55  ;;  %v1159_v60 = vsel %vm4644_vm9, 0, %v1158_v56  ;;  %v1162_v1 = vsel %vm4644_vm9, 0, %v1161_v35  ;;  %v1108_v2 = vld [vmem:[#allocation2 + $0x90] sm:$0x1] }
  0xcf   :  { %v740_v8 = vsel %vm710_vm1, %v706_v25, %v466_v21  ;;  %1828 = vrot.lane.b32.xlu0 %v1762_v62, %s4121_s22  ;;  %v1491_v51 = vld [vmem:[#allocation2 + $0x4] sm:$0x1]  ;;  %v3767_v21 = vcombine.low %v1579_v16, %v1595_v18  ;;  %1098 = vst [vmem:[#allocation2 + $0x70] sm:$0x1] %v1097_v59  ;;  %1160 = vst [vmem:[#allocation2 + $0x74] sm:$0x1] %v1159_v60 }
  0xd0   :  { %v3664_v4 = vcombine.low %v1475_v47, %v1491_v51  ;;  %v1105_v62 = vld [vmem:[#allocation2 + $0x88] sm:$0x1]  ;;  %v1099_v47 = vld [vmem:[#allocation2 + $0x78] sm:$0x1]  ;;  %1163 = vst [vmem:[#allocation2 + $0x7c] sm:$0x1] %v1162_v1 }
  0xd1   :  { %v656_v26 = vpop.permute.xlu1 %655  ;;  %v2486_v25 = vshrl.u32 %v3767_v21, 16  ;;  %v1106_v0 = vsel %vm4638_vm8, 0, %v1105_v62  ;;  %v1109_v5 = vsel %vm4638_vm8, 0, %v1108_v2  ;;  %v4757_v18 = vld [vmem:[%s5948_s2] ss:$0 sm:$0xff]  ;;  %s4125_s2 = smov 80  }
  0xd2   :  { %v771_v27 = vsel %vm743_vm2, %v738_v23, %v656_v26  ;;  %v654_v28 = vpop.permute.xlu0 %653  ;;  %v1703_v13 = vshll.u32 %v3664_v4, 16  ;;  %v1701_v14 = vshrl.u32 %v3664_v4, 16  ;;  %v1507_v23 = vld [vmem:[#allocation2] sm:$0xe]  ;;  %v2488_v26 = vshll.u32 %v3767_v21, 16 }
  0xd3   :  { %v769_v31 = vsel %vm743_vm2, %v736_v54, %v654_v28  ;;  %1924 = vrot.lane.b32.xlu0 %v1900_v19, %s4120_s23  ;;  %v3680_v54 = vcombine.low %v1507_v23, %v1491_v51  ;;  %1107 = vst [vmem:[#allocation2 + $0x88] sm:$0x1] %v1106_v0  ;;  %v1100_v51 = vsel %vm4638_vm8, 0, %v1099_v47  ;;  %v1170_v4 = vld [vmem:[#allocation2 + $0x94] sm:$0x1] }
  0xd4   :  { %v3632_v37 = vcombine.low %v769_v31, %v771_v27  ;;  %v1705_v11 = vrot.slane %v1703_v13, 1  ;;  %v2490_v28 = vrot.slane %v2488_v26, 1  ;;  %v1075_v31 = vld [vmem:[#allocation2 + $0x38] sm:$0x1]  ;;  %1101 = vst [vmem:[#allocation2 + $0x78] sm:$0x1] %v1100_v51 }
  0xd5   :  { %v660_v39 = vpop.permute.xlu1 %659  ;;  %v1892_v27 = vrot.slane %v3680_v54, 1  ;;  %v1076_v36 = vsel %vm4638_vm8, 0, %v1075_v31  ;;  %v1171_v6 = vsel %vm4644_vm9, 0, %v1170_v4  ;;  %1110 = vst [vmem:[#allocation2 + $0x90] sm:$0x1] %v1109_v5 }
  0xd6   :  { %v775_v41 = vsel %vm743_vm2, %v742_v58, %v660_v39  ;;  %v658_v42 = vpop.permute.xlu0 %657  ;;  %3903 = vmatprep.mubr.msk.bf16.mxu0 %vm848_vm3, %v3632_v37  ;;  %v1706_v24 = vor.u32 %v1705_v11, %v1701_v14  ;;  %v2491_v58 = vor.u32 %v2490_v28, %v2486_v25  ;;  %1077 = vst [vmem:[#allocation2 + $0x38] sm:$0x1] %v1076_v36  ;;  %v1069_v37 = vld [vmem:[#allocation2 + $0x28] sm:$0x1]  ;;  %v1140_v39 = vld [vmem:[#allocation2 + $0x44] sm:$0x1] }
  0xd7   :  { %v773_v43 = vsel %vm743_vm2, %v740_v8, %v658_v42  ;;  %v1138_v8 = vsel %vm4644_vm9, 0, %v1137_v33  ;;  %v1070_v10 = vsel %vm4638_vm8, 0, %v1069_v37  ;;  %v1072_v42 = vld [vmem:[#allocation2 + $0x30] sm:$0x1]  ;;  %1172 = vst [vmem:[#allocation2 + $0x94] sm:$0x1] %v1171_v6 }
  0xd8   :  { %v3633_v34 = vcombine.low %v773_v43, %v775_v41  ;;  %1812 = vrot.lane.b32.xlu0 %v1706_v24, %s4121_s22  ;;  %2562 = vrot.lane.b32.xlu1 %v2491_v58, %s4124_s21  ;;  %1139 = vst [vmem:[#allocation2 + $0x3c] sm:$0x1] %v1138_v8  ;;  %1071 = vst [vmem:[#allocation2 + $0x28] sm:$0x1] %v1070_v10  ;;  %v1141_v41 = vsel %vm4644_vm9, 0, %v1140_v39  ;;  %v1073_v12 = vsel %vm4638_vm8, 0, %v1072_v42 }
  0xd9   :  { %1142 = vst [vmem:[#allocation2 + $0x44] sm:$0x1] %v1141_v41  ;;  %v1134_v43 = vld [vmem:[#allocation2 + $0x34] sm:$0x1]  ;;  %1074 = vst [vmem:[#allocation2 + $0x30] sm:$0x1] %v1073_v12 }
  0xda   :  { %3904 = vmatmul.mubr.msk.bf16.gmra.mxu0 %vm848_vm3, %v3633_v34  ;;  %v1135_v44 = vsel %vm4644_vm9, 0, %v1134_v43  ;;  %v1155_v34 = vld [vmem:[#allocation2 + $0x6c] sm:$0x1]  ;;  %v1102_v19 = vld [vmem:[#allocation2 + $0x80] sm:$0x1] }
  0xdb   :  { %1136 = vst [vmem:[#allocation2 + $0x34] sm:$0x1] %v1135_v44  ;;  %v1156_v49 = vsel %vm4644_vm9, 0, %v1155_v34  ;;  %v1164_v13 = vld [vmem:[#allocation2 + $0x84] sm:$0x1]  ;;  %v1103_v14 = vsel %vm4638_vm8, 0, %v1102_v19 }
  0xdc   :  { %1908 = vrot.lane.b32.xlu0 %v1892_v27, %s4120_s23  ;;  %1157 = vst [vmem:[#allocation2 + $0x6c] sm:$0x1] %v1156_v49  ;;  %v1165_v16 = vsel %vm4644_vm9, 0, %v1164_v13  ;;  %1104 = vst [vmem:[#allocation2 + $0x80] sm:$0x1] %v1103_v14 }
  0xdd   :  { %1166 = vst [vmem:[#allocation2 + $0x84] sm:$0x1] %v1165_v16  ;;  %v4762_v11 = vld [vmem:[%s5949_s3] ss:$0 sm:$0xff]  ;;  %v1391_v42 = vld [vmem:[#allocation2 + $0x18] sm:$0xf] }
  0xde   :  { %v1394_v43 = vld [vmem:[#allocation2 + $0x1c] sm:$0x1]  ;;  %v1379_v49 = vld [vmem:[#allocation2 + $0x8] sm:$0xf]  ;;  %v1397_v62 = vld [vmem:[#allocation2 + $0x20] sm:$0xf] }
  0xdf   :  { %v1400_v63 = vld [vmem:[#allocation2 + $0x24] sm:$0x1]  ;;  %v1385_v51 = vld [vmem:[#allocation2 + $0x10] sm:$0xf]  ;;  %v1388_v1 = vld [vmem:[#allocation2 + $0x14] sm:$0x1] }
  0xe0   :  { %s4126_s3 = smov 64  }
 0x152   :  { %v3893_v20 = vpop.f32.mrf.mxu0 }
 0x153   :  { %v979_v21 = vmul.f32 %v3893_v20, %v4757_v18 }
 0x154   :  { %v907_v23 = vpop.f32.mrf.mxu0 }
 0x155   :  { %v1002_v24 = vadd.f32 %v4762_v11, %v979_v21  ;;  %v977_v54 = vmul.f32 %v4757_v18, %v907_v23 }
 0x156   :  { %v3894_v25 = vpop.f32.mrf.mxu0 }
 0x157   :  { %v1018_v26 = vmax.f32 %v1002_v24, 0.0  ;;  %v1000_v27 = vadd.f32 %v4762_v11, %v977_v54  ;;  %v980_v28 = vmul.f32 %v3894_v25, %v4757_v18 }
 0x158   :  { %v910_v58 = vpop.f32.mrf.mxu0 }
 0x159   :  { %v3848_v31 = vpack.c.bf16 %v1018_v26, %v1018_v26  ;;  %v1016_v33 = vmax.f32 %v1000_v27, 0.0  ;;  %v1003_v36 = vadd.f32 %v4762_v11, %v980_v28  ;;  %v978_v8 = vmul.f32 %v4757_v18, %v910_v58 }
 0x15b   :  { %v1233_v37 = vshrl.u32 %v3848_v31, 16  ;;  %v3846_v15 = vpack.c.bf16 %v1016_v33, %v1016_v33  ;;  %v1019_v10 = vmax.f32 %v1003_v36, 0.0  ;;  %v1001_v38 = vadd.f32 %v4762_v11, %v978_v8 }
 0x15c   :  { %v1236_v39 = vshll.u32 %v3848_v31, 16 }
 0x15d   :  { %v1235_v17 = vrot.slane %v1233_v37, 7  ;;  %v1217_v40 = vshrl.u32 %v3846_v15, 16  ;;  %v3849_v41 = vpack.c.bf16 %v1019_v10, %v1019_v10  ;;  %v1220_v12 = vshll.u32 %v3846_v15, 16 }
 0x15e   :  { %v1017_v44 = vmax.f32 %v1001_v38, 0.0 }
 0x15f   :  { %v1238_v45 = vor.u32 %v1236_v39, %v1235_v17  ;;  %v1239_v34 = vrot.slane %v1235_v17, 4  ;;  %v1219_v46 = vrot.slane %v1217_v40, 7  ;;  %v1241_v48 = vshrl.u32 %v3849_v41, 16 }
 0x160   :  { %v3847_v52 = vpack.c.bf16 %v1017_v44, %v1017_v44  ;;  %v1244_v60 = vshll.u32 %v3849_v41, 16 }
 0x161   :  { %v1392_v53 = vsel %vm4693_vm10, %v1238_v45, %v1391_v42  ;;  %v1395_v55 = vsel %vm4638_vm8, %v1239_v34, %v1394_v43  ;;  %v1222_v56 = vor.u32 %v1220_v12, %v1219_v46  ;;  %v1223_v57 = vrot.slane %v1219_v46, 4 }
 0x162   :  { %1393 = vst [vmem:[#allocation2 + $0x18] sm:$0xf] %v1392_v53  ;;  %1396 = vst [vmem:[#allocation2 + $0x1c] sm:$0x1] %v1395_v55  ;;  %v1243_v59 = vrot.slane %v1241_v48, 7  ;;  %v1225_v61 = vshrl.u32 %v3847_v52, 16 }
 0x163   :  { %v1380_v22 = vsel %vm4693_vm10, %v1222_v56, %v1379_v49  ;;  %v1383_v29 = vsel %vm4638_vm8, %v1223_v57, %v1382_v50  ;;  %v1228_v35 = vshll.u32 %v3847_v52, 16 }
 0x164   :  { %1381 = vst [vmem:[#allocation2 + $0x8] sm:$0xf] %v1380_v22  ;;  %1384 = vst [vmem:[#allocation2 + $0xc] sm:$0x1] %v1383_v29  ;;  %v1246_v0 = vor.u32 %v1244_v60, %v1243_v59  ;;  %v1247_v30 = vrot.slane %v1243_v59, 4  ;;  %v1227_v47 = vrot.slane %v1225_v61, 7 }
 0x166   :  { %v1398_v2 = vsel %vm4693_vm10, %v1246_v0, %v1397_v62  ;;  %v1401_v4 = vsel %vm4638_vm8, %v1247_v30, %v1400_v63  ;;  %v1230_v5 = vor.u32 %v1228_v35, %v1227_v47  ;;  %v1231_v6 = vrot.slane %v1227_v47, 4 }
 0x167   :  { %1399 = vst [vmem:[#allocation2 + $0x20] sm:$0xf] %v1398_v2  ;;  %1402 = vst [vmem:[#allocation2 + $0x24] sm:$0x1] %v1401_v4  ;;  %v1415_v2 = vld [vmem:[#allocation2 + $0x38] sm:$0xf] }
 0x168   :  { %v1386_v19 = vsel %vm4693_vm10, %v1230_v5, %v1385_v51  ;;  %v1389_v13 = vsel %vm4638_vm8, %v1231_v6, %v1388_v1 }
 0x169   :  { %1387 = vst [vmem:[#allocation2 + $0x10] sm:$0xf] %v1386_v19  ;;  %1390 = vst [vmem:[#allocation2 + $0x14] sm:$0x1] %v1389_v13  ;;  %v1573_v14 = vld [vmem:[#allocation2 + $0x18] sm:$0xf] }
 0x16a   :  { %v1589_v16 = vld [vmem:[#allocation2 + $0x1c] sm:$0x1]  ;;  %v1605_v20 = vld [vmem:[#allocation2 + $0x18] sm:$0xe]  ;;  %v3897_v21 = vpop.f32.mrf.mxu0  ;;  %v3745_v23 = vcombine.low %v1573_v14, %v1573_v14 }
 0x16b   :  { %v4788_v24 = vcombine.low %v1573_v14, %v1589_v16  ;;  %v1525_v54 = vld [vmem:[#allocation2 + $0x18] sm:$0xf]  ;;  %v1541_v25 = vld [vmem:[#allocation2 + $0x1c] sm:$0x1]  ;;  %v983_v27 = vmul.f32 %v3897_v21, %v4757_v18  ;;  %v3777_v36 = vcombine.low %v1605_v20, %v1589_v16  ;;  %v4795_v17 = vld [vmem:[#allocation2 + $0xc] sm:$0x1] }
 0x16c   :  { %v1557_v26 = vld [vmem:[#allocation2 + $0x18] sm:$0xe]  ;;  %v3698_v28 = vcombine.low %v1525_v54, %v1525_v54  ;;  %v1494_v31 = vld [vmem:[#allocation2 + $0x1c] sm:$0x1]  ;;  %2358 = vrot.lane.b32.xlu1 %v3745_v23, %s4123_s20  ;;  %v923_v8 = vpop.f32.mrf.mxu0  ;;  %v4797_v41 = vld [vmem:[#allocation2 + $0x8] sm:$0xf]  ;;  %v4805_v49 = vcombine.low %v1525_v54, %v1541_v25 }
 0x16d   :  { %v3730_v58 = vcombine.low %v1557_v26, %v1541_v25  ;;  %v1510_v33 = vld [vmem:[#allocation2 + $0x18] sm:$0xe]  ;;  %v1006_v15 = vadd.f32 %v4762_v11, %v983_v27  ;;  %v981_v10 = vmul.f32 %v4757_v18, %v923_v8  ;;  %v1508_v46 = vld [vmem:[#allocation2 + $0x8] sm:$0xe]  ;;  %v2629_v48 = vrot.slane %v3777_v36, 1 }
 0x16e   :  { %v3683_v37 = vcombine.low %v1510_v33, %v1494_v31  ;;  %1992 = vrot.lane.b32.xlu0 %v3698_v28, %s4122_s1  ;;  %v1478_v38 = vld [vmem:[#allocation2 + $0x18] sm:$0xf]  ;;  %v3898_v39 = vpop.f32.mrf.mxu0  ;;  %v4799_v42 = vld [vmem:[#allocation2 + $0x20] sm:$0xf]  ;;  %v3681_v56 = vcombine.low %v1508_v46, %v4795_v17  ;;  %v4816_v22 = vld [vmem:[#allocation2 + $0xc] sm:$0x1]  ;;  %v3696_v62 = vcombine.low %v4797_v41, %v4797_v41 }
 0x16f   :  { %v1022_v43 = vmax.f32 %v1006_v15, 0.0  ;;  %v1004_v12 = vadd.f32 %v4762_v11, %v981_v10  ;;  %v984_v44 = vmul.f32 %v3898_v39, %v4757_v18  ;;  %v2262_v45 = vrot.slane %v3730_v58, 1  ;;  %v4803_v34 = vld [vmem:[#allocation2 + $0x20] sm:$0xf]  ;;  %v1555_v29 = vld [vmem:[#allocation2 + $0x8] sm:$0xe] }
 0x170   :  { %v1895_v40 = vrot.slane %v3683_v37, 1  ;;  %v4808_v50 = vcombine.low %v1478_v38, %v1494_v31  ;;  %v926_v52 = vpop.f32.mrf.mxu0  ;;  %v4810_v53 = vld [vmem:[#allocation2 + $0x14] sm:$0x1]  ;;  %v1604_v55 = vld [vmem:[#allocation2 + $0x10] sm:$0xe]  ;;  %v3699_v63 = vcombine.low %v4799_v42, %v4799_v42  ;;  %v3746_v30 = vcombine.low %v4803_v34, %v4803_v34 }
 0x171   :  { %v3852_v57 = vpack.c.bf16 %v1022_v43, %v1022_v43  ;;  %v1020_v59 = vmax.f32 %v1004_v12, 0.0  ;;  %v1007_v60 = vadd.f32 %v4762_v11, %v984_v44  ;;  %v982_v61 = vmul.f32 %v4757_v18, %v926_v52  ;;  %v1418_v16 = vld [vmem:[#allocation2 + $0x3c] sm:$0x1]  ;;  %v1403_v54 = vld [vmem:[#allocation2 + $0x28] sm:$0xf] }
 0x172   :  { %1914 = vrot.lane.b32.xlu1 %v1895_v40, %s4120_s23  ;;  %2280 = vrot.lane.b32.xlu0 %v2262_v45, %s4125_s2  ;;  %v3776_v0 = vcombine.low %v1604_v55, %v4810_v53  ;;  %v1893_v1 = vrot.slane %v3681_v56, 1  ;;  %v3728_v6 = vcombine.low %v1555_v29, %v4816_v22  ;;  %v1724_v19 = vshll.u32 %v4808_v50, 16  ;;  %v1406_v25 = vld [vmem:[#allocation2 + $0x2c] sm:$0x1]  ;;  %v4830_v8 = vld [vmem:[#allocation2 + $0x24] sm:$0x1] }
 0x173   :  { %v1265_v47 = vshrl.u32 %v3852_v57, 16  ;;  %v3850_v35 = vpack.c.bf16 %v1020_v59, %v1020_v59  ;;  %v1023_v51 = vmax.f32 %v1007_v60, 0.0  ;;  %v1005_v4 = vadd.f32 %v4762_v11, %v982_v61  ;;  %v1558_v39 = vld [vmem:[#allocation2 + $0x20] sm:$0xe]  ;;  %v1424_v52 = vld [vmem:[#allocation2 + $0x44] sm:$0x1] }
 0x174   :  { %v2628_v5 = vrot.slane %v3776_v0, 1  ;;  %v1268_v14 = vshll.u32 %v3852_v57, 16  ;;  %v1726_v28 = vrot.slane %v1724_v19, 1  ;;  %v2260_v15 = vrot.slane %v3728_v6, 1  ;;  %v1421_v45 = vld [vmem:[#allocation2 + $0x40] sm:$0xf] }
 0x175   :  { %v1267_v13 = vrot.slane %v1265_v47, 7  ;;  %v1249_v20 = vshrl.u32 %v3850_v35, 16  ;;  %v3853_v21 = vpack.c.bf16 %v1023_v51, %v1023_v51  ;;  %v1252_v23 = vshll.u32 %v3850_v35, 16  ;;  %v1409_v59 = vld [vmem:[#allocation2 + $0x30] sm:$0xf] }
 0x176   :  { %1994 = vrot.lane.b32.xlu1 %v3699_v63, %s4122_s1  ;;  %1988 = vrot.lane.b32.xlu0 %v3696_v62, %s4122_s1  ;;  %v1021_v26 = vmax.f32 %v1005_v4, 0.0  ;;  %v3793_v27 = vcombine.low %v2628_v5, %v2629_v48  ;;  %v1722_v10 = vshrl.u32 %v4808_v50, 16  ;;  %v2085_v38 = vshll.u32 %v4805_v49, 16  ;;  %v4846_v29 = vld [vmem:[#allocation2 + $0x24] sm:$0x1] }
 0x177   :  { %v1270_v58 = vor.u32 %v1268_v14, %v1267_v13  ;;  %v1271_v31 = vrot.slane %v1267_v13, 4  ;;  %v1251_v33 = vrot.slane %v1249_v20, 7  ;;  %v1273_v36 = vshrl.u32 %v3853_v21, 16  ;;  %v1511_v62 = vld [vmem:[#allocation2 + $0x20] sm:$0xe] }
 0x178   :  { %v3851_v37 = vpack.c.bf16 %v1021_v26, %v1021_v26  ;;  %3817 = vmatprep.mubr.msk.bf16.mxu0 %vm661_vm0, %v3793_v27  ;;  %v1276_v48 = vshll.u32 %v3853_v21, 16  ;;  %v1727_v55 = vor.u32 %v1726_v28, %v1722_v10  ;;  %v2087_v60 = vrot.slane %v2085_v38, 1  ;;  %v1572_v35 = vld [vmem:[#allocation2 + $0x10] sm:$0xf]  ;;  %v1412_v51 = vld [vmem:[#allocation2 + $0x34] sm:$0x1] }
 0x179   :  { %v1416_v40 = vsel %vm4693_vm10, %v1270_v58, %v1415_v2  ;;  %v1419_v43 = vsel %vm4638_vm8, %v1271_v31, %v1418_v16  ;;  %v1254_v12 = vor.u32 %v1252_v23, %v1251_v33  ;;  %v1255_v44 = vrot.slane %v1251_v33, 4  ;;  %v4856_v20 = vld [vmem:[#allocation2 + $0x10] sm:$0xf]  ;;  %v1606_v23 = vld [vmem:[#allocation2 + $0x20] sm:$0xe] }
 0x17a   :  { %1910 = vrot.lane.b32.xlu1 %v1893_v1, %s4120_s23  ;;  %2360 = vrot.lane.b32.xlu0 %v3746_v30, %s4123_s20  ;;  %1417 = vst [vmem:[#allocation2 + $0x38] sm:$0xf] %v1416_v40  ;;  %1420 = vst [vmem:[#allocation2 + $0x3c] sm:$0x1] %v1419_v43  ;;  %v1275_v46 = vrot.slane %v1273_v36, 7  ;;  %v1257_v50 = vshrl.u32 %v3851_v37, 16  ;;  %v3731_v61 = vcombine.low %v1558_v39, %v4830_v8 }
 0x17b   :  { %v1404_v56 = vsel %vm4693_vm10, %v1254_v12, %v1403_v54  ;;  %v1407_v57 = vsel %vm4638_vm8, %v1255_v44, %v1406_v25  ;;  %v1260_v47 = vshll.u32 %v3851_v37, 16  ;;  %v1476_v1 = vld [vmem:[#allocation2 + $0x8] sm:$0xf]  ;;  %v2083_v2 = vshrl.u32 %v4805_v49, 16  ;;  %v1590_v49 = vld [vmem:[#allocation2 + $0x24] sm:$0x1] }
 0x17c   :  { %1405 = vst [vmem:[#allocation2 + $0x28] sm:$0xf] %v1404_v56  ;;  %1408 = vst [vmem:[#allocation2 + $0x2c] sm:$0x1] %v1407_v57  ;;  %v1278_v63 = vor.u32 %v1276_v48, %v1275_v46  ;;  %v1279_v0 = vrot.slane %v1275_v46, 4  ;;  %v1259_v30 = vrot.slane %v1257_v50, 7  ;;  %v3684_v16 = vcombine.low %v1511_v62, %v4846_v29 }
 0x17d   :  { %v2263_v4 = vrot.slane %v3731_v61, 1  ;;  %v2088_v14 = vor.u32 %v2087_v60, %v2083_v2  ;;  %v4859_v21 = vcombine.low %v1572_v35, %v4810_v53  ;;  %v3665_v26 = vcombine.low %v1476_v1, %v4795_v17  ;;  %v1509_v10 = vld [vmem:[#allocation2 + $0x10] sm:$0xe] }
 0x17e   :  { %1818 = vrot.lane.b32.xlu1 %v1727_v55, %s4121_s22  ;;  %2276 = vrot.lane.b32.xlu0 %v2260_v15, %s4125_s2  ;;  %v1422_v5 = vsel %vm4693_vm10, %v1278_v63, %v1421_v45  ;;  %v1425_v6 = vsel %vm4638_vm8, %v1279_v0, %v1424_v52  ;;  %v1262_v19 = vor.u32 %v1260_v47, %v1259_v30  ;;  %v1263_v13 = vrot.slane %v1259_v30, 4  ;;  %v4880_v15 = vld [vmem:[#allocation2 + $0x14] sm:$0x1] }
 0x17f   :  { %1423 = vst [vmem:[#allocation2 + $0x40] sm:$0xf] %v1422_v5  ;;  %1426 = vst [vmem:[#allocation2 + $0x44] sm:$0x1] %v1425_v6  ;;  %v3697_v53 = vcombine.low %v4856_v20, %v4856_v20  ;;  %v3778_v28 = vcombine.low %v1606_v23, %v1590_v49  ;;  %v1896_v31 = vrot.slane %v3684_v16, 1  ;;  %v4876_v17 = vcombine.low %v4799_v42, %v4830_v8 }
 0x180   :  { %v1410_v54 = vsel %vm4693_vm10, %v1262_v19, %v1409_v59  ;;  %v1413_v25 = vsel %vm4638_vm8, %v1263_v13, %v1412_v51  ;;  %v1710_v38 = vshll.u32 %v3665_v26, 16  ;;  %v4884_v40 = vcombine.low %v4797_v41, %v4816_v22  ;;  %v1479_v42 = vld [vmem:[#allocation2 + $0x20] sm:$0xf]  ;;  %v4894_v41 = vld [vmem:[#allocation2 + $0x14] sm:$0x1] }
 0x181   :  { %1411 = vst [vmem:[#allocation2 + $0x30] sm:$0xf] %v1410_v54  ;;  %1414 = vst [vmem:[#allocation2 + $0x34] sm:$0x1] %v1413_v25  ;;  %v4870_v27 = vld [vmem:[#allocation2 + $0x38] sm:$0xf]  ;;  %v3744_v48 = vcombine.low %v1572_v35, %v1572_v35  ;;  %v4891_v52 = vcombine.low %v4803_v34, %v1590_v49  ;;  %v3682_v50 = vcombine.low %v1509_v10, %v4880_v15 }
 0x182   :  { %2282 = vrot.lane.b32.xlu1 %v2263_v4, %s4125_s2  ;;  %2184 = vrot.lane.b32.xlu0 %v2088_v14, %s4126_s3  ;;  %v3901_v58 = vpop.f32.mrf.mxu0  ;;  %v3749_v43 = vcombine.low %v4870_v27, %v4870_v27  ;;  %v2630_v8 = vrot.slane %v3778_v28, 1  ;;  %v1712_v44 = vrot.slane %v1710_v38, 1  ;;  %v1556_v22 = vld [vmem:[#allocation2 + $0x10] sm:$0xe]  ;;  %v1708_v57 = vshrl.u32 %v3665_v26, 16 }
 0x183   :  { %v4872_v33 = vld [vmem:[#allocation2 + $0x2c] sm:$0x1]  ;;  %v1607_v36 = vld [vmem:[#allocation2 + $0x28] sm:$0xe]  ;;  %v987_v45 = vmul.f32 %v3901_v58, %v4757_v18  ;;  %v4898_v59 = vld [vmem:[#allocation2 + $0x38] sm:$0xf]  ;;  %v4903_v34 = vcombine.low %v1479_v42, %v4846_v29  ;;  %v3729_v30 = vcombine.low %v1556_v22, %v4894_v41 }
 0x184   :  { %v3779_v37 = vcombine.low %v1607_v36, %v4872_v33  ;;  %v939_v39 = vpop.f32.mrf.mxu0  ;;  %v2092_v60 = vshll.u32 %v4876_v17, 16  ;;  %v2071_v62 = vshll.u32 %v4884_v40, 16  ;;  %v1713_v0 = vor.u32 %v1712_v44, %v1708_v57  ;;  %v1439_v58 = vld [vmem:[#allocation2 + $0x68] sm:$0xf]  ;;  %v4929_v57 = vld [vmem:[#allocation2 + $0x3c] sm:$0x1] }
 0x185   :  { %v985_v55 = vmul.f32 %v4757_v18, %v939_v39  ;;  %v1010_v61 = vadd.f32 %v4762_v11, %v987_v45  ;;  %v1894_v1 = vrot.slane %v3682_v50, 1  ;;  %v3702_v29 = vcombine.low %v4898_v59, %v4898_v59  ;;  %v4923_v45 = vld [vmem:[#allocation2 + $0x28] sm:$0xf] }
 0x186   :  { %1990 = vrot.lane.b32.xlu1 %v3697_v53, %s4122_s1  ;;  %1916 = vrot.lane.b32.xlu0 %v1896_v31, %s4120_s23  ;;  %v2631_v12 = vrot.slane %v3779_v37, 1  ;;  %v3902_v46 = vpop.f32.mrf.mxu0  ;;  %v2094_v5 = vrot.slane %v2092_v60, 1  ;;  %v2453_v19 = vshll.u32 %v4891_v52, 16  ;;  %v2090_v14 = vshrl.u32 %v4876_v17, 16  ;;  %v1442_v31 = vld [vmem:[#allocation2 + $0x6c] sm:$0x1] }
 0x187   :  { %v1008_v63 = vadd.f32 %v4762_v11, %v985_v55  ;;  %v1026_v47 = vmax.f32 %v1010_v61, 0.0  ;;  %v988_v35 = vmul.f32 %v3902_v46, %v4757_v18  ;;  %v2073_v16 = vrot.slane %v2071_v62, 1  ;;  %v1427_v17 = vld [vmem:[#allocation2 + $0x58] sm:$0xf]  ;;  %v1445_v62 = vld [vmem:[#allocation2 + $0x70] sm:$0xf] }
 0x188   :  { %v3795_v56 = vcombine.low %v2630_v8, %v2631_v12  ;;  %v942_v51 = vpop.f32.mrf.mxu0  ;;  %v2261_v54 = vrot.slane %v3729_v30, 1  ;;  %v2069_v28 = vshrl.u32 %v4884_v40, 16  ;;  %v2095_v38 = vor.u32 %v2094_v5, %v2090_v14  ;;  %v1512_v14 = vld [vmem:[#allocation2 + $0x28] sm:$0xe] }
 0x189   :  { %v1024_v2 = vmax.f32 %v1008_v63, 0.0  ;;  %v986_v4 = vmul.f32 %v4757_v18, %v942_v51  ;;  %v3856_v6 = vpack.c.bf16 %v1026_v47, %v1026_v47  ;;  %v1011_v13 = vadd.f32 %v4762_v11, %v988_v35  ;;  %v1448_v63 = vld [vmem:[#allocation2 + $0x74] sm:$0x1]  ;;  %v1514_v47 = vld [vmem:[#allocation2 + $0x38] sm:$0xe] }
 0x18a   :  { %2366 = vrot.lane.b32.xlu1 %v3749_v43, %s4123_s20  ;;  %2356 = vrot.lane.b32.xlu0 %v3744_v48, %s4123_s20  ;;  %v1430_v43 = vld [vmem:[#allocation2 + $0x5c] sm:$0x1]  ;;  %v2455_v42 = vrot.slane %v2453_v19, 1  ;;  %v2074_v12 = vor.u32 %v2073_v16, %v2069_v28  ;;  %v1731_v46 = vshll.u32 %v4903_v34, 16  ;;  %v3747_v16 = vcombine.low %v4923_v45, %v4923_v45 }
 0x18b   :  { %3818 = vmatprep.mubr.msk.bf16.mxu1 %vm661_vm0, %v3795_v56  ;;  %v3854_v49 = vpack.c.bf16 %v1024_v2, %v1024_v2  ;;  %v1009_v23 = vadd.f32 %v4762_v11, %v986_v4  ;;  %v1297_v25 = vshrl.u32 %v3856_v6, 16  ;;  %v1300_v26 = vshll.u32 %v3856_v6, 16  ;;  %v4060_v48 = vld [vmem:[%s5950_s4 + $0x38] sm:$0xff]   ;;  %v1433_v2 = vld [vmem:[#allocation2 + $0x60] sm:$0xf] }
 0x18c   :  { %v1027_v53 = vmax.f32 %v1011_v13, 0.0  ;;  %3934 = vmatpush1.bf16.msra.mxu1 %v4060_v48  ;;  %3056 = vmatpush1.bf16.msra.mxu0 %v4060_v48  ;;  %v1436_v4 = vld [vmem:[#allocation2 + $0x64] sm:$0x1]  ;;  %v4943_v13 = vld [vmem:[#allocation2 + $0x2c] sm:$0x1]  ;;  %v1733_v28 = vrot.slane %v1731_v46, 1 }
 0x18d   :  { %v1281_v36 = vshrl.u32 %v3854_v49, 16  ;;  %v1284_v37 = vshll.u32 %v3854_v49, 16  ;;  %v1025_v10 = vmax.f32 %v1009_v23, 0.0  ;;  %v1299_v39 = vrot.slane %v1297_v25, 7  ;;  %3926 = vmatprep.subr.bf16.mxu1 %v4119_v3  ;;  %3057 = vmatprep.subr.bf16.mxu0 %v4119_v3 }
 0x18e   :  { %1814 = vrot.lane.b32.xlu1 %v1713_v0, %s4121_s22  ;;  %1912 = vrot.lane.b32.xlu0 %v1894_v1, %s4120_s23  ;;  %v3857_v8 = vpack.c.bf16 %v1027_v53, %v1027_v53  ;;  %v2451_v1 = vshrl.u32 %v4891_v52, 16  ;;  %v4062_v52 = vld [vmem:[%s5950_s4 + $0x30] sm:$0xff]  }
 0x18f   :  { %v1283_v44 = vrot.slane %v1281_v36, 7  ;;  %v3855_v40 = vpack.c.bf16 %v1025_v10, %v1025_v10  ;;  %v1302_v50 = vor.u32 %v1300_v26, %v1299_v39  ;;  %v1303_v22 = vrot.slane %v1299_v39, 4 }
 0x190   :  { %v1305_v55 = vshrl.u32 %v3857_v8, 16  ;;  %v1308_v56 = vshll.u32 %v3857_v8, 16  ;;  %v2456_v25 = vor.u32 %v2455_v42, %v2451_v1  ;;  %3935 = vmatpush1.bf16.msra.mxu1 %v4062_v52  ;;  %3058 = vmatpush1.bf16.msra.mxu0 %v4062_v52  ;;  %v1729_v39 = vshrl.u32 %v4903_v34, 16 }
 0x191   :  { %v1286_v60 = vor.u32 %v1284_v37, %v1283_v44  ;;  %v1287_v61 = vrot.slane %v1283_v44, 4  ;;  %v1289_v0 = vshrl.u32 %v3855_v40, 16  ;;  %v1292_v30 = vshll.u32 %v3855_v40, 16  ;;  %3927 = vmatprep.subr.bf16.mxu1 %v4119_v3  ;;  %3059 = vmatprep.subr.bf16.mxu0 %v4119_v3 }
 0x192   :  { %2278 = vrot.lane.b32.xlu1 %v2261_v54, %s4125_s2  ;;  %2000 = vrot.lane.b32.xlu0 %v3702_v29, %s4122_s1  ;;  %v1440_v35 = vsel %vm4693_vm10, %v1302_v50, %v1439_v58  ;;  %v1443_v51 = vsel %vm4638_vm8, %v1303_v22, %v1442_v31  ;;  %v1307_v29 = vrot.slane %v1305_v55, 7  ;;  %v3687_v54 = vcombine.low %v1514_v47, %v4929_v57  ;;  %v4066_v58 = vld [vmem:[%s5950_s4 + $0x28] sm:$0xff]   ;;  %v1477_v31 = vld [vmem:[#allocation2 + $0x10] sm:$0xf]  ;;  %v1482_v47 = vld [vmem:[#allocation2 + $0x38] sm:$0xf] }
 0x193   :  { %1441 = vst [vmem:[#allocation2 + $0x68] sm:$0xf] %v1440_v35  ;;  %1444 = vst [vmem:[#allocation2 + $0x6c] sm:$0x1] %v1443_v51  ;;  %v1428_v5 = vsel %vm4693_vm10, %v1286_v60, %v1427_v17  ;;  %v1431_v6 = vsel %vm4638_vm8, %v1287_v61, %v1430_v43  ;;  %v1291_v19 = vrot.slane %v1289_v0, 7  ;;  %v3713_v42 = vcombine.low %v4856_v20, %v4894_v41 }
 0x194   :  { %1429 = vst [vmem:[#allocation2 + $0x58] sm:$0xf] %v1428_v5  ;;  %1432 = vst [vmem:[#allocation2 + $0x5c] sm:$0x1] %v1431_v6  ;;  %v1310_v49 = vor.u32 %v1308_v56, %v1307_v29  ;;  %v1311_v23 = vrot.slane %v1307_v29, 4  ;;  %v1899_v8 = vrot.slane %v3687_v54, 1  ;;  %v3685_v44 = vcombine.low %v1512_v14, %v4943_v13  ;;  %3936 = vmatpush1.bf16.msra.mxu1 %v4066_v58 }
 0x195   :  { %v1294_v26 = vor.u32 %v1292_v30, %v1291_v19  ;;  %v1295_v53 = vrot.slane %v1291_v19, 4  ;;  %v4967_v17 = vld [vmem:[#allocation2 + $0x3c] sm:$0x1]  ;;  %v1561_v43 = vld [vmem:[#allocation2 + $0x38] sm:$0xe]  ;;  %v4974_v40 = vcombine.low %v1477_v31, %v4880_v15  ;;  %v1734_v46 = vor.u32 %v1733_v28, %v1729_v39  ;;  %3928 = vmatprep.subr.bf16.mxu1 %v4119_v3  ;;  %3060 = vmatpush1.bf16.msra.mxu0 %v4066_v58  ;;  %v4069_v30 = vld [vmem:[%s5950_s4 + $0x20] sm:$0xff]  }
 0x196   :  { %2186 = vrot.lane.b32.xlu1 %v2095_v38, %s4126_s3  ;;  %2180 = vrot.lane.b32.xlu0 %v2074_v12, %s4126_s3  ;;  %v1446_v36 = vsel %vm4693_vm10, %v1310_v49, %v1445_v62  ;;  %v1449_v37 = vsel %vm4638_vm8, %v1311_v23, %v1448_v63  ;;  %v4978_v50 = vld [vmem:[#allocation2 + $0x28] sm:$0xf]  ;;  %v1897_v15 = vrot.slane %v3685_v44, 1  ;;  %v3734_v22 = vcombine.low %v1561_v43, %v4967_v17  ;;  %v4986_v56 = vld [vmem:[#allocation2 + $0x3c] sm:$0x1] }
 0x197   :  { %1447 = vst [vmem:[#allocation2 + $0x70] sm:$0xf] %v1446_v36  ;;  %1450 = vst [vmem:[#allocation2 + $0x74] sm:$0x1] %v1449_v37  ;;  %v1434_v10 = vsel %vm4693_vm10, %v1294_v26, %v1433_v2  ;;  %v1437_v38 = vsel %vm4638_vm8, %v1295_v53, %v1436_v4  ;;  %v2078_v55 = vshll.u32 %v3713_v42, 16  ;;  %3061 = vmatprep.subr.bf16.mxu0 %v4119_v3  ;;  %v1717_v0 = vshll.u32 %v4974_v40, 16 }
 0x198   :  { %1435 = vst [vmem:[#allocation2 + $0x60] sm:$0xf] %v1434_v10  ;;  %1438 = vst [vmem:[#allocation2 + $0x64] sm:$0x1] %v1437_v38  ;;  %v3700_v62 = vcombine.low %v4978_v50, %v4978_v50  ;;  %v4991_v63 = vld [vmem:[#allocation2 + $0x40] sm:$0xf]  ;;  %v5001_v1 = vcombine.low %v4870_v27, %v4986_v56  ;;  %3937 = vmatpush1.bf16.msra.mxu1 %v4069_v30  ;;  %v5016_v53 = vcombine.low %v1482_v47, %v4929_v57 }
 0x199   :  { %v2266_v29 = vrot.slane %v3734_v22, 1  ;;  %v3703_v2 = vcombine.low %v4991_v63, %v4991_v63  ;;  %v2080_v4 = vrot.slane %v2078_v55, 1  ;;  %v5005_v5 = vld [vmem:[#allocation2 + $0x2c] sm:$0x1]  ;;  %v4072_v6 = vld [vmem:[%s5950_s4 + $0x18] sm:$0xff]   ;;  %3062 = vmatpush1.bf16.msra.mxu0 %v4069_v30  ;;  %3929 = vmatprep.subr.bf16.mxu1 %v4119_v3  ;;  %v2076_v27 = vshrl.u32 %v3713_v42, 16 }
 0x19a   :  { %2362 = vrot.lane.b32.xlu1 %v3747_v16, %s4123_s20  ;;  %2552 = vrot.lane.b32.xlu0 %v2456_v25, %s4124_s21  ;;  %v3905_v12 = vpop.f32.mrf.mxu0  ;;  %v1719_v16 = vrot.slane %v1717_v0, 1  ;;  %v1559_v49 = vld [vmem:[#allocation2 + $0x28] sm:$0xe]  ;;  %v1715_v26 = vshrl.u32 %v4974_v40, 16  ;;  %v1466_v58 = vld [vmem:[#allocation2 + $0x8c] sm:$0x1] }
 0x19b   :  { %v991_v34 = vmul.f32 %v3905_v12, %v4757_v18  ;;  %3063 = vmatprep.subr.bf16.mxu0 %v4119_v3  ;;  %v1463_v28 = vld [vmem:[#allocation2 + $0x88] sm:$0xf]  ;;  %v2081_v31 = vor.u32 %v2080_v4, %v2076_v27  ;;  %v3732_v36 = vcombine.low %v1559_v49, %v5005_v5  ;;  %v2474_v37 = vshll.u32 %v5001_v1, 16  ;;  %v4075_v10 = vld [vmem:[%s5950_s4 + $0x10] sm:$0xff]   ;;  %v1451_v57 = vld [vmem:[#allocation2 + $0x78] sm:$0xf] }
 0x19c   :  { %v955_v48 = vpop.f32.mrf.mxu0  ;;  %3938 = vmatpush1.bf16.msra.mxu1 %v4072_v6  ;;  %v1720_v42 = vor.u32 %v1719_v16, %v1715_v26  ;;  %v1454_v12 = vld [vmem:[#allocation2 + $0x7c] sm:$0x1]  ;;  %v4076_v22 = vld [vmem:[%s5950_s4 + $0x8] sm:$0xff]   ;;  %v5047_v0 = vld [vmem:[#allocation2 + $0x40] sm:$0xf]  ;;  %v2472_v30 = vshrl.u32 %v5001_v1, 16 }
 0x19d   :  { %v1014_v20 = vadd.f32 %v4762_v11, %v991_v34  ;;  %v989_v41 = vmul.f32 %v4757_v18, %v955_v48  ;;  %3064 = vmatpush1.bf16.msra.mxu0 %v4072_v6  ;;  %3930 = vmatprep.subr.bf16.mxu1 %v4119_v3  ;;  %v1480_v47 = vld [vmem:[#allocation2 + $0x28] sm:$0xf]  ;;  %v4079_v1 = vld [vmem:[%s5950_s4] sm:$0xff]   ;;  %v3716_v6 = vcombine.low %v4978_v50, %v5005_v5 }
 0x19e   :  { %1922 = vrot.lane.b32.xlu1 %v1899_v8, %s4120_s23  ;;  %1820 = vrot.lane.b32.xlu0 %v1734_v46, %s4121_s22  ;;  %v5023_v8 = vld [vmem:[#allocation2 + $0x30] sm:$0xf]  ;;  %v3906_v48 = vpop.f32.mrf.mxu0  ;;  %v5074_v49 = vcombine.low %v1480_v47, %v4943_v13 }
 0x19f   :  { %v1030_v60 = vmax.f32 %v1014_v20, 0.0  ;;  %v1012_v61 = vadd.f32 %v4762_v11, %v989_v41  ;;  %3065 = vmatprep.subr.bf16.mxu0 %v4119_v3  ;;  %v3701_v20 = vcombine.low %v5023_v8, %v5023_v8  ;;  %v2476_v41 = vrot.slane %v2474_v37, 1 }
 0x1a0   :  { %3939 = vmatpush1.bf16.msra.mxu1 %v4075_v10  ;;  %v992_v4 = vmul.f32 %v3906_v48, %v4757_v18  ;;  %v2099_v26 = vshll.u32 %v3716_v6, 16 }
 0x1a1   :  { %v3860_v35 = vpack.c.bf16 %v1030_v60, %v1030_v60  ;;  %v1028_v51 = vmax.f32 %v1012_v61, 0.0  ;;  %3066 = vmatpush1.bf16.msra.mxu0 %v4075_v10  ;;  %v3718_v61 = vcombine.low %v4898_v59, %v4967_v17  ;;  %3931 = vmatprep.subr.bf16.mxu1 %v4119_v3  ;;  %v5054_v59 = vcombine.low %v4923_v45, %v4872_v33  ;;  %v5066_v33 = vld [vmem:[#allocation2 + $0x30] sm:$0xf] }
 0x1a2   :  { %1918 = vrot.lane.b32.xlu1 %v1897_v15, %s4120_s23  ;;  %1996 = vrot.lane.b32.xlu0 %v3700_v62, %s4122_s1  ;;  %v1752_v15 = vshll.u32 %v5016_v53, 16  ;;  %v2264_v62 = vrot.slane %v3732_v36, 1  ;;  %v2477_v17 = vor.u32 %v2476_v41, %v2472_v30  ;;  %v1472_v41 = vld [vmem:[#allocation2 + $0x94] sm:$0x1] }
 0x1a3   :  { %v1329_v19 = vshrl.u32 %v3860_v35, 16  ;;  %v1332_v14 = vshll.u32 %v3860_v35, 16  ;;  %v3858_v52 = vpack.c.bf16 %v1028_v51, %v1028_v51  ;;  %3067 = vmatprep.subr.bf16.mxu0 %v4119_v3  ;;  %v958_v35 = vpop.f32.mrf.mxu0  ;;  %v2113_v45 = vshll.u32 %v3718_v61, 16 }
 0x1a4   :  { %v1754_v51 = vrot.slane %v1752_v15, 1  ;;  %3940 = vmatpush1.bf16.msra.mxu1 %v4076_v22  ;;  %v990_v16 = vmul.f32 %v4757_v18, %v958_v35  ;;  %v2460_v27 = vshll.u32 %v5054_v59, 16  ;;  %v3748_v18 = vcombine.low %v5066_v33, %v5066_v33 }
 0x1a5   :  { %v1331_v23 = vrot.slane %v1329_v19, 7  ;;  %v1313_v54 = vshrl.u32 %v3858_v52, 16  ;;  %v1316_v25 = vshll.u32 %v3858_v52, 16  ;;  %v3750_v19 = vcombine.low %v5047_v0, %v5047_v0  ;;  %3932 = vmatprep.subr.bf16.mxu1 %v4119_v3  ;;  %3068 = vmatpush1.bf16.msra.mxu0 %v4076_v22 }
 0x1a6   :  { %2002 = vrot.lane.b32.xlu1 %v3703_v2, %s4122_s1  ;;  %2288 = vrot.lane.b32.xlu0 %v2266_v29, %s4125_s2  ;;  %v5056_v29 = vld [vmem:[#allocation2 + $0x44] sm:$0x1]  ;;  %v1562_v2 = vld [vmem:[#allocation2 + $0x40] sm:$0xe]  ;;  %v1015_v52 = vadd.f32 %v4762_v11, %v992_v4  ;;  %v2115_v13 = vrot.slane %v2113_v45, 1  ;;  %v2462_v36 = vrot.slane %v2460_v27, 1 }
 0x1a7   :  { %v1334_v38 = vor.u32 %v1332_v14, %v1331_v23  ;;  %v1335_v39 = vrot.slane %v1331_v23, 4  ;;  %v1315_v43 = vrot.slane %v1313_v54, 7  ;;  %v1750_v14 = vshrl.u32 %v5016_v53, 16  ;;  %3069 = vmatprep.subr.bf16.mxu0 %v4119_v3  ;;  %v1592_v27 = vld [vmem:[#allocation2 + $0x34] sm:$0x1] }
 0x1a8   :  { %v3735_v50 = vcombine.low %v1562_v2, %v5056_v29  ;;  %v1031_v23 = vmax.f32 %v1015_v52, 0.0  ;;  %v1013_v54 = vadd.f32 %v4762_v11, %v990_v16  ;;  %3941 = vmatpush1.bf16.msra.mxu1 %v4079_v1  ;;  %v2111_v11 = vshrl.u32 %v3718_v61, 16  ;;  %v1457_v61 = vld [vmem:[#allocation2 + $0x80] sm:$0xf] }
 0x1a9   :  { %v1464_v44 = vsel %vm4693_vm10, %v1334_v38, %v1463_v28  ;;  %v1467_v40 = vsel %vm4638_vm8, %v1335_v39, %v1466_v58  ;;  %v1318_v46 = vor.u32 %v1316_v25, %v1315_v43  ;;  %v1319_v34 = vrot.slane %v1315_v43, 4  ;;  %v4082_v25 = vld [vmem:[%s5950_s4 + $0x40] sm:$0xff]   ;;  %3933 = vmatprep.subr.bf16.mxu1 %v4119_v3  ;;  %3070 = vmatpush1.bf16.msra.mxu0 %v4079_v1 }
 0x1aa   :  { %2182 = vrot.lane.b32.xlu1 %v2081_v31, %s4126_s3  ;;  %1816 = vrot.lane.b32.xlu0 %v1720_v42, %s4121_s22  ;;  %1465 = vst [vmem:[#allocation2 + $0x88] sm:$0xf] %v1464_v44  ;;  %1468 = vst [vmem:[#allocation2 + $0x8c] sm:$0x1] %v1467_v40  ;;  %v1755_v5 = vor.u32 %v1754_v51, %v1750_v14  ;;  %v3861_v53 = vpack.c.bf16 %v1031_v23, %v1031_v23  ;;  %v1029_v28 = vmax.f32 %v1013_v54, 0.0 }
 0x1ab   :  { %v1452_v55 = vsel %vm4693_vm10, %v1318_v46, %v1451_v57  ;;  %v1455_v60 = vsel %vm4638_vm8, %v1319_v34, %v1454_v12  ;;  %3085 = vmatprep.subr.bf16.mxu0 %v4119_v3  ;;  %v2267_v58 = vrot.slane %v3735_v50, 1  ;;  %v1738_v31 = vshll.u32 %v5074_v49, 16  ;;  %v5091_v39 = vld [vmem:[#allocation2 + $0x44] sm:$0x1]  ;;  %v5093_v57 = vld [vmem:[#allocation2 + $0x34] sm:$0x1] }
 0x1ac   :  { %1453 = vst [vmem:[#allocation2 + $0x78] sm:$0xf] %v1452_v55  ;;  %1456 = vst [vmem:[#allocation2 + $0x7c] sm:$0x1] %v1455_v60  ;;  %v1337_v37 = vshrl.u32 %v3861_v53, 16  ;;  %v1340_v10 = vshll.u32 %v3861_v53, 16  ;;  %v3859_v38 = vpack.c.bf16 %v1029_v28, %v1029_v28  ;;  %3942 = vmatpush2.bf16.msra.mxu1 %v4082_v25  ;;  %v2116_v43 = vor.u32 %v2115_v13, %v2111_v11  ;;  %v5124_v28 = vpop.permute.xlu0 %1828 }
 0x1ad   :  { %v2101_v42 = vrot.slane %v2099_v26, 1  ;;  %3086 = vmatpush2.bf16.msra.mxu0 %v4082_v25  ;;  %v2458_v3 = vshrl.u32 %v5054_v59, 16  ;;  %v1513_v12 = vld [vmem:[#allocation2 + $0x30] sm:$0xe]  ;;  %v2097_v34 = vshrl.u32 %v3716_v6, 16  ;;  %v1740_v48 = vrot.slane %v1738_v31, 1 }
 0x1ae   :  { %1998 = vrot.lane.b32.xlu1 %v3701_v20, %s4122_s1  ;;  %2284 = vrot.lane.b32.xlu0 %v2264_v62, %s4125_s2  ;;  %v1339_v44 = vrot.slane %v1337_v37, 7  ;;  %v1321_v40 = vshrl.u32 %v3859_v38, 16  ;;  %v1324_v46 = vshll.u32 %v3859_v38, 16  ;;  %v1469_v20 = vld [vmem:[#allocation2 + $0x90] sm:$0xf]  ;;  %v3766_v30 = vcombine.low %v5047_v0, %v5091_v39  ;;  %5976 = vst [vmem:[#allocation3_spill] sm:$0xff] %v5124_v28 }
 0x1af   :  { %v2463_v15 = vor.u32 %v2462_v36, %v2458_v3  ;;  %v1460_v62 = vld [vmem:[#allocation2 + $0x84] sm:$0x1]  ;;  %v2102_v47 = vor.u32 %v2101_v42, %v2097_v34  ;;  %v1736_v35 = vshrl.u32 %v5074_v49, 16  ;;  %v3686_v59 = vcombine.low %v1513_v12, %v5093_v57  ;;  %v1560_v51 = vld [vmem:[#allocation2 + $0x30] sm:$0xe] }
 0x1b0   :  { %v1342_v22 = vor.u32 %v1340_v10, %v1339_v44  ;;  %v1343_v55 = vrot.slane %v1339_v44, 4  ;;  %v1323_v60 = vrot.slane %v1321_v40, 7  ;;  %v3719_v0 = vcombine.low %v4991_v63, %v5056_v29  ;;  %v5116_v50 = vld [vmem:[#allocation2 + $0x68] sm:$0xf]  ;;  %v5126_v31 = vld [vmem:[#allocation2 + $0x30] sm:$0xf]  ;;  %v5141_v40 = vpop.permute.xlu0 %1924 }
 0x1b1   :  { %v2481_v16 = vshll.u32 %v3766_v30, 16  ;;  %v1898_v49 = vrot.slane %v3686_v59, 1  ;;  %v3706_v32 = vcombine.low %v5116_v50, %v5116_v50  ;;  %v2479_v23 = vshrl.u32 %v3766_v30, 16  ;;  %v1581_v54 = vld [vmem:[#allocation2 + $0x68] sm:$0xf]  ;;  %5977 = vst [vmem:[#allocation4_spill] sm:$0xff] %v5141_v40 }
 0x1b2   :  { %2558 = vrot.lane.b32.xlu1 %v2477_v17, %s4124_s21  ;;  %2368 = vrot.lane.b32.xlu0 %v3750_v19, %s4123_s20  ;;  %v1544_v17 = vld [vmem:[#allocation2 + $0x34] sm:$0x1]  ;;  %v1470_v2 = vsel %vm4693_vm10, %v1342_v22, %v1469_v20  ;;  %v1473_v4 = vsel %vm4638_vm8, %v1343_v55, %v1472_v41  ;;  %v1326_v1 = vor.u32 %v1324_v46, %v1323_v60  ;;  %v1327_v6 = vrot.slane %v1323_v60, 4  ;;  %v1518_v11 = vld [vmem:[#allocation2 + $0x68] sm:$0xe] }
 0x1b3   :  { %1471 = vst [vmem:[#allocation2 + $0x90] sm:$0xf] %v1470_v2  ;;  %1474 = vst [vmem:[#allocation2 + $0x94] sm:$0x1] %v1473_v4  ;;  %v1741_v19 = vor.u32 %v1740_v48, %v1736_v35  ;;  %v3733_v45 = vcombine.low %v1560_v51, %v1544_v17  ;;  %v2120_v63 = vshll.u32 %v3719_v0, 16  ;;  %v3753_v13 = vcombine.low %v1581_v54, %v1581_v54  ;;  %v5145_v51 = vpop.permute.xlu1 %2370 }
 0x1b4   :  { %v1458_v14 = vsel %vm4693_vm10, %v1326_v1, %v1457_v61  ;;  %v1461_v52 = vsel %vm4638_vm8, %v1327_v6, %v1460_v62  ;;  %v3764_v26 = vcombine.low %v5066_v33, %v1592_v27  ;;  %v1565_v36 = vld [vmem:[#allocation2 + $0x68] sm:$0xe]  ;;  %v5130_v37 = vld [vmem:[#allocation2 + $0x6c] sm:$0x1]  ;;  %v3670_v3 = vcombine.low %v5126_v31, %v5093_v57  ;;  %v1608_v34 = vld [vmem:[#allocation2 + $0x30] sm:$0xe] }
 0x1b5   :  { %1459 = vst [vmem:[#allocation2 + $0x80] sm:$0xf] %v1458_v14  ;;  %1462 = vst [vmem:[#allocation2 + $0x84] sm:$0x1] %v1461_v52  ;;  %v2265_v29 = vrot.slane %v3733_v45, 1  ;;  %v2122_v25 = vrot.slane %v2120_v63, 1  ;;  %v3691_v33 = vcombine.low %v1518_v11, %v5130_v37  ;;  %v3780_v59 = vcombine.low %v1608_v34, %v1592_v27 }
 0x1b6   :  { %1826 = vrot.lane.b32.xlu1 %v1755_v5, %s4121_s22  ;;  %2364 = vrot.lane.b32.xlu0 %v3748_v18, %s4123_s20  ;;  %v2483_v5 = vrot.slane %v2481_v16, 1  ;;  %v3717_v18 = vcombine.low %v5023_v8, %v1544_v17  ;;  %v5132_v8 = vld [vmem:[#allocation2 + $0x58] sm:$0xf]  ;;  %v2467_v42 = vshll.u32 %v3764_v26, 16  ;;  %v1611_v46 = vld [vmem:[#allocation2 + $0x48] sm:$0xe] }
 0x1b7   :  { %v3704_v12 = vcombine.low %v5132_v8, %v5132_v8  ;;  %v1903_v20 = vrot.slane %v3691_v33, 1  ;;  %v1745_v22 = vshll.u32 %v3670_v3, 16  ;;  %v1516_v55 = vld [vmem:[#allocation2 + $0x58] sm:$0xe]  ;;  %v1610_v57 = vld [vmem:[#allocation2 + $0x40] sm:$0xe] }
 0x1b8   :  { %v2484_v53 = vor.u32 %v2483_v5, %v2479_v23  ;;  %v2106_v10 = vshll.u32 %v3717_v18, 16  ;;  %v2469_v41 = vrot.slane %v2467_v42, 1  ;;  %v1609_v60 = vld [vmem:[#allocation2 + $0x38] sm:$0xe]  ;;  %v2104_v61 = vshrl.u32 %v3717_v18, 16  ;;  %v5171_v18 = vpop.permute.xlu1 %2562 }
 0x1b9   :  { %v2465_v62 = vshrl.u32 %v3764_v26, 16  ;;  %v1500_v30 = vld [vmem:[#allocation2 + $0x5c] sm:$0x1]  ;;  %v3781_v4 = vcombine.low %v1609_v60, %v4986_v56  ;;  %v3782_v1 = vcombine.low %v1610_v57, %v5091_v39  ;;  %v5149_v6 = vld [vmem:[#allocation2 + $0x6c] sm:$0x1]  ;;  %v1747_v45 = vrot.slane %v1745_v22, 1 }
 0x1ba   :  { %2290 = vrot.lane.b32.xlu1 %v2267_v58, %s4125_s2  ;;  %2192 = vrot.lane.b32.xlu0 %v2116_v43, %s4126_s3  ;;  %v2118_v58 = vshrl.u32 %v3719_v0, 16  ;;  %v1549_v43 = vld [vmem:[#allocation2 + $0x6c] sm:$0x1]  ;;  %v2108_v48 = vrot.slane %v2106_v10, 1  ;;  %v3689_v2 = vcombine.low %v1516_v55, %v1500_v30  ;;  %v1563_v14 = vld [vmem:[#allocation2 + $0x58] sm:$0xe]  ;;  %v5160_v56 = vcombine.low %v1581_v54, %v5149_v6 }
 0x1bb   :  { %v3738_v44 = vcombine.low %v1565_v36, %v1549_v43  ;;  %v2470_v0 = vor.u32 %v2469_v41, %v2465_v62  ;;  %v1743_v52 = vshrl.u32 %v3670_v3, 16  ;;  %v1547_v63 = vld [vmem:[#allocation2 + $0x5c] sm:$0x1]  ;;  %v5164_v5 = vrot.slane %v3782_v1, 1  ;;  %v1111_v54 = vld [vmem:[#allocation2 + $0x98] sm:$0x1] }
 0x1bc   :  { %v2123_v38 = vor.u32 %v2122_v25, %v2118_v58  ;;  %v2109_v17 = vor.u32 %v2108_v48, %v2104_v61  ;;  %v1901_v39 = vrot.slane %v3689_v2, 1  ;;  %v3736_v23 = vcombine.low %v1563_v14, %v1547_v63  ;;  %v5169_v25 = vld [vmem:[#allocation2 + $0x58] sm:$0xf]  ;;  %v5181_v11 = vld [vmem:[#allocation2 + $0x70] sm:$0xf] }
 0x1bd   :  { %v1748_v27 = vor.u32 %v1747_v45, %v1743_v52  ;;  %5980 = vst [vmem:[#allocation7_spill] sm:$0xff] %v5169_v25  ;;  %v5176_v26 = vcombine.low %v5116_v50, %v1549_v43  ;;  %v5183_v58 = vld [vmem:[#allocation2 + $0x60] sm:$0xf]  ;;  %v1173_v36 = vld [vmem:[#allocation2 + $0x9c] sm:$0x1]  ;;  %v2502_v50 = vshll.u32 %v5160_v56, 16  ;;  %v5201_v48 = vcombine.low %v5169_v25, %v1500_v30 }
 0x1be   :  { %2554 = vrot.lane.b32.xlu1 %v2463_v15, %s4124_s21  ;;  %2188 = vrot.lane.b32.xlu0 %v2102_v47, %s4126_s3  ;;  %v2270_v15 = vrot.slane %v3738_v44, 1  ;;  %v4094_v47 = vld [vmem:[#allocation2 + $0x4c] sm:$0x1]  ;;  %v1612_v10 = vld [vmem:[#allocation2 + $0x60] sm:$0xe]  ;;  %v2268_v44 = vrot.slane %v3736_v23, 1  ;;  %v3705_v41 = vcombine.low %v5183_v58, %v5183_v58 }
 0x1bf   :  { %v3783_v35 = vcombine.low %v1611_v46, %v4094_v47  ;;  %v5191_v42 = vld [vmem:[#allocation2 + $0x64] sm:$0x1]  ;;  %v5194_v43 = vld [vmem:[#allocation2 + $0x7c] sm:$0x1]  ;;  %v1112_v46 = vsel %vm4638_vm8, 0, %v1111_v54  ;;  %v2500_v60 = vshrl.u32 %v5160_v56, 16 }
 0x1c0   :  { %v1614_v34 = vld [vmem:[#allocation2 + $0x70] sm:$0xe]  ;;  %1113 = vst [vmem:[#allocation2 + $0x98] sm:$0x1] %v1112_v46  ;;  %v1616_v22 = vld [vmem:[#allocation2 + $0x80] sm:$0xe]  ;;  %v3784_v30 = vcombine.low %v1612_v10, %v5191_v42 }
 0x1c1   :  { %v5155_v16 = vrot.slane %v3783_v35, 1  ;;  %v1617_v7 = vld [vmem:[#allocation2 + $0x88] sm:$0xe]  ;;  %v5211_v55 = vld [vmem:[#allocation2 + $0x74] sm:$0x1]  ;;  %v2141_v57 = vshll.u32 %v5176_v26, 16 }
 0x1c2   :  { %1822 = vrot.lane.b32.xlu1 %v1741_v19, %s4121_s22  ;;  %1920 = vrot.lane.b32.xlu0 %v1898_v49, %s4120_s23  ;;  %v5151_v19 = vpop.permute.xlu0 %1812  ;;  %v5157_v49 = vrot.slane %v3780_v59, 1  ;;  %v5215_v61 = vld [vmem:[#allocation2 + $0x8c] sm:$0x1]  ;;  %v2504_v47 = vrot.slane %v2502_v50, 1  ;;  %v5223_v59 = vld [vmem:[#allocation2 + $0x84] sm:$0x1]  ;;  %v3786_v2 = vcombine.low %v1614_v34, %v5211_v55 }
 0x1c3   :  { %5978 = vst [vmem:[#allocation5_spill] sm:$0xff] %v5151_v19  ;;  %v5231_v45 = vrot.slane %v3784_v30, 1  ;;  %v3788_v52 = vcombine.low %v1616_v22, %v5223_v59  ;;  %v3789_v56 = vcombine.low %v1617_v7, %v5215_v61  ;;  %v1619_v34 = vld [vmem:[#allocation2 + $0x98] sm:$0xe]  ;;  %v1550_v30 = vld [vmem:[#allocation2 + $0x74] sm:$0x1] }
 0x1c4   :  { %v5246_v54 = vrot.slane %v3786_v2, 1  ;;  %v2505_v50 = vor.u32 %v2504_v47, %v2500_v60  ;;  %v5302_v62 = vld [vmem:[#allocation2 + $0x70] sm:$0xf] }
 0x1c5   :  { %v5251_v10 = vrot.slane %v3788_v52, 1  ;;  %5993 = vst [vmem:[#allocation20_spill] sm:$0xff] %v5302_v62  ;;  %v4095_v25 = vld [vmem:[#allocation2 + $0x10] sm:$0xf] }
 0x1c6   :  { %2286 = vrot.lane.b32.xlu1 %v2265_v29, %s4125_s2  ;;  %2008 = vrot.lane.b32.xlu0 %v3706_v32, %s4122_s1  ;;  %v5162_v29 = vrot.slane %v3781_v4, 1  ;;  %v5166_v32 = vld [vmem:[#allocation2 + $0x68] sm:$0xf]  ;;  %v1618_v4 = vld [vmem:[#allocation2 + $0x90] sm:$0xe]  ;;  %5984 = vst [vmem:[#allocation11_spill] sm:$0xff] %v5246_v54 }
 0x1c7   :  { %5979 = vst [vmem:[#allocation6_spill] sm:$0xff] %v5166_v32  ;;  %5986 = vst [vmem:[#allocation13_spill] sm:$0xff] %v5251_v10  ;;  %v5398_v10 = vld [vmem:[#allocation2 + $0x78] sm:$0xf] }
 0x1c8   :  { %6001 = vst [vmem:[#allocation28_spill] sm:$0xff] %v5398_v10 }
 0x1ca   :  { %2374 = vrot.lane.b32.xlu1 %v3753_v13, %s4123_s20  ;;  %2560 = vrot.lane.b32.xlu0 %v2484_v53, %s4124_s21  ;;  %v5173_v13 = vld [vmem:[#allocation2 + $0x70] sm:$0xf]  ;;  %v5179_v53 = vpop.permute.xlu0 %1908 }
 0x1cb   :  { %5981 = vst [vmem:[#allocation8_spill] sm:$0xff] %v5179_v53  ;;  %v3707_v33 = vcombine.low %v5173_v13, %v5173_v13 }
 0x1ce   :  { %2194 = vrot.lane.b32.xlu1 %v2123_v38, %s4126_s3  ;;  %2004 = vrot.lane.b32.xlu0 %v3704_v12, %s4122_s1  ;;  %v5187_v38 = vcombine.low %v5166_v32, %v5130_v37  ;;  %v1613_v12 = vld [vmem:[#allocation2 + $0x68] sm:$0xe]  ;;  %v1615_v37 = vld [vmem:[#allocation2 + $0x78] sm:$0xe]  ;;  %v1505_v32 = vld [vmem:[#allocation2 + $0x84] sm:$0x1] }
 0x1cf   :  { %v3787_v14 = vcombine.low %v1615_v37, %v5194_v43 }
 0x1d0   :  { %v1780_v35 = vshll.u32 %v5187_v38, 16 }
 0x1d2   :  { %1930 = vrot.lane.b32.xlu1 %v1903_v20, %s4120_s23  ;;  %2296 = vrot.lane.b32.xlu0 %v2270_v15, %s4125_s2  ;;  %v3754_v20 = vcombine.low %v5181_v11, %v5181_v11  ;;  %v1174_v15 = vsel %vm4644_vm9, 0, %v1173_v36  ;;  %v5249_v36 = vrot.slane %v3787_v14, 1 }
 0x1d3   :  { %1175 = vst [vmem:[#allocation2 + $0x9c] sm:$0x1] %v1174_v15  ;;  %v1566_v15 = vld [vmem:[#allocation2 + $0x70] sm:$0xe] }
 0x1d4   :  { %5985 = vst [vmem:[#allocation12_spill] sm:$0xff] %v5249_v36  ;;  %v3739_v2 = vcombine.low %v1566_v15, %v1550_v30 }
 0x1d6   :  { %2190 = vrot.lane.b32.xlu1 %v2109_v17, %s4126_s3  ;;  %2556 = vrot.lane.b32.xlu0 %v2470_v0, %s4124_s21  ;;  %v3785_v17 = vcombine.low %v1613_v12, %v5149_v6  ;;  %v5229_v0 = vld [vmem:[#allocation2 + $0x60] sm:$0xf]  ;;  %v1778_v12 = vshrl.u32 %v5187_v38, 16  ;;  %v1519_v38 = vld [vmem:[#allocation2 + $0x70] sm:$0xe] }
 0x1d7   :  { %v3752_v6 = vcombine.low %v5229_v0, %v5229_v0 }
 0x1d8   :  { %v5244_v23 = vrot.slane %v3785_v17, 1  ;;  %v1503_v17 = vld [vmem:[#allocation2 + $0x74] sm:$0x1] }
 0x1da   :  { %1926 = vrot.lane.b32.xlu1 %v1901_v39, %s4120_s23  ;;  %1824 = vrot.lane.b32.xlu0 %v1748_v27, %s4121_s22  ;;  %v5237_v39 = vcombine.low %v5132_v8, %v1547_v63  ;;  %v5242_v27 = vld [vmem:[#allocation2 + $0x94] sm:$0x1]  ;;  %5983 = vst [vmem:[#allocation10_spill] sm:$0xff] %v5244_v23  ;;  %v5269_v60 = vld [vmem:[#allocation2 + $0x9c] sm:$0x1] }
 0x1db   :  { %v3790_v8 = vcombine.low %v1618_v4, %v5242_v27  ;;  %v3791_v47 = vcombine.low %v1619_v34, %v5269_v60  ;;  %v1766_v4 = vshll.u32 %v5201_v48, 16  ;;  %v1521_v23 = vld [vmem:[#allocation2 + $0x80] sm:$0xe] }
 0x1dd   :  { %v5281_v7 = vrot.slane %v3791_v47, 1  ;;  %v1768_v34 = vrot.slane %v1766_v4, 1  ;;  %v1564_v47 = vld [vmem:[#allocation2 + $0x60] sm:$0xe]  ;;  %v1501_v4 = vld [vmem:[#allocation2 + $0x64] sm:$0x1] }
 0x1de   :  { %2010 = vrot.lane.b32.xlu1 %v3707_v33, %s4122_s1  ;;  %2292 = vrot.lane.b32.xlu0 %v2268_v44, %s4125_s2  ;;  %v5220_v9 = vpop.permute.xlu1 %2358  ;;  %v5253_v33 = vrot.slane %v3789_v56, 1  ;;  %v1782_v44 = vrot.slane %v1780_v35, 1  ;;  %v5273_v35 = vrot.slane %v3790_v8, 1  ;;  %v3692_v56 = vcombine.low %v1519_v38, %v1503_v17 }
 0x1df   :  { %5982 = vst [vmem:[#allocation9_spill] sm:$0xff] %v5220_v9  ;;  %5990 = vst [vmem:[#allocation17_spill] sm:$0xff] %v5281_v7 }
 0x1e0   :  { %v5227_v1 = vpop.permute.xlu0 %1992  ;;  %5987 = vst [vmem:[#allocation14_spill] sm:$0xff] %v5253_v33  ;;  %5988 = vst [vmem:[#allocation15_spill] sm:$0xff] %v5273_v35 }
 0x1e2   :  { %2006 = vrot.lane.b32.xlu1 %v3705_v41, %s4122_s1  ;;  %2376 = vrot.lane.b32.xlu0 %v3754_v20, %s4123_s20  ;;  %v2139_v20 = vshrl.u32 %v5176_v26, 16  ;;  %v2143_v41 = vrot.slane %v2141_v57, 1  ;;  %v1783_v57 = vor.u32 %v1782_v44, %v1778_v12  ;;  %v2271_v12 = vrot.slane %v3739_v2, 1 }
 0x1e3   :  { %v1764_v44 = vshrl.u32 %v5201_v48, 16 }
 0x1e4   :  { %v5256_v63 = vpop.permute.xlu1 %1914  ;;  %v5261_v37 = vpop.permute.xlu0 %2280  ;;  %v2144_v52 = vor.u32 %v2143_v41, %v2139_v20  ;;  %v1904_v20 = vrot.slane %v3692_v56, 1  ;;  %v2125_v41 = vshrl.u32 %v5237_v39, 16  ;;  %v3770_v56 = vcombine.low %v5181_v11, %v5211_v55  ;;  %v1585_v55 = vld [vmem:[#allocation2 + $0x88] sm:$0xf] }
 0x1e5   :  { %v1769_v2 = vor.u32 %v1768_v34, %v1764_v44  ;;  %v3676_v44 = vcombine.low %v5302_v62, %v1503_v17 }
 0x1e6   :  { %2566 = vrot.lane.b32.xlu1 %v2505_v50, %s4124_s21  ;;  %2372 = vrot.lane.b32.xlu0 %v3752_v6, %s4123_s20  ;;  %v2127_v50 = vshll.u32 %v5237_v39, 16  ;;  %v3723_v6 = vcombine.low %v5173_v13, %v1550_v30  ;;  %v2509_v11 = vshll.u32 %v3770_v56, 16 }
 0x1e7   :  { %v1787_v3 = vshll.u32 %v3676_v44, 16 }
 0x1e8   :  { %v5275_v26 = vpop.permute.xlu1 %1994  ;;  %v5278_v14 = vpop.permute.xlu0 %1988  ;;  %v2129_v38 = vrot.slane %v2127_v50, 1  ;;  %v2148_v30 = vshll.u32 %v3723_v6, 16 }
 0x1e9   :  { %5989 = vst [vmem:[#allocation16_spill] sm:$0xff] %v5278_v14  ;;  %v1789_v9 = vrot.slane %v1787_v3, 1  ;;  %v1520_v14 = vld [vmem:[#allocation2 + $0x78] sm:$0xe] }
 0x1ea   :  { %1834 = vrot.lane.b32.xlu1 %v1783_v57, %s4121_s22  ;;  %2200 = vrot.lane.b32.xlu0 %v2144_v52, %s4126_s3  ;;  %v1517_v57 = vld [vmem:[#allocation2 + $0x60] sm:$0xe]  ;;  %v1548_v52 = vld [vmem:[#allocation2 + $0x64] sm:$0x1]  ;;  %v2130_v39 = vor.u32 %v2129_v38, %v2125_v41  ;;  %v3757_v38 = vcombine.low %v1585_v55, %v1585_v55 }
 0x1eb   :  { %v3737_v48 = vcombine.low %v1564_v47, %v1548_v52  ;;  %v3690_v50 = vcombine.low %v1517_v57, %v1501_v4  ;;  %v5315_v47 = vld [vmem:[#allocation2 + $0x88] sm:$0xf]  ;;  %v2146_v57 = vshrl.u32 %v3723_v6, 16 }
 0x1ec   :  { %v5287_v8 = vpop.permute.xlu1 %1910  ;;  %v5290_v15 = vpop.permute.xlu0 %2360  ;;  %v3710_v17 = vcombine.low %v5315_v47, %v5315_v47 }
 0x1ed   :  { %5991 = vst [vmem:[#allocation18_spill] sm:$0xff] %v5287_v8  ;;  %v2269_v13 = vrot.slane %v3737_v48, 1 }
 0x1ee   :  { %2298 = vrot.lane.b32.xlu1 %v2271_v12, %s4125_s2  ;;  %1932 = vrot.lane.b32.xlu0 %v1904_v20, %s4120_s23  ;;  %v1902_v20 = vrot.slane %v3690_v50, 1  ;;  %v2511_v50 = vrot.slane %v2509_v11, 1  ;;  %v1506_v11 = vld [vmem:[#allocation2 + $0x8c] sm:$0x1] }
 0x1f0   :  { %v5296_v22 = vpop.permute.xlu1 %1818  ;;  %v5300_v46 = vpop.permute.xlu0 %2276 }
 0x1f1   :  { %5992 = vst [vmem:[#allocation19_spill] sm:$0xff] %v5300_v46  ;;  %v1522_v46 = vld [vmem:[#allocation2 + $0x88] sm:$0xe] }
 0x1f2   :  { %1830 = vrot.lane.b32.xlu1 %v1769_v2, %s4121_s22  ;;  %2196 = vrot.lane.b32.xlu0 %v2130_v39, %s4126_s3  ;;  %v2150_v2 = vrot.slane %v2148_v30, 1  ;;  %v2507_v39 = vshrl.u32 %v3770_v56, 16  ;;  %v1785_v30 = vshrl.u32 %v3676_v44, 16  ;;  %v5330_v56 = vld [vmem:[#allocation2 + $0x78] sm:$0xf] }
 0x1f4   :  { %v5306_v12 = vpop.permute.xlu1 %2282  ;;  %v5309_v34 = vpop.permute.xlu0 %2184  ;;  %v2151_v7 = vor.u32 %v2150_v2, %v2146_v57  ;;  %v2512_v6 = vor.u32 %v2511_v50, %v2507_v39  ;;  %v3768_v2 = vcombine.low %v5229_v0, %v5191_v42  ;;  %v1790_v3 = vor.u32 %v1789_v9, %v1785_v30  ;;  %v5344_v39 = vld [vmem:[#allocation2 + $0x78] sm:$0xf] }
 0x1f5   :  { %v3708_v9 = vcombine.low %v5344_v39, %v5344_v39 }
 0x1f6   :  { %2294 = vrot.lane.b32.xlu1 %v2269_v13, %s4125_s2  ;;  %1928 = vrot.lane.b32.xlu0 %v1902_v20, %s4120_s23  ;;  %v3721_v13 = vcombine.low %v5183_v58, %v1548_v52  ;;  %v3755_v58 = vcombine.low %v5330_v56, %v5330_v56  ;;  %v3695_v52 = vcombine.low %v1522_v46, %v1506_v11  ;;  %v2493_v53 = vshrl.u32 %v3768_v2, 16 }
 0x1f8   :  { %v5313_v41 = vpop.permute.xlu1 %1990  ;;  %v5317_v48 = vpop.permute.xlu0 %1916  ;;  %v2134_v57 = vshll.u32 %v3721_v13, 16  ;;  %v2132_v46 = vshrl.u32 %v3721_v13, 16 }
 0x1f9   :  { %5994 = vst [vmem:[#allocation21_spill] sm:$0xff] %v5313_v41  ;;  %v1553_v41 = vld [vmem:[#allocation2 + $0x8c] sm:$0x1] }
 0x1fa   :  { %2382 = vrot.lane.b32.xlu1 %v3757_v38, %s4123_s20  ;;  %2016 = vrot.lane.b32.xlu0 %v3710_v17, %s4122_s1  ;;  %v5340_v17 = vld [vmem:[#allocation2 + $0x60] sm:$0xf] }
 0x1fb   :  { %5997 = vst [vmem:[#allocation24_spill] sm:$0xff] %v5340_v17  ;;  %v3674_v42 = vcombine.low %v5340_v17, %v1501_v4 }
 0x1fc   :  { %v5324_v20 = vpop.permute.xlu1 %2366  ;;  %v5326_v35 = vpop.permute.xlu0 %2356 }
 0x1fd   :  { %5995 = vst [vmem:[#allocation22_spill] sm:$0xff] %v5326_v35  ;;  %v2136_v35 = vrot.slane %v2134_v57, 1  ;;  %v1773_v19 = vshll.u32 %v3674_v42, 16 }
 0x1fe   :  { %2202 = vrot.lane.b32.xlu1 %v2151_v7, %s4126_s3  ;;  %2568 = vrot.lane.b32.xlu0 %v2512_v6, %s4124_s21  ;;  %v1569_v7 = vld [vmem:[#allocation2 + $0x88] sm:$0xe]  ;;  %v1907_v6 = vrot.slane %v3695_v52, 1 }
 0x1ff   :  { %v3742_v30 = vcombine.low %v1569_v7, %v1553_v41  ;;  %v2137_v13 = vor.u32 %v2136_v35, %v2132_v46  ;;  %v3773_v7 = vcombine.low %v1585_v55, %v5215_v61  ;;  %v1775_v46 = vrot.slane %v1773_v19, 1 }
 0x200   :  { %v5332_v38 = vpop.permute.xlu1 %1814  ;;  %v5338_v44 = vpop.permute.xlu0 %1912 }
 0x201   :  { %5996 = vst [vmem:[#allocation23_spill] sm:$0xff] %v5332_v38  ;;  %v2274_v4 = vrot.slane %v3742_v30, 1  ;;  %v5364_v38 = vld [vmem:[#allocation2 + $0x88] sm:$0xf]  ;;  %v5370_v30 = vld [vmem:[#allocation2 + $0x90] sm:$0xf] }
 0x202   :  { %2378 = vrot.lane.b32.xlu1 %v3755_v58, %s4123_s20  ;;  %1836 = vrot.lane.b32.xlu0 %v1790_v3, %s4121_s22  ;;  %v2495_v58 = vshll.u32 %v3768_v2, 16  ;;  %v1504_v3 = vld [vmem:[#allocation2 + $0x7c] sm:$0x1]  ;;  %6000 = vst [vmem:[#allocation27_spill] sm:$0xff] %v5364_v38  ;;  %v1567_v2 = vld [vmem:[#allocation2 + $0x78] sm:$0xe]  ;;  %v3711_v55 = vcombine.low %v5370_v30, %v5370_v30 }
 0x203   :  { %v3693_v52 = vcombine.low %v1520_v14, %v1504_v3  ;;  %v1771_v14 = vshrl.u32 %v3674_v42, 16 }
 0x204   :  { %v5346_v50 = vpop.permute.xlu1 %2278  ;;  %v5349_v0 = vpop.permute.xlu0 %2000  ;;  %v2497_v8 = vrot.slane %v2495_v58, 1  ;;  %v3679_v58 = vcombine.low %v5364_v38, %v1506_v11  ;;  %v3726_v38 = vcombine.low %v5315_v47, %v1553_v41 }
 0x205   :  { %5998 = vst [vmem:[#allocation25_spill] sm:$0xff] %v5346_v50 }
 0x206   :  { %1938 = vrot.lane.b32.xlu1 %v1907_v6, %s4120_s23  ;;  %2012 = vrot.lane.b32.xlu0 %v3708_v9, %s4122_s1  ;;  %v1905_v9 = vrot.slane %v3693_v52, 1  ;;  %v2498_v35 = vor.u32 %v2497_v8, %v2493_v53  ;;  %v2530_v52 = vshll.u32 %v3773_v7, 16  ;;  %v1776_v53 = vor.u32 %v1775_v46, %v1771_v14  ;;  %v5381_v8 = vld [vmem:[#allocation2 + $0x80] sm:$0xf] }
 0x207   :  { %v3709_v11 = vcombine.low %v5381_v8, %v5381_v8  ;;  %v3771_v46 = vcombine.low %v5330_v56, %v5194_v43  ;;  %v1554_v43 = vld [vmem:[#allocation2 + $0x94] sm:$0x1]  ;;  %v3677_v56 = vcombine.low %v5398_v10, %v1504_v3  ;;  %v2167_v36 = vshrl.u32 %v3726_v38, 16 }
 0x208   :  { %v5355_v50 = vpop.permute.xlu1 %2186  ;;  %v5357_v57 = vpop.permute.xlu0 %2180 }
 0x209   :  { %5999 = vst [vmem:[#allocation26_spill] sm:$0xff] %v5357_v57  ;;  %v1808_v57 = vshll.u32 %v3679_v58, 16 }
 0x20a   :  { %2198 = vrot.lane.b32.xlu1 %v2137_v13, %s4126_s3  ;;  %2304 = vrot.lane.b32.xlu0 %v2274_v4, %s4125_s2  ;;  %v1551_v13 = vld [vmem:[#allocation2 + $0x7c] sm:$0x1] }
 0x20b   :  { %v3740_v19 = vcombine.low %v1567_v2, %v1551_v13  ;;  %v3724_v41 = vcombine.low %v5344_v39, %v1551_v13  ;;  %v2516_v39 = vshll.u32 %v3771_v46, 16 }
 0x20c   :  { %v5362_v6 = vpop.permute.xlu1 %2362  ;;  %v5366_v62 = vpop.permute.xlu0 %2552 }
 0x20d   :  { %v2272_v14 = vrot.slane %v3740_v19, 1  ;;  %v2155_v40 = vshll.u32 %v3724_v41, 16  ;;  %v2518_v10 = vrot.slane %v2516_v39, 1  ;;  %v2153_v28 = vshrl.u32 %v3724_v41, 16  ;;  %v1568_v41 = vld [vmem:[#allocation2 + $0x80] sm:$0xe] }
 0x20e   :  { %1934 = vrot.lane.b32.xlu1 %v1905_v9, %s4120_s23  ;;  %2564 = vrot.lane.b32.xlu0 %v2498_v35, %s4124_s21  ;;  %v2528_v9 = vshrl.u32 %v3773_v7, 16  ;;  %v2532_v35 = vrot.slane %v2530_v52, 1  ;;  %v1806_v7 = vshrl.u32 %v3679_v58, 16  ;;  %v1810_v52 = vrot.slane %v1808_v57, 1  ;;  %v1584_v57 = vld [vmem:[#allocation2 + $0x80] sm:$0xf] }
 0x20f   :  { %v3756_v17 = vcombine.low %v1584_v57, %v1584_v57  ;;  %v4096_v39 = vld [vmem:[#allocation2 + $0x18] sm:$0xf] }
 0x210   :  { %v5373_v61 = vpop.permute.xlu1 %1922  ;;  %v5377_v4 = vpop.permute.xlu0 %1820 }
 0x212   :  { %2018 = vrot.lane.b32.xlu1 %v3711_v55, %s4122_s1  ;;  %1832 = vrot.lane.b32.xlu0 %v1776_v53, %s4121_s22  ;;  %v5396_v55 = vld [vmem:[#allocation2 + $0x90] sm:$0xf]  ;;  %v2533_v53 = vor.u32 %v2532_v35, %v2528_v9  ;;  %v1811_v9 = vor.u32 %v1810_v52, %v1806_v7  ;;  %v1794_v7 = vshll.u32 %v3677_v56, 16  ;;  %v5415_v52 = vld [vmem:[#allocation2 + $0x80] sm:$0xf] }
 0x213   :  { %v3758_v19 = vcombine.low %v5396_v55, %v5396_v55 }
 0x214   :  { %v5383_v42 = vpop.permute.xlu1 %1918  ;;  %v5388_v33 = vpop.permute.xlu0 %1996 }
 0x216   :  { %2014 = vrot.lane.b32.xlu1 %v3709_v11, %s4122_s1  ;;  %2300 = vrot.lane.b32.xlu0 %v2272_v14, %s4125_s2  ;;  %v1570_v11 = vld [vmem:[#allocation2 + $0x90] sm:$0xe]  ;;  %v2169_v14 = vshll.u32 %v3726_v38, 16 }
 0x217   :  { %v3743_v35 = vcombine.low %v1570_v11, %v1554_v43  ;;  %v3772_v11 = vcombine.low %v1584_v57, %v5223_v59  ;;  %v1796_v57 = vrot.slane %v1794_v7, 1 }
 0x218   :  { %v5394_v2 = vpop.permute.xlu1 %2002  ;;  %v5401_v47 = vpop.permute.xlu0 %2288  ;;  %v2171_v54 = vrot.slane %v2169_v14, 1 }
 0x219   :  { %v2275_v3 = vrot.slane %v3743_v35, 1  ;;  %v2521_v7 = vshrl.u32 %v3772_v11, 16 }
 0x21a   :  { %2574 = vrot.lane.b32.xlu1 %v2533_v53, %s4124_s21  ;;  %2384 = vrot.lane.b32.xlu0 %v3758_v19, %s4123_s20  ;;  %v2172_v14 = vor.u32 %v2171_v54, %v2167_v36  ;;  %v3678_v54 = vcombine.low %v5415_v52, %v1505_v32  ;;  %v3694_v36 = vcombine.low %v1521_v23, %v1505_v32 }
 0x21c   :  { %v5408_v58 = vpop.permute.xlu1 %2182  ;;  %v1817_v13 = vpop.permute.xlu0 %1816 }
 0x21d   :  { %6002 = vst [vmem:[#allocation29_spill] sm:$0xff] %v5408_v58  ;;  %v2652_v53 = vsel %vm661_vm0, %v4095_v25, %v1817_v13  ;;  %v2514_v58 = vshrl.u32 %v3771_v46, 16  ;;  %v1792_v46 = vshrl.u32 %v3677_v56, 16  ;;  %v2523_v56 = vshll.u32 %v3772_v11, 16 }
 0x21e   :  { %1842 = vrot.lane.b32.xlu1 %v1811_v9, %s4121_s22  ;;  %2380 = vrot.lane.b32.xlu0 %v3756_v17, %s4123_s20  ;;  %v2157_v9 = vrot.slane %v2155_v40, 1  ;;  %v2697_v25 = vsel %vm710_vm1, %v2652_v53, %v5338_v44  ;;  %v3727_v17 = vcombine.low %v5370_v30, %v1554_v43  ;;  %v1552_v40 = vld [vmem:[#allocation2 + $0x84] sm:$0x1]  ;;  %v2655_v44 = vsel %vm661_vm0, %v4096_v39, %v5296_v22 }
 0x21f   :  { %v2519_v59 = vor.u32 %v2518_v10, %v2514_v58  ;;  %v2729_v13 = vsel %vm743_vm2, %v2697_v25, %v5227_v1  ;;  %v3725_v10 = vcombine.low %v5381_v8, %v1552_v40  ;;  %v3741_v32 = vcombine.low %v1568_v41, %v1552_v40 }
 0x220   :  { %v5413_v19 = vpop.permute.xlu1 %1998  ;;  %v5418_v38 = vpop.permute.xlu0 %2284  ;;  %v2158_v43 = vor.u32 %v2157_v9, %v2153_v28  ;;  %v2699_v23 = vsel %vm710_vm1, %v2655_v44, %v5256_v63  ;;  %v2761_v22 = vsel %vm848_vm3, %v2729_v13, %v5309_v34  ;;  %v1797_v1 = vor.u32 %v1796_v57, %v1792_v46 }
 0x221   :  { %v2176_v53 = vshll.u32 %v3727_v17, 16  ;;  %v1906_v28 = vrot.slane %v3694_v36, 1  ;;  %v1801_v9 = vshll.u32 %v3678_v54, 16  ;;  %v2439_v25 = vshll.u32 %v4859_v21, 16 }
 0x222   :  { %2306 = vrot.lane.b32.xlu1 %v2275_v3, %s4125_s2  ;;  %2208 = vrot.lane.b32.xlu0 %v2172_v14, %s4126_s3  ;;  %v2525_v14 = vrot.slane %v2523_v56, 1  ;;  %v2731_v63 = vsel %vm743_vm2, %v2699_v23, %v5275_v26  ;;  %v2273_v34 = vrot.slane %v3741_v32, 1  ;;  %v2794_v8 = vsel %vm2788_vm11, %v2761_v22, %v5261_v37  ;;  %v1587_v22 = vld [vmem:[#allocation2 + $0x98] sm:$0xf] }
 0x223   :  { %v2763_v11 = vsel %vm848_vm3, %v2731_v63, %v5355_v50  ;;  %v2178_v57 = vrot.slane %v2176_v53, 1  ;;  %v2162_v36 = vshll.u32 %v3725_v10, 16  ;;  %v3774_v40 = vcombine.low %v5396_v55, %v5242_v27 }
 0x224   :  { %v5425_v35 = vpop.permute.xlu1 %2558  ;;  %v5432_v30 = vpop.permute.xlu0 %2368  ;;  %v2526_v26 = vor.u32 %v2525_v14, %v2521_v7  ;;  %v1799_v39 = vshrl.u32 %v3678_v54, 16  ;;  %v1803_v44 = vrot.slane %v1801_v9, 1  ;;  %v2827_v37 = vsel %vm2821_vm12, %v2794_v8, %v5290_v15 }
 0x225   :  { %v2441_v50 = vrot.slane %v2439_v25, 1  ;;  %v2164_v54 = vrot.slane %v2162_v36, 1  ;;  %v2860_v56 = vsel %vm2854_vm13, %v2827_v37, %v5366_v62  ;;  %v6003_v14 = vcombine.low %v5157_v49, %v5162_v29 }
 0x226   :  { %2570 = vrot.lane.b32.xlu1 %v2519_v59, %s4124_s21  ;;  %2204 = vrot.lane.b32.xlu0 %v2158_v43, %s4126_s3  ;;  %v2174_v59 = vshrl.u32 %v3727_v17, 16  ;;  %v2796_v17 = vsel %vm2788_vm11, %v2763_v11, %v5306_v12  ;;  %v2160_v43 = vshrl.u32 %v3725_v10, 16  ;;  %v1804_v15 = vor.u32 %v1803_v44, %v1799_v39  ;;  %v4097_v44 = vld [vmem:[#allocation2 + $0x20] sm:$0xf] }
 0x227   :  { %v2829_v27 = vsel %vm2821_vm12, %v2796_v17, %v5362_v6  ;;  %v3775_v12 = vcombine.low %v1587_v22, %v5269_v60  ;;  %v2437_v6 = vshrl.u32 %v4859_v21, 16  ;;  %v2446_v10 = vshll.u32 %v4788_v24, 16 }
 0x228   :  { %v5441_v58 = vpop.permute.xlu1 %1826  ;;  %v5443_v3 = vpop.permute.xlu0 %2364  ;;  %v2179_v13 = vor.u32 %v2178_v57, %v2174_v59  ;;  %v2165_v62 = vor.u32 %v2164_v54, %v2160_v43  ;;  %v2535_v25 = vshrl.u32 %v3774_v40, 16  ;;  %v3759_v60 = vcombine.low %v1587_v22, %v1587_v22  ;;  %v4099_v43 = vld [vmem:[#allocation2 + $0x38] sm:$0xf] }
 0x229   :  { %v2442_v9 = vor.u32 %v2441_v50, %v2437_v6  ;;  %v2544_v21 = vshll.u32 %v3775_v12, 16  ;;  %v2444_v57 = vshrl.u32 %v4788_v24, 16  ;;  %v2542_v49 = vshrl.u32 %v3775_v12, 16  ;;  %v4098_v24 = vld [vmem:[#allocation2 + $0x28] sm:$0xf] }
 0x22a   :  { %1838 = vrot.lane.b32.xlu1 %v1797_v1, %s4121_s22  ;;  %1936 = vrot.lane.b32.xlu0 %v1906_v28, %s4120_s23  ;;  %v2537_v1 = vshll.u32 %v3774_v40, 16  ;;  %v2658_v37 = vsel %vm661_vm0, %v4097_v44, %v5377_v4  ;;  %v2667_v54 = vsel %vm661_vm0, %v4099_v43, %v5441_v58  ;;  %v4100_v43 = vld [vmem:[#allocation2 + $0x50] sm:$0xf] }
 0x22b   :  { %v2546_v29 = vrot.slane %v2544_v21, 1  ;;  %v2707_v22 = vsel %vm710_vm1, %v2667_v54, %v5373_v61  ;;  %v6008_v54 = vld [vmem:[#allocation3_spill] sm:$0xff] }
 0x22c   :  { %v5454_v46 = vpop.permute.xlu1 %2290  ;;  %v5458_v41 = vpop.permute.xlu0 %2192  ;;  %v2539_v63 = vrot.slane %v2537_v1, 1 }
 0x22d   :  { %v2547_v39 = vor.u32 %v2546_v29, %v2542_v49 }
 0x22e   :  { %2302 = vrot.lane.b32.xlu1 %v2273_v34, %s4125_s2  ;;  %2572 = vrot.lane.b32.xlu0 %v2526_v26, %s4124_s21  ;;  %v2448_v34 = vrot.slane %v2446_v10, 1  ;;  %v2540_v59 = vor.u32 %v2539_v63, %v2535_v25 }
 0x230   :  { %v2555_v55 = vpop.permute.xlu1 %2554  ;;  %v2189_v23 = vpop.permute.xlu0 %2188  ;;  %v2449_v40 = vor.u32 %v2448_v34, %v2444_v57 }
 0x231   :  { %v2862_v32 = vsel %vm2854_vm13, %v2829_v27, %v2555_v55  ;;  %v2701_v55 = vsel %vm710_vm1, %v2658_v37, %v5317_v48 }
 0x232   :  { %v3794_v53 = vcombine.low %v2860_v56, %v2862_v32  ;;  %2210 = vrot.lane.b32.xlu1 %v2179_v13, %s4126_s3  ;;  %1840 = vrot.lane.b32.xlu0 %v1804_v15, %s4121_s22  ;;  %v2733_v13 = vsel %vm743_vm2, %v2701_v55, %v5388_v33 }
 0x233   :  { %v2765_v4 = vsel %vm848_vm3, %v2733_v13, %v2189_v23  ;;  %v2739_v23 = vsel %vm743_vm2, %v2707_v22, %v5394_v2 }
 0x234   :  { %v1823_v28 = vpop.permute.xlu1 %1822  ;;  %3096 = vmatmul.mubr.bf16.vlgmr.msra.gmra.mxu1 %v3794_v53  ;;  %v1921_v7 = vpop.permute.xlu0 %1920  ;;  %v2798_v48 = vsel %vm2788_vm11, %v2765_v4, %v5418_v38  ;;  %v6009_v4 = vld [vmem:[#allocation7_spill] sm:$0xff] }
 0x235   :  { %3819 = vmatprep.mubr.msk.bf16.mxu1 %vm661_vm0, %v6003_v14  ;;  %v2661_v27 = vsel %vm661_vm0, %v4098_v24, %v1823_v28  ;;  %v2831_v61 = vsel %vm2821_vm12, %v2798_v48, %v5443_v3  ;;  %v6010_v48 = vld [vmem:[#allocation4_spill] sm:$0xff] }
 0x236   :  { %2206 = vrot.lane.b32.xlu1 %v2165_v62, %s4126_s3  ;;  %2548 = vrot.lane.b32.xlu0 %v2442_v9, %s4124_s21  ;;  %v2703_v32 = vsel %vm710_vm1, %v2661_v27, %v5383_v42 }
 0x237   :  { %v2735_v33 = vsel %vm743_vm2, %v2703_v32, %v5413_v19 }
 0x238   :  { %v2287_v8 = vpop.permute.xlu1 %2286  ;;  %v5482_v11 = vpop.permute.xlu0 %2008 }
 0x23a   :  { %2386 = vrot.lane.b32.xlu1 %v3759_v60, %s4123_s20  ;;  %2576 = vrot.lane.b32.xlu0 %v2540_v59, %s4124_s21  ;;  %v6007_v59 = vld [vmem:[#allocation6_spill] sm:$0xff] }
 0x23c   :  { %v5487_v36 = vpop.permute.xlu1 %2374  ;;  %v2561_v26 = vpop.permute.xlu0 %2560 }
 0x23e   :  { %2550 = vrot.lane.b32.xlu1 %v2449_v40, %s4124_s21 }
 0x240   :  { %v2195_v50 = vpop.permute.xlu1 %2194  ;;  %v5492_v17 = vpop.permute.xlu0 %2004 }
 0x241   :  { %v2771_v12 = vsel %vm848_vm3, %v2739_v23, %v2195_v50 }
 0x242   :  { %2578 = vrot.lane.b32.xlu1 %v2547_v39, %s4124_s21  ;;  %v2804_v2 = vsel %vm2788_vm11, %v2771_v12, %v5454_v46 }
 0x243   :  { %v2837_v25 = vsel %vm2821_vm12, %v2804_v2, %v5145_v51 }
 0x244   :  { %v1931_v56 = vpop.permute.xlu1 %1930  ;;  %v5505_v15 = vpop.permute.xlu0 %2296 }
 0x248   :  { %v2191_v1 = vpop.permute.xlu1 %2190  ;;  %v2557_v53 = vpop.permute.xlu0 %2556 }
 0x249   :  { %v2767_v58 = vsel %vm848_vm3, %v2735_v33, %v2191_v1  ;;  %v2864_v6 = vsel %vm2854_vm13, %v2831_v61, %v2557_v53 }
 0x24a   :  { %v2800_v42 = vsel %vm2788_vm11, %v2767_v58, %v2287_v8 }
 0x24b   :  { %v2833_v38 = vsel %vm2821_vm12, %v2800_v42, %v5324_v20 }
 0x24c   :  { %v2866_v19 = vsel %vm2854_vm13, %v2833_v38, %v5425_v35  ;;  %v1927_v10 = vpop.permute.xlu1 %1926  ;;  %v1825_v62 = vpop.permute.xlu0 %1824  ;;  %v6004_v35 = vcombine.low %v5164_v5, %v5155_v16  ;;  %v2870_v16 = vsel %vm2854_vm13, %v2837_v25, %v5171_v18  ;;  %v6012_v25 = vld [vmem:[#allocation12_spill] sm:$0xff] }
 0x24d   :  { %v3796_v28 = vcombine.low %v2864_v6, %v2866_v19  ;;  %v2664_v14 = vsel %vm661_vm0, %v5126_v31, %v1825_v62 }
 0x24e   :  { %v2705_v9 = vsel %vm710_vm1, %v2664_v14, %v1921_v7 }
 0x24f   :  { %3104 = vmatmul.mubr.bf16.gmra.mxu1 %v3796_v28  ;;  %v2737_v20 = vsel %vm743_vm2, %v2705_v9, %v5349_v0 }
 0x250   :  { %v2011_v3 = vpop.permute.xlu1 %2010  ;;  %3820 = vmatprep.mubr.msk.bf16.mxu1 %vm661_vm0, %v6004_v35  ;;  %v2769_v46 = vsel %vm848_vm3, %v2737_v20, %v5458_v41  ;;  %v2293_v63 = vpop.permute.xlu0 %2292  ;;  %v6005_v41 = vld [vmem:[#allocation10_spill] sm:$0xff]  ;;  %v6011_v35 = vld [vmem:[#allocation11_spill] sm:$0xff] }
 0x251   :  { %v2802_v31 = vsel %vm2788_vm11, %v2769_v46, %v5401_v47  ;;  %v6006_v34 = vcombine.low %v5231_v45, %v6005_v41  ;;  %v6013_v46 = vcombine.low %v6011_v35, %v6012_v25 }
 0x252   :  { %v2835_v7 = vsel %vm2821_vm12, %v2802_v31, %v5432_v30 }
 0x253   :  { %v2868_v60 = vsel %vm2854_vm13, %v2835_v7, %v2561_v26 }
 0x254   :  { %v2007_v0 = vpop.permute.xlu1 %2006  ;;  %v5547_v5 = vpop.permute.xlu0 %2376  ;;  %v3798_v21 = vcombine.low %v2868_v60, %v2870_v16 }
 0x257   :  { %3112 = vmatmul.mubr.bf16.gmra.mxu1 %v3798_v21 }
 0x258   :  { %v2567_v51 = vpop.permute.xlu1 %2566  ;;  %3821 = vmatprep.mubr.msk.bf16.mxu1 %vm661_vm0, %v6006_v34  ;;  %v2373_v47 = vpop.permute.xlu0 %2372 }
 0x25c   :  { %v1835_v8 = vpop.permute.xlu1 %1834  ;;  %v2201_v57 = vpop.permute.xlu0 %2200 }
 0x25d   :  { %v2679_v30 = vsel %vm661_vm0, %v6007_v59, %v1835_v8 }
 0x25e   :  { %v2715_v49 = vsel %vm710_vm1, %v2679_v30, %v1931_v56  ;;  %v2670_v56 = vsel %vm661_vm0, %v4100_v43, %v6008_v54  ;;  %v6016_v54 = vld [vmem:[#allocation14_spill] sm:$0xff] }
 0x25f   :  { %v2747_v18 = vsel %vm743_vm2, %v2715_v49, %v2011_v3  ;;  %v2709_v33 = vsel %vm710_vm1, %v2670_v56, %v6010_v48 }
 0x260   :  { %v2299_v29 = vpop.permute.xlu1 %2298  ;;  %v5557_v40 = vpop.permute.xlu0 %1932  ;;  %v2741_v53 = vsel %vm743_vm2, %v2709_v33, %v5492_v17  ;;  %v4101_v33 = vld [vmem:[#allocation2 + $0x8] sm:$0xf] }
 0x264   :  { %v1831_v26 = vpop.permute.xlu1 %1830  ;;  %v2197_v39 = vpop.permute.xlu0 %2196 }
 0x265   :  { %v2673_v32 = vsel %vm661_vm0, %v6009_v4, %v1831_v26  ;;  %v2773_v23 = vsel %vm848_vm3, %v2741_v53, %v2197_v39 }
 0x266   :  { %v2711_v1 = vsel %vm710_vm1, %v2673_v32, %v1927_v10  ;;  %v2806_v19 = vsel %vm2788_vm11, %v2773_v23, %v2293_v63  ;;  %v6014_v63 = vld [vmem:[#allocation24_spill] sm:$0xff] }
 0x267   :  { %v2743_v42 = vsel %vm743_vm2, %v2711_v1, %v2007_v0  ;;  %v2839_v17 = vsel %vm2821_vm12, %v2806_v19, %v2373_v47  ;;  %v6019_v32 = vld [vmem:[#allocation28_spill] sm:$0xff]  ;;  %v6020_v1 = vld [vmem:[#allocation23_spill] sm:$0xff]  ;;  %v6021_v19 = vld [vmem:[#allocation5_spill] sm:$0xff] }
 0x268   :  { %v2295_v44 = vpop.permute.xlu1 %2294  ;;  %v1929_v37 = vpop.permute.xlu0 %1928  ;;  %v2649_v53 = vsel %vm661_vm0, %v4101_v33, %v6020_v1  ;;  %v4103_v33 = vld [vmem:[%s5946_s0] sm:$0xf]  ;;  %v4104_v1 = vld [vmem:[%s5946_s0 + $0x8] sm:$0xf] }
 0x26c   :  { %v5559_v45 = vpop.permute.xlu1 %2382  ;;  %v5561_v50 = vpop.permute.xlu0 %2016 }
 0x270   :  { %v2203_v24 = vpop.permute.xlu1 %2202  ;;  %v2569_v27 = vpop.permute.xlu0 %2568 }
 0x271   :  { %v2779_v8 = vsel %vm848_vm3, %v2747_v18, %v2203_v24  ;;  %v6015_v24 = vld [vmem:[#allocation13_spill] sm:$0xff] }
 0x272   :  { %v2812_v26 = vsel %vm2788_vm11, %v2779_v8, %v2299_v29  ;;  %v6017_v56 = vcombine.low %v6015_v24, %v6016_v54  ;;  %v6018_v29 = vld [vmem:[#allocation20_spill] sm:$0xff]  ;;  %v6031_v54 = vld [vmem:[#allocation22_spill] sm:$0xff] }
 0x274   :  { %v2379_v55 = vpop.permute.xlu1 %2378  ;;  %v1837_v13 = vpop.permute.xlu0 %1836 }
 0x278   :  { %v5567_v22 = vpop.permute.xlu1 %1938  ;;  %v2013_v58 = vpop.permute.xlu0 %2012 }
 0x27c   :  { %v2199_v12 = vpop.permute.xlu1 %2198  ;;  %v5577_v38 = vpop.permute.xlu0 %2304 }
 0x27d   :  { %v2775_v61 = vsel %vm848_vm3, %v2743_v42, %v2199_v12 }
 0x27e   :  { %v2808_v6 = vsel %vm2788_vm11, %v2775_v61, %v2295_v44  ;;  %v4102_v61 = vld [vmem:[#allocation2] sm:$0xf] }
 0x27f   :  { %v2841_v10 = vsel %vm2821_vm12, %v2808_v6, %v5487_v36 }
 0x280   :  { %v1935_v28 = vpop.permute.xlu1 %1934  ;;  %v2874_v62 = vsel %vm2854_vm13, %v2841_v10, %v2567_v51  ;;  %v2565_v2 = vpop.permute.xlu0 %2564 }
 0x281   :  { %v2872_v14 = vsel %vm2854_vm13, %v2839_v17, %v2565_v2  ;;  %v6022_v17 = vld [vmem:[#allocation18_spill] sm:$0xff] }
 0x282   :  { %v3800_v9 = vcombine.low %v2872_v14, %v2874_v62  ;;  %v2695_v2 = vsel %vm710_vm1, %v2649_v53, %v6022_v17  ;;  %v3827_v53 = vcombine.low %v4103_v33, %v4104_v1  ;;  %v4107_v17 = vld [vmem:[%s5946_s0 + $0x28] sm:$0xf] }
 0x284   :  { %v5586_v20 = vpop.permute.xlu1 %2018  ;;  %3120 = vmatmul.mubr.bf16.gmra.mxu1 %v3800_v9  ;;  %v1833_v3 = vpop.permute.xlu0 %1832  ;;  %v6023_v9 = vld [vmem:[#allocation8_spill] sm:$0xff] }
 0x285   :  { %3822 = vmatprep.mubr.msk.bf16.mxu1 %vm661_vm0, %v6013_v46  ;;  %v2676_v36 = vsel %vm661_vm0, %v6014_v63, %v1833_v3  ;;  %v6024_v46 = vld [vmem:[#allocation16_spill] sm:$0xff]  ;;  %v6025_v63 = vld [vmem:[#allocation21_spill] sm:$0xff] }
 0x286   :  { %v2713_v0 = vsel %vm710_vm1, %v2676_v36, %v1929_v37  ;;  %v2727_v36 = vsel %vm743_vm2, %v2695_v2, %v6025_v63  ;;  %v4115_v63 = vld [vmem:[%s5946_s0 + $0x70] sm:$0xf] }
 0x287   :  { %v2745_v16 = vsel %vm743_vm2, %v2713_v0, %v5482_v11  ;;  %v2845_v11 = vsel %vm2821_vm12, %v2812_v26, %v2379_v55  ;;  %v6026_v0 = vld [vmem:[#allocation27_spill] sm:$0xff] }
 0x288   :  { %v2015_v31 = vpop.permute.xlu1 %2014  ;;  %v2301_v7 = vpop.permute.xlu0 %2300  ;;  %v2777_v51 = vsel %vm848_vm3, %v2745_v16, %v2201_v57 }
 0x289   :  { %v2810_v47 = vsel %vm2788_vm11, %v2777_v51, %v5505_v15  ;;  %v6027_v51 = vld [vmem:[#allocation26_spill] sm:$0xff] }
 0x28a   :  { %v2843_v49 = vsel %vm2821_vm12, %v2810_v47, %v5547_v5  ;;  %v5618_v5 = vld [vmem:[%s5951_s7] sm:$0xff]  }
 0x28b   :  { %v2876_v57 = vsel %vm2854_vm13, %v2843_v49, %v2569_v27  ;;  %v2682_v27 = vsel %vm661_vm0, %v6018_v29, %v1837_v13  ;;  %3907 = vmatprep.subr.bf16.mxu0 %v5618_v5  ;;  %v2646_v13 = vsel %vm661_vm0, %v4102_v61, %v6021_v19  ;;  %v6032_v29 = vld [vmem:[#allocation9_spill] sm:$0xff] }
 0x28c   :  { %v2575_v60 = vpop.permute.xlu1 %2574  ;;  %v5597_v21 = vpop.permute.xlu0 %2384  ;;  %v2717_v23 = vsel %vm710_vm1, %v2682_v27, %v5557_v40  ;;  %v2693_v40 = vsel %vm710_vm1, %v2646_v13, %v6023_v9  ;;  %v4110_v9 = vld [vmem:[%s5946_s0 + $0x30] sm:$0xf] }
 0x28d   :  { %v2749_v42 = vsel %vm743_vm2, %v2717_v23, %v2013_v58 }
 0x290   :  { %v1843_v41 = vpop.permute.xlu1 %1842  ;;  %v2381_v34 = vpop.permute.xlu0 %2380 }
 0x291   :  { %v2691_v16 = vsel %vm661_vm0, %v6026_v0, %v1843_v41 }
 0x292   :  { %v2723_v41 = vsel %vm710_vm1, %v2691_v16, %v5567_v22  ;;  %v4117_v16 = vld [vmem:[%s5946_s0 + $0x80] sm:$0xf] }
 0x294   :  { %v5603_v59 = vpop.permute.xlu1 %2306  ;;  %v2209_v30 = vpop.permute.xlu0 %2208 }
 0x298   :  { %v2571_v39 = vpop.permute.xlu1 %2570  ;;  %v2205_v37 = vpop.permute.xlu0 %2204 }
 0x299   :  { %v2878_v44 = vsel %vm2854_vm13, %v2845_v11, %v2571_v39  ;;  %v2781_v6 = vsel %vm848_vm3, %v2749_v42, %v2205_v37 }
 0x29a   :  { %v3802_v43 = vcombine.low %v2876_v57, %v2878_v44  ;;  %v2814_v58 = vsel %vm2788_vm11, %v2781_v6, %v2301_v7  ;;  %v6028_v7 = vld [vmem:[#allocation29_spill] sm:$0xff] }
 0x29b   :  { %v2759_v8 = vsel %vm848_vm3, %v2727_v36, %v6028_v7  ;;  %v2847_v49 = vsel %vm2821_vm12, %v2814_v58, %v2381_v34  ;;  %v4111_v58 = vld [vmem:[%s5946_s0 + $0x50] sm:$0xf]  ;;  %v4116_v36 = vld [vmem:[%s5946_s0 + $0x68] sm:$0xf] }
 0x29c   :  { %v1839_v15 = vpop.permute.xlu1 %1838  ;;  %3128 = vmatmul.mubr.bf16.gmra.mxu1 %v3802_v43  ;;  %v1937_v18 = vpop.permute.xlu0 %1936  ;;  %v6029_v43 = vld [vmem:[#allocation19_spill] sm:$0xff]  ;;  %v3833_v0 = vcombine.low %v4116_v36, %v4115_v63 }
 0x29d   :  { %3823 = vmatprep.mubr.msk.bf16.mxu1 %vm661_vm0, %v6017_v56  ;;  %v2685_v48 = vsel %vm661_vm0, %v6019_v32, %v1839_v15 }
 0x29e   :  { %v2719_v10 = vsel %vm710_vm1, %v2685_v48, %v1935_v28  ;;  %v2725_v28 = vsel %vm743_vm2, %v2693_v40, %v6024_v46  ;;  %v4114_v46 = vld [vmem:[%s5946_s0 + $0x58] sm:$0xf] }
 0x29f   :  { %v2751_v35 = vsel %vm743_vm2, %v2719_v10, %v2015_v31  ;;  %v2757_v47 = vsel %vm848_vm3, %v2725_v28, %v6027_v51 }
 0x2a0   :  { %v2303_v55 = vpop.permute.xlu1 %2302  ;;  %v2573_v4 = vpop.permute.xlu0 %2572  ;;  %v2790_v15 = vsel %vm2788_vm11, %v2757_v47, %v6029_v43 }
 0x2a1   :  { %v2880_v39 = vsel %vm2854_vm13, %v2847_v49, %v2573_v4  ;;  %v2823_v56 = vsel %vm2821_vm12, %v2790_v15, %v6031_v54  ;;  %v6034_v4 = vld [vmem:[#allocation17_spill] sm:$0xff] }
 0x2a4   :  { %v2211_v12 = vpop.permute.xlu1 %2210  ;;  %v1841_v62 = vpop.permute.xlu0 %1840 }
 0x2a5   :  { %v2688_v14 = vsel %vm661_vm0, %v5415_v52, %v1841_v62 }
 0x2a6   :  { %v2721_v3 = vsel %vm710_vm1, %v2688_v14, %v1937_v18  ;;  %v6030_v18 = vld [vmem:[#allocation25_spill] sm:$0xff]  ;;  %v4109_v14 = vld [vmem:[%s5946_s0 + $0x38] sm:$0xf] }
 0x2a7   :  { %v2753_v26 = vsel %vm743_vm2, %v2721_v3, %v5561_v50  ;;  %v2792_v34 = vsel %vm2788_vm11, %v2759_v8, %v6030_v18  ;;  %v3830_v40 = vcombine.low %v4110_v9, %v4109_v14  ;;  %v4112_v3 = vld [vmem:[%s5946_s0 + $0x48] sm:$0xf] }
 0x2a8   :  { %v2207_v25 = vpop.permute.xlu1 %2206  ;;  %v2549_v57 = vpop.permute.xlu0 %2548  ;;  %v2785_v50 = vsel %vm848_vm3, %v2753_v26, %v2209_v30 }
 0x2a9   :  { %v2783_v52 = vsel %vm848_vm3, %v2751_v35, %v2207_v25  ;;  %v2856_v30 = vsel %vm2854_vm13, %v2823_v56, %v2549_v57  ;;  %v3831_v35 = vcombine.low %v4112_v3, %v4111_v58  ;;  %v4113_v25 = vld [vmem:[%s5946_s0 + $0x60] sm:$0xf] }
 0x2aa   :  { %v2816_v31 = vsel %vm2788_vm11, %v2783_v52, %v2303_v55  ;;  %v6033_v55 = vld [vmem:[#allocation15_spill] sm:$0xff]  ;;  %v3832_v28 = vcombine.low %v4114_v46, %v4113_v25  ;;  %v4118_v52 = vld [vmem:[%s5946_s0 + $0x78] sm:$0xf] }
 0x2ab   :  { %v2849_v11 = vsel %vm2821_vm12, %v2816_v31, %v5559_v45  ;;  %v2755_v45 = vsel %vm743_vm2, %v2723_v41, %v5586_v20  ;;  %v6035_v32 = vcombine.low %v6033_v55, %v6034_v4  ;;  %v2818_v20 = vsel %vm2788_vm11, %v2785_v50, %v5577_v38 }
 0x2ac   :  { %v2387_v44 = vpop.permute.xlu1 %2386  ;;  %v2882_v37 = vsel %vm2854_vm13, %v2849_v11, %v2575_v60  ;;  %v2787_v22 = vsel %vm848_vm3, %v2755_v45, %v2211_v12  ;;  %v2825_v60 = vsel %vm2821_vm12, %v2792_v34, %v6032_v29  ;;  %v2577_v23 = vpop.permute.xlu0 %2576  ;;  %v2851_v38 = vsel %vm2821_vm12, %v2818_v20, %v5597_v21  ;;  %v4106_v21 = vld [vmem:[%s5946_s0 + $0x18] sm:$0xf] }
 0x2ad   :  { %v3804_v24 = vcombine.low %v2880_v39, %v2882_v37  ;;  %v2820_v12 = vsel %vm2788_vm11, %v2787_v22, %v5603_v59  ;;  %v2884_v13 = vsel %vm2854_vm13, %v2851_v38, %v2577_v23  ;;  %v4105_v59 = vld [vmem:[%s5946_s0 + $0x10] sm:$0xf]  ;;  %v3834_v51 = vcombine.low %v4118_v52, %v4117_v16 }
 0x2ae   :  { %v2853_v61 = vsel %vm2821_vm12, %v2820_v12, %v2387_v44  ;;  %v3828_v62 = vcombine.low %v4105_v59, %v4106_v21 }
 0x2af   :  { %3136 = vmatmul.mubr.bf16.gmra.mxu1 %v3804_v24 }
 0x2b0   :  { %v2551_v27 = vpop.permute.xlu1 %2550  ;;  %3824 = vmatprep.mubr.msk.bf16.mxu1 %vm661_vm0, %v6035_v32  ;;  %v3826_v32 = vld [vmem:[%s5953_s6] ss:$0 sm:$0xff] }
 0x2b1   :  { %v2858_v48 = vsel %vm2854_vm13, %v2825_v60, %v2551_v27  ;;  %v3825_v60 = vld [vmem:[%s5952_s5] ss:$0 sm:$0xff] }
 0x2b2   :  { %v3792_v42 = vcombine.low %v2856_v30, %v2858_v48 }
 0x2b4   :  { %v2579_v19 = vpop.permute.xlu1 %2578  ;;  %3088 = vmatmul.mubr.bf16.vlgmr.msra.gmra.mxu0 %v3792_v42 }
 0x2b5   :  { %v2886_v6 = vsel %vm2854_vm13, %v2853_v61, %v2579_v19  ;;  %3908 = vmatpush3.bf16.msra.mxu0 %v5618_v5  ;;  %3909 = vmatprep.mubr.msk.bf16.mxu0 %vm661_vm0, %v3827_v53  ;;  %v4108_v5 = vld [vmem:[%s5946_s0 + $0x20] sm:$0xf] }
 0x2b6   :  { %v3806_v10 = vcombine.low %v2884_v13, %v2886_v6  ;;  %v3829_v2 = vcombine.low %v4108_v5, %v4107_v17 }
 0x2b8   :  { %3144 = vmatmul.mubr.bf16.gmra.mxu1 %v3806_v10 }
 0x2bc   :  { %3910 = vmatmul.mubr.msk.bf16.vlgmr.msra.gmra.mxu0 %vm661_vm0, %v3828_v62 }
 0x2bd   :  { %3913 = vmatprep.mubr.msk.bf16.mxu0 %vm661_vm0, %v3829_v2 }
 0x2c4   :  { %3914 = vmatmul.mubr.msk.bf16.gmra.mxu0 %vm661_vm0, %v3830_v40 }
 0x2c5   :  { %3917 = vmatprep.mubr.msk.bf16.mxu0 %vm661_vm0, %v3831_v35 }
 0x2cc   :  { %3918 = vmatmul.mubr.msk.bf16.gmra.mxu0 %vm661_vm0, %v3832_v28 }
 0x2cd   :  { %3921 = vmatprep.mubr.msk.bf16.mxu0 %vm661_vm0, %v3833_v0 }
 0x2d4   :  { %3922 = vmatmul.mubr.msk.bf16.gmra.mxu0 %vm661_vm0, %v3834_v51 }
 0x2f4   :  { %v3097_v47 = vpop.f32.mrf.mxu1 }
 0x2f5   :  { %v3161_v20 = vmul.f32 %v3825_v60, %v3097_v47 }
 0x2f6   :  { %v3099_v7 = vpop.f32.mrf.mxu1 }
 0x2f7   :  { %v5758_v12 = vadd.f32 %v3826_v32, %v3161_v20 }
 0x2f8   :  { %v3100_v8 = vpop.f32.mrf.mxu1 }
 0x2f9   :  { %v3162_v61 = vmul.f32 %v3825_v60, %v3100_v8 }
 0x2fa   :  { %v3102_v31 = vpop.f32.mrf.mxu1 }
 0x2fb   :  { %v5766_v10 = vadd.f32 %v3826_v32, %v3162_v61 }
 0x30f   :  { %v3105_v49 = vpop.f32.mrf.mxu1 }
 0x310   :  { %v3163_v38 = vmul.f32 %v3825_v60, %v3105_v49 }
 0x311   :  { %v3107_v26 = vpop.f32.mrf.mxu1 }
 0x312   :  { %v5768_v59 = vadd.f32 %v3826_v32, %v3163_v38 }
 0x313   :  { %v3108_v11 = vpop.f32.mrf.mxu1 }
 0x314   :  { %v3164_v21 = vmul.f32 %v3825_v60, %v3108_v11 }
 0x315   :  { %v3110_v41 = vpop.f32.mrf.mxu1 }
 0x316   :  { %v5774_v17 = vadd.f32 %v3826_v32, %v3164_v21 }
 0x317   :  { %v3113_v39 = vpop.f32.mrf.mxu1 }
 0x318   :  { %v3165_v62 = vmul.f32 %v3825_v60, %v3113_v39 }
 0x319   :  { %v3115_v57 = vpop.f32.mrf.mxu1 }
 0x31a   :  { %v5776_v5 = vadd.f32 %v3826_v32, %v3165_v62 }
 0x31b   :  { %v3116_v44 = vpop.f32.mrf.mxu1 }
 0x31c   :  { %v3166_v2 = vmul.f32 %v3825_v60, %v3116_v44  ;;  %v5821_v44 = vld [vmem:[%s5954_s8] ss:$0 sm:$0xff] }
 0x31d   :  { %v3118_v37 = vpop.f32.mrf.mxu1 }
 0x31e   :  { %v5782_v9 = vadd.f32 %v3826_v32, %v3166_v2 }
 0x344   :  { %v3121_v43 = vpop.f32.mrf.mxu1 }
 0x345   :  { %v3167_v14 = vmul.f32 %v3825_v60, %v3121_v43 }
 0x346   :  { %v3123_v15 = vpop.f32.mrf.mxu1 }
 0x347   :  { %v5784_v40 = vadd.f32 %v3826_v32, %v3167_v14  ;;  %v5829_v15 = vld [vmem:[%s5955_s9] ss:$0 sm:$0xff] }
 0x348   :  { %v3124_v18 = vpop.f32.mrf.mxu1 }
 0x349   :  { %v3168_v58 = vmul.f32 %v3825_v60, %v3124_v18 }
 0x34a   :  { %v3126_v34 = vpop.f32.mrf.mxu1 }
 0x34b   :  { %v5790_v35 = vadd.f32 %v3826_v32, %v3168_v58 }
 0x35c   :  { %v3129_v24 = vpop.f32.mrf.mxu1 }
 0x35d   :  { %v3169_v3 = vmul.f32 %v3825_v60, %v3129_v24 }
 0x35e   :  { %v3131_v50 = vpop.f32.mrf.mxu1 }
 0x35f   :  { %v5792_v25 = vadd.f32 %v3826_v32, %v3169_v3 }
 0x360   :  { %v3132_v45 = vpop.f32.mrf.mxu1 }
 0x361   :  { %v3170_v46 = vmul.f32 %v3825_v60, %v3132_v45 }
 0x362   :  { %v3134_v22 = vpop.f32.mrf.mxu1 }
 0x363   :  { %v5798_v63 = vadd.f32 %v3826_v32, %v3170_v46 }
 0x36f   :  { %v3137_v54 = vpop.f32.mrf.mxu1 }
 0x370   :  { %v3171_v28 = vmul.f32 %v3825_v60, %v3137_v54 }
 0x371   :  { %v3139_v56 = vpop.f32.mrf.mxu1 }
 0x372   :  { %v5800_v36 = vadd.f32 %v3826_v32, %v3171_v28 }
 0x373   :  { %v3140_v29 = vpop.f32.mrf.mxu1 }
 0x374   :  { %v3089_v27 = vpop.f32.mrf.mxu0  ;;  %v3172_v0 = vmul.f32 %v3825_v60, %v3140_v29 }
 0x375   :  { %v3159_v55 = vmul.f32 %v3825_v60, %v3089_v27  ;;  %v3142_v4 = vpop.f32.mrf.mxu1 }
 0x376   :  { %v3091_v30 = vpop.f32.mrf.mxu0  ;;  %v5806_v52 = vadd.f32 %v3826_v32, %v3172_v0 }
 0x377   :  { %v5754_v48 = vadd.f32 %v3826_v32, %v3159_v55 }
 0x378   :  { %v3092_v33 = vpop.f32.mrf.mxu0  ;;  %v3145_v1 = vpop.f32.mrf.mxu1 }
 0x379   :  { %v3160_v53 = vmul.f32 %v3825_v60, %v3092_v33  ;;  %3214 = vrot.lane.b32.xlu0 %v5754_v48, %s4127_s13  ;;  %v3173_v16 = vmul.f32 %v3825_v60, %v3145_v1 }
 0x37a   :  { %v3094_v23 = vpop.f32.mrf.mxu0  ;;  %v3147_v42 = vpop.f32.mrf.mxu1 }
 0x37b   :  { %v5760_v19 = vadd.f32 %v3826_v32, %v3160_v53  ;;  %v5808_v51 = vadd.f32 %v3826_v32, %v3173_v16 }
 0x37c   :  { %v3148_v13 = vpop.f32.mrf.mxu1  ;;  %v3911_v8 = vpop.f32.mrf.mxu0 }
 0x37d   :  { %3218 = vrot.lane.b32.xlu0 %v5758_v12, %s4127_s13  ;;  %3216 = vrot.lane.b32.xlu1 %v5760_v19, %s4127_s13  ;;  %v3174_v47 = vmul.f32 %v3825_v60, %v3148_v13  ;;  %v3456_v45 = vmul.f32 %v3911_v8, %v5821_v44 }
 0x37e   :  { %v3150_v6 = vpop.f32.mrf.mxu1  ;;  %v3384_v31 = vpop.f32.mrf.mxu0 }
 0x37f   :  { %v5814_v7 = vadd.f32 %v3826_v32, %v3174_v47  ;;  %v3454_v43 = vmul.f32 %v5821_v44, %v3384_v31  ;;  %v3479_v30 = vadd.f32 %v5829_v15, %v3456_v45 }
 0x380   :  { %v3912_v49 = vpop.f32.mrf.mxu0 }
 0x381   :  { %3222 = vrot.lane.b32.xlu0 %v5768_v59, %s4127_s13  ;;  %3220 = vrot.lane.b32.xlu1 %v5766_v10, %s4127_s13  ;;  %v3477_v24 = vadd.f32 %v5829_v15, %v3454_v43  ;;  %v3457_v20 = vmul.f32 %v3912_v49, %v5821_v44 }
 0x382   :  { %v3387_v26 = vpop.f32.mrf.mxu0 }
 0x383   :  { %v3455_v54 = vmul.f32 %v5821_v44, %v3387_v26  ;;  %v3480_v21 = vadd.f32 %v5829_v15, %v3457_v20 }
 0x384   :  { %v3915_v11 = vpop.f32.mrf.mxu0 }
 0x385   :  { %3226 = vrot.lane.b32.xlu0 %v5776_v5, %s4127_s13  ;;  %3224 = vrot.lane.b32.xlu1 %v5774_v17, %s4127_s13  ;;  %v3460_v6 = vmul.f32 %v3915_v11, %v5821_v44 }
 0x386   :  { %v3400_v41 = vpop.f32.mrf.mxu0 }
 0x387   :  { %v3458_v27 = vmul.f32 %v5821_v44, %v3400_v41  ;;  %v3483_v47 = vadd.f32 %v5829_v15, %v3460_v6 }
 0x388   :  { %v3916_v39 = vpop.f32.mrf.mxu0 }
 0x389   :  { %3230 = vrot.lane.b32.xlu0 %v5784_v40, %s4127_s13  ;;  %3228 = vrot.lane.b32.xlu1 %v5782_v9, %s4127_s13  ;;  %v3481_v23 = vadd.f32 %v5829_v15, %v3458_v27  ;;  %v3461_v8 = vmul.f32 %v3916_v39, %v5821_v44 }
 0x38a   :  { %v3403_v57 = vpop.f32.mrf.mxu0 }
 0x38c   :  { %v5823_v37 = vpop.f32.mrf.mxu0 }
 0x38d   :  { %3234 = vrot.lane.b32.xlu0 %v5792_v25, %s4127_s13  ;;  %3232 = vrot.lane.b32.xlu1 %v5790_v35, %s4127_s13 }
 0x38e   :  { %v3416_v18 = vpop.f32.mrf.mxu0 }
 0x38f   :  { %v3462_v3 = vmul.f32 %v5821_v44, %v3416_v18 }
 0x390   :  { %v5835_v56 = vpop.f32.mrf.mxu0 }
 0x391   :  { %3238 = vrot.lane.b32.xlu0 %v5800_v36, %s4127_s13  ;;  %3236 = vrot.lane.b32.xlu1 %v5798_v63, %s4127_s13 }
 0x392   :  { %v3419_v53 = vpop.f32.mrf.mxu0 }
 0x394   :  { %v3923_v14 = vpop.f32.mrf.mxu0 }
 0x395   :  { %3240 = vrot.lane.b32.xlu1 %v5806_v52, %s4127_s13  ;;  %3242 = vrot.lane.b32.xlu0 %v5808_v51, %s4127_s13 }
 0x396   :  { %v3432_v26 = vpop.f32.mrf.mxu0 }
 0x399   :  { %3244 = vrot.lane.b32.xlu1 %v5814_v7, %s4127_s13 }
 0x3eb   :  { %v3215_v34 = vpop.permute.xlu0 %3214 }
 0x3ec   :  { %v3262_v50 = vadd.f32 %v3215_v34, %v5754_v48  ;;  %v3478_v48 = vadd.f32 %v5829_v15, %v3455_v54  ;;  %v3464_v34 = vmul.f32 %v5823_v37, %v5821_v44  ;;  %v3466_v37 = vmul.f32 %v5821_v44, %v3432_v26 }
 0x3ee   :  { %v3493_v22 = vmul.f32 0.5, %v3262_v50 }
 0x3ef   :  { %v3217_v29 = vpop.permute.xlu1 %3216  ;;  %v3219_v60 = vpop.permute.xlu0 %3218 }
 0x3f0   :  { %v3509_v55 = vadd.f32 %v3493_v22, %v3477_v24  ;;  %v3263_v4 = vadd.f32 %v3217_v29, %v5760_v19  ;;  %v3264_v32 = vadd.f32 %v3219_v60, %v5758_v12  ;;  %v3484_v24 = vadd.f32 %v5829_v15, %v3461_v8 }
 0x3f2   :  { %3526 = vst.msk [vmem:[%s5956_s10] sm:$0xff] %vm3525_vm14, %v3509_v55  ;;  %v3494_v33 = vmul.f32 0.5, %v3263_v4  ;;  %v3495_v1 = vmul.f32 0.5, %v3264_v32  ;;  %v3487_v4 = vadd.f32 %v5829_v15, %v3464_v34  ;;  %v3465_v32 = vmul.f32 %v5835_v56, %v5821_v44 }
 0x3f3   :  { %v3221_v42 = vpop.permute.xlu1 %3220  ;;  %v3223_v61 = vpop.permute.xlu0 %3222 }
 0x3f4   :  { %v3510_v38 = vadd.f32 %v3494_v33, %v3478_v48  ;;  %v3511_v12 = vadd.f32 %v3495_v1, %v3479_v30  ;;  %v3265_v19 = vadd.f32 %v3221_v42, %v5766_v10  ;;  %v3266_v13 = vadd.f32 %v3223_v61, %v5768_v59 }
 0x3f5   :  { %v3459_v10 = vmul.f32 %v5821_v44, %v3403_v57  ;;  %v3489_v48 = vadd.f32 %v5829_v15, %v3466_v37  ;;  %v3468_v61 = vmul.f32 %v3923_v14, %v5821_v44 }
 0x3f6   :  { %3527 = vst.msk [vmem:[%s5956_s10 + $0x8] sm:$0xff] %vm3525_vm14, %v3510_v38  ;;  %3528 = vst.msk [vmem:[%s5956_s10 + $0x10] sm:$0xff] %vm3525_vm14, %v3511_v12  ;;  %v3496_v62 = vmul.f32 0.5, %v3265_v19  ;;  %v3497_v2 = vmul.f32 0.5, %v3266_v13  ;;  %v3488_v38 = vadd.f32 %v5829_v15, %v3465_v32 }
 0x3f7   :  { %v3225_v59 = vpop.permute.xlu1 %3224  ;;  %v3227_v58 = vpop.permute.xlu0 %3226  ;;  %v3482_v31 = vadd.f32 %v5829_v15, %v3459_v10  ;;  %v3491_v10 = vadd.f32 %v5829_v15, %v3468_v61 }
 0x3f8   :  { %v3512_v46 = vadd.f32 %v3496_v62, %v3480_v21  ;;  %v3513_v28 = vadd.f32 %v3497_v2, %v3481_v23  ;;  %v3267_v0 = vadd.f32 %v3225_v59, %v5774_v17  ;;  %v3268_v16 = vadd.f32 %v3227_v58, %v5776_v5 }
 0x3f9   :  { %v3485_v5 = vadd.f32 %v5829_v15, %v3462_v3 }
 0x3fa   :  { %3529 = vst.msk [vmem:[%s5956_s10 + $0x18] sm:$0xff] %vm3525_vm14, %v3512_v46  ;;  %3530 = vst.msk [vmem:[%s5956_s10 + $0x20] sm:$0xff] %vm3525_vm14, %v3513_v28  ;;  %v3498_v49 = vmul.f32 0.5, %v3267_v0  ;;  %v3499_v17 = vmul.f32 0.5, %v3268_v16 }
 0x3fb   :  { %v3229_v11 = vpop.permute.xlu1 %3228  ;;  %v3231_v41 = vpop.permute.xlu0 %3230 }
 0x3fc   :  { %v3514_v57 = vadd.f32 %v3498_v49, %v3482_v31  ;;  %v3515_v43 = vadd.f32 %v3499_v17, %v3483_v47  ;;  %v3269_v18 = vadd.f32 %v3229_v11, %v5782_v9  ;;  %v3270_v39 = vadd.f32 %v3231_v41, %v5784_v40  ;;  %v3924_v40 = vpop.f32.mrf.mxu0 }
 0x3fd   :  { %v3463_v9 = vmul.f32 %v5821_v44, %v3419_v53  ;;  %v3469_v14 = vmul.f32 %v3924_v40, %v5821_v44 }
 0x3fe   :  { %3531 = vst.msk [vmem:[%s5956_s10 + $0x28] sm:$0xff] %vm3525_vm14, %v3514_v57  ;;  %3532 = vst.msk [vmem:[%s5956_s10 + $0x30] sm:$0xff] %vm3525_vm14, %v3515_v43  ;;  %v3500_v50 = vmul.f32 0.5, %v3269_v18  ;;  %v3501_v45 = vmul.f32 0.5, %v3270_v39 }
 0x3ff   :  { %v3233_v22 = vpop.permute.xlu1 %3232  ;;  %v3235_v54 = vpop.permute.xlu0 %3234  ;;  %v3486_v30 = vadd.f32 %v5829_v15, %v3463_v9  ;;  %v3492_v0 = vadd.f32 %v5829_v15, %v3469_v14 }
 0x400   :  { %v3516_v29 = vadd.f32 %v3500_v50, %v3484_v24  ;;  %v3517_v60 = vadd.f32 %v3501_v45, %v3485_v5  ;;  %v3271_v27 = vadd.f32 %v3233_v22, %v5790_v35  ;;  %v3272_v55 = vadd.f32 %v3235_v54, %v5792_v25  ;;  %v3435_v25 = vpop.f32.mrf.mxu0 }
 0x402   :  { %3533 = vst.msk [vmem:[%s5956_s10 + $0x38] sm:$0xff] %vm3525_vm14, %v3516_v29  ;;  %3534 = vst.msk [vmem:[%s5956_s10 + $0x40] sm:$0xff] %vm3525_vm14, %v3517_v60  ;;  %v3502_v35 = vmul.f32 0.5, %v3271_v27  ;;  %v3503_v20 = vmul.f32 0.5, %v3272_v55 }
 0x403   :  { %v3237_v33 = vpop.permute.xlu1 %3236  ;;  %v3239_v1 = vpop.permute.xlu0 %3238 }
 0x404   :  { %v3518_v53 = vadd.f32 %v3502_v35, %v3486_v30  ;;  %v3519_v23 = vadd.f32 %v3503_v20, %v3487_v4  ;;  %v3273_v42 = vadd.f32 %v3237_v33, %v5798_v63  ;;  %v3274_v56 = vadd.f32 %v3239_v1, %v5800_v36 }
 0x405   :  { %v3467_v63 = vmul.f32 %v5821_v44, %v3435_v25 }
 0x406   :  { %3535 = vst.msk [vmem:[%s5956_s10 + $0x48] sm:$0xff] %vm3525_vm14, %v3518_v53  ;;  %3536 = vst.msk [vmem:[%s5956_s10 + $0x50] sm:$0xff] %vm3525_vm14, %v3519_v23  ;;  %v3504_v12 = vmul.f32 0.5, %v3273_v42  ;;  %v3505_v19 = vmul.f32 0.5, %v3274_v56 }
 0x407   :  { %v3241_v13 = vpop.permute.xlu1 %3240  ;;  %v3243_v36 = vpop.permute.xlu0 %3242  ;;  %v3490_v59 = vadd.f32 %v5829_v15, %v3467_v63 }
 0x408   :  { %v3520_v6 = vadd.f32 %v3504_v12, %v3488_v38  ;;  %v3521_v21 = vadd.f32 %v3505_v19, %v3489_v48  ;;  %v3275_v62 = vadd.f32 %v3241_v13, %v5806_v52  ;;  %v3276_v2 = vadd.f32 %v3243_v36, %v5808_v51 }
 0x40a   :  { %3537 = vst.msk [vmem:[%s5956_s10 + $0x58] sm:$0xff] %vm3525_vm14, %v3520_v6  ;;  %3538 = vst.msk [vmem:[%s5956_s10 + $0x60] sm:$0xff] %vm3525_vm14, %v3521_v21  ;;  %v3506_v58 = vmul.f32 0.5, %v3275_v62  ;;  %v3507_v52 = vmul.f32 0.5, %v3276_v2 }
 0x40b   :  { %v3245_v3 = vpop.permute.xlu1 %3244 }
 0x40c   :  { %v3522_v51 = vadd.f32 %v3506_v58, %v3490_v59  ;;  %v3523_v46 = vadd.f32 %v3507_v52, %v3491_v10  ;;  %v3277_v28 = vadd.f32 %v3245_v3, %v5814_v7 }
 0x40e   :  { %3539 = vst.msk [vmem:[%s5956_s10 + $0x68] sm:$0xff] %vm3525_vm14, %v3522_v51  ;;  %3540 = vst.msk [vmem:[%s5956_s10 + $0x70] sm:$0xff] %vm3525_vm14, %v3523_v46  ;;  %v3508_v44 = vmul.f32 0.5, %v3277_v28 }
 0x410   :  { %v3524_v16 = vadd.f32 %v3508_v44, %v3492_v0 }
 0x412   :  { %3541 = vst.msk [vmem:[%s5956_s10 + $0x78] sm:$0xff] %vm3525_vm14, %v3524_v16 }

</bundles_post_ra>
